<compile_context>
chip_gen: v5e
topology: v5e:2x2
jax: 0.10.0
libtpu: 0.0.40
codegen_flags: <defaults>
</compile_context>

<pallas_src>
import functools
import math

import jax
import jax.numpy as jnp
from jax.experimental import pallas as pl
from jax.experimental.pallas import tpu as pltpu


_GAUSS_LANES = 512


def _default_vmem_limit():
    # Per-generation VMEM budget: ~3/4 of physical, capped.
    # v7x (64 MiB phys) -> 48 MiB; v5e/v6e (128 MiB phys) -> ~96-100 MiB.
    try:
        cap = pltpu.get_tpu_info().vmem_capacity_bytes
        return int(min(cap * 3 // 4, 100 * 1024 * 1024))
    except Exception:
        return 48 * 1024 * 1024


_VMEM_LIMIT = _default_vmem_limit()


# ----------------------------------------------------------------------------
# small helpers
# ----------------------------------------------------------------------------
def _ceil_to(x, m):
    return (x + m - 1) // m * m


def _pick_div(p, prefs):
    for c in prefs:
        if p % c == 0:
            return c
    return 128


def _pick_row_tile(M, cap, gran=16):
    """Largest tile <= cap (multiple of gran) that divides M, else padded cap."""
    t = min(cap, _ceil_to(M, gran))
    for cand in range(t, gran - 1, -gran):
        if M % cand == 0 and cand * 4 >= t:
            return cand
    return t


def _pick_seq_tile(L, cap):
    if L <= cap:
        return max(16, _ceil_to(L, 16))
    for t in range(cap, 15, -16):
        if L % t == 0:
            return t
    return cap


def _sym(p):
    return ((p[0], p[0]), (p[1], p[1]), (p[2], p[2]))


def _gelu(x):
    # exact GELU (erf form), matching torch.nn.GELU default
    return 0.5 * x * (1.0 + jax.lax.erf(x * 0.7071067811865476))


# ----------------------------------------------------------------------------
# Pallas kernel 1: (M, N, K)-tiled matmul (+ grouped variant), bf16 inputs,
# f32 accumulator, bias (+ optional fused GELU) applied on the last K step.
# ----------------------------------------------------------------------------
def _matmul_kernel(a_ref, b_ref, bias_ref, o_ref, acc_ref, *, activation):
    @pl.when(pl.program_id(2) == 0)
    def _():
        acc_ref[...] = jnp.zeros_like(acc_ref)

    acc_ref[...] += jnp.dot(a_ref[...], b_ref[...],
                            preferred_element_type=jnp.float32)

    @pl.when(pl.program_id(2) == pl.num_programs(2) - 1)
    def _():
        r = acc_ref[...] + bias_ref[...]
        if activation == 'gelu':
            r = _gelu(r)
        o_ref[...] = r.astype(o_ref.dtype)


def _gmatmul_kernel(a_ref, b_ref, bias_ref, o_ref, acc_ref, *, activation):
    @pl.when(pl.program_id(3) == 0)
    def _():
        acc_ref[...] = jnp.zeros_like(acc_ref)

    acc_ref[...] += jnp.dot(a_ref[0], b_ref[0],
                            preferred_element_type=jnp.float32)

    @pl.when(pl.program_id(3) == pl.num_programs(3) - 1)
    def _():
        r = acc_ref[...] + bias_ref[0]
        if activation == 'gelu':
            r = _gelu(r)
        o_ref[0] = r.astype(o_ref.dtype)


def prep_matmul_weight(w2d, bias, k_align=None, n_align=None):
    """w2d: (K, N); bias: (N,). Pads/casts once (hoisted out of the forward).

    K is padded to a multiple of 512 (big K) / 256 / 128 and N to a multiple
    of 256 (N > 128) so the matmul tiles can use tk=512 / tn=256 and fill the
    256-wide MXU on v6e/v7x (perf-review item)."""
    K, Nc = w2d.shape
    if k_align is None:
        k_align = 512 if K >= 2048 else (256 if K >= 256 else 128)
    if n_align is None:
        n_align = 256 if Nc > 128 else 128
    Kp, Np = _ceil_to(K, k_align), _ceil_to(Nc, n_align)
    wpad = jnp.pad(w2d.astype(jnp.bfloat16), ((0, Kp - K), (0, Np - Nc)))
    bpad = jnp.pad(bias.astype(jnp.float32), (0, Np - Nc)).reshape(1, Np)
    return {'w': wpad, 'b': bpad, 'k': K, 'n': Nc}


def matmul_prepped(A, wp, activation=None, out_dtype=jnp.float32):
    """A: (M, K) float; wp: prepped weight dict -> (M, Nout)."""
    M, K = A.shape
    Kp, Np = wp['w'].shape
    assert K == wp['k']
    tn = _pick_div(Np, (256, 128))
    tk = _pick_div(Kp, (512, 256, 128))
    tm = _pick_row_tile(M, 512)
    Mp = _ceil_to(M, tm)
    Ap = A.astype(jnp.bfloat16)
    if Mp != M or Kp != K:
        Ap = jnp.pad(Ap, ((0, Mp - M), (0, Kp - K)))

    out = pl.pallas_call(
        functools.partial(_matmul_kernel, activation=activation),
        out_shape=jax.ShapeDtypeStruct((Mp, Np), out_dtype),
        grid_spec=pltpu.PrefetchScalarGridSpec(
            num_scalar_prefetch=0,
            grid=(Mp // tm, Np // tn, Kp // tk),
            in_specs=[
                pl.BlockSpec((tm, tk), lambda i, j, k: (i, k)),
                pl.BlockSpec((tk, tn), lambda i, j, k: (k, j)),
                pl.BlockSpec((1, tn), lambda i, j, k: (0, j)),
            ],
            out_specs=pl.BlockSpec((tm, tn), lambda i, j, k: (i, j)),
            scratch_shapes=[pltpu.VMEM((tm, tn), jnp.float32)],
        ),
        compiler_params=pltpu.CompilerParams(
            dimension_semantics=("parallel", "parallel", "arbitrary"),
            vmem_limit_bytes=_VMEM_LIMIT),
    )(Ap, wp['w'], wp['b'])
    if Mp != M:
        out = out[:M]
    if Np != wp['n']:
        out = out[:, :wp['n']]
    return out


def matmul_grouped(A, gw, activation=None, out_dtype=jnp.float32):
    """A: (G, M, K); gw: grouped prepped weights {'w':(G,Kp,Np),'b':(G,1,Np)}."""
    G, M, K = A.shape
    _, Kp, Np = gw['w'].shape
    assert K == gw['k']
    tn = _pick_div(Np, (256, 128))
    tk = _pick_div(Kp, (512, 256, 128))
    tm = _pick_row_tile(M, 512)
    Mp = _ceil_to(M, tm)
    Ap = A.astype(jnp.bfloat16)
    if Mp != M or Kp != K:
        Ap = jnp.pad(Ap, ((0, 0), (0, Mp - M), (0, Kp - K)))

    out = pl.pallas_call(
        functools.partial(_gmatmul_kernel, activation=activation),
        out_shape=jax.ShapeDtypeStruct((G, Mp, Np), out_dtype),
        grid_spec=pltpu.PrefetchScalarGridSpec(
            num_scalar_prefetch=0,
            grid=(G, Mp // tm, Np // tn, Kp // tk),
            in_specs=[
                pl.BlockSpec((1, tm, tk), lambda g, i, j, k: (g, i, k)),
                pl.BlockSpec((1, tk, tn), lambda g, i, j, k: (g, k, j)),
                pl.BlockSpec((1, 1, tn), lambda g, i, j, k: (g, 0, j)),
            ],
            out_specs=pl.BlockSpec((1, tm, tn), lambda g, i, j, k: (g, i, j)),
            scratch_shapes=[pltpu.VMEM((tm, tn), jnp.float32)],
        ),
        compiler_params=pltpu.CompilerParams(
            dimension_semantics=("parallel", "parallel", "parallel",
                                 "arbitrary"),
            vmem_limit_bytes=_VMEM_LIMIT),
    )(Ap, gw['w'], gw['b'])
    if Mp != M or Np != gw['n']:
        out = out[:, :M, :gw['n']]
    return out


# ----------------------------------------------------------------------------
# Pallas kernel 2: fused 4-layer 1x1-conv stack, grouped over a leading grid
# axis (means + scales entropy stacks share one launch per slice).
# ----------------------------------------------------------------------------
def _stack4g_kernel(x_ref, w1_ref, b1_ref, w2_ref, b2_ref, w3_ref, b3_ref,
                    w4_ref, b4_ref, o_ref, *, final_act):
    h = _gelu(jnp.dot(x_ref[0], w1_ref[0],
                      preferred_element_type=jnp.float32) + b1_ref[0])
    h = _gelu(jnp.dot(h.astype(jnp.bfloat16), w2_ref[0],
                      preferred_element_type=jnp.float32) + b2_ref[0])
    h = _gelu(jnp.dot(h.astype(jnp.bfloat16), w3_ref[0],
                      preferred_element_type=jnp.float32) + b3_ref[0])
    o = jnp.dot(h.astype(jnp.bfloat16), w4_ref[0],
                preferred_element_type=jnp.float32) + b4_ref[0]
    if final_act == 'tanh_half':
        o = 0.5 * jnp.tanh(o)
    o_ref[0] = o.astype(o_ref.dtype)


def run_stack(gstack, x, final_act=None):
    """gstack: 4 grouped prepped layers; x: (G, R, C0) -> (G, R, Cout)."""
    assert len(gstack) == 4
    G, R, C0 = x.shape
    assert C0 == gstack[0]['k']
    C0p = gstack[0]['w'].shape[1]
    Coutp = gstack[-1]['w'].shape[2]
    tr = _pick_row_tile(R, 512)
    Rp = _ceil_to(R, tr)
    xp = x.astype(jnp.bfloat16)
    if Rp != R or C0p != C0:
        xp = jnp.pad(xp, ((0, 0), (0, Rp - R), (0, C0p - C0)))

    in_specs = [pl.BlockSpec((1, tr, C0p), lambda g, i: (g, i, 0))]
    args = [xp]
    for layer in gstack:
        Kp, Np = layer['w'].shape[1], layer['w'].shape[2]
        in_specs.append(pl.BlockSpec((1, Kp, Np), lambda g, i: (g, 0, 0)))
        in_specs.append(pl.BlockSpec((1, 1, Np), lambda g, i: (g, 0, 0)))
        args.append(layer['w'])
        args.append(layer['b'])

    out = pl.pallas_call(
        functools.partial(_stack4g_kernel, final_act=final_act),
        out_shape=jax.ShapeDtypeStruct((G, Rp, Coutp), jnp.float32),
        grid_spec=pltpu.PrefetchScalarGridSpec(
            num_scalar_prefetch=0,
            grid=(G, Rp // tr),
            in_specs=in_specs,
            out_specs=pl.BlockSpec((1, tr, Coutp), lambda g, i: (g, i, 0)),
        ),
        compiler_params=pltpu.CompilerParams(
            dimension_semantics=("parallel", "parallel"),
            vmem_limit_bytes=_VMEM_LIMIT),
    )(*args)
    if Rp != R or Coutp != gstack[-1]['n']:
        out = out[:, :R, :gstack[-1]['n']]
    return out


def _rows_lr(feats_l, feats_r):
    xl = feats_l[0] if len(feats_l) == 1 else jnp.concatenate(feats_l, axis=-1)
    xr = feats_r[0] if len(feats_r) == 1 else jnp.concatenate(feats_r, axis=-1)
    B, h, w, C = xl.shape
    return (jnp.concatenate([xl.reshape(B * h * w, C),
                             xr.reshape(B * h * w, C)], 0), (B, h, w))


def run_stack_lr(gstack, feats_l, feats_r, final_act=None):
    """Left/right eyes (shared weights) batched into one fused-stack launch."""
    x, (B, h, w) = _rows_lr(feats_l, feats_r)
    out = run_stack(gstack, x[None], final_act)[0]
    out = out.reshape(2, B, h, w, out.shape[-1])
    return out[0], out[1]


def run_ep_ms(gstack, m_feats_l, m_feats_r, s_feats_l, s_feats_r):
    """Means + scales entropy-parameter stacks in a single grouped launch."""
    xm, (B, h, w) = _rows_lr(m_feats_l, m_feats_r)
    xs, _ = _rows_lr(s_feats_l, s_feats_r)
    out = run_stack(gstack, jnp.stack([xm, xs], 0))
    out = out.reshape(2, 2, B, h, w, out.shape[-1])
    return out[0, 0], out[0, 1], out[1, 0], out[1, 1]


# ----------------------------------------------------------------------------
# Pallas kernel 3: flash-style cross attention (online softmax)
# ----------------------------------------------------------------------------
def _attn_kernel(q_ref, k_ref, v_ref, o_ref, m_sc, l_sc, acc_sc,
                 *, kv_len, tkv, mask_pad):
    ki = pl.program_id(2)

    @pl.when(ki == 0)
    def _():
        m_sc[...] = jnp.full(m_sc.shape, -1e30, m_sc.dtype)
        l_sc[...] = jnp.zeros(l_sc.shape, l_sc.dtype)
        acc_sc[...] = jnp.zeros(acc_sc.shape, acc_sc.dtype)

    # 1/sqrt(C) scale is folded into Wq at prep time.
    s = jnp.einsum('bqd,bkd->bqk', q_ref[...], k_ref[...],
                   preferred_element_type=jnp.float32)
    if mask_pad:  # only emitted when the kv length actually needs padding
        col = jax.lax.broadcasted_iota(jnp.int32, s.shape, 2) + ki * tkv
        s = jnp.where(col < kv_len, s, -1e30)

    m_prev = m_sc[...]
    m_new = jnp.maximum(m_prev, s.max(axis=-1, keepdims=True))
    alpha = jnp.exp(m_prev - m_new)
    p = jnp.exp(s - m_new)
    l_sc[...] = alpha * l_sc[...] + p.sum(axis=-1, keepdims=True)
    acc_sc[...] = alpha * acc_sc[...] + jnp.einsum(
        'bqk,bkd->bqd', p.astype(jnp.bfloat16), v_ref[...],
        preferred_element_type=jnp.float32)
    m_sc[...] = m_new

    @pl.when(ki == pl.num_programs(2) - 1)
    def _():
        o_ref[...] = (acc_sc[...] * pl.reciprocal(l_sc[...], approx=True)
                      ).astype(o_ref.dtype)


def cross_attention(q, k, v):
    """q, k, v: (G, L, C); q[g] attends to k[g], v[g].  Returns bf16."""
    G, L, C = q.shape
    Cp = _ceil_to(C, 128)
    tq = _pick_seq_tile(L, 256)
    tkv = _pick_seq_tile(L, 512)
    Lq = _ceil_to(L, tq)
    Lk = _ceil_to(L, tkv)
    mask_pad = (Lk != L)
    qp = jnp.pad(q.astype(jnp.bfloat16), ((0, 0), (0, Lq - L), (0, Cp - C)))
    kp = jnp.pad(k.astype(jnp.bfloat16), ((0, 0), (0, Lk - L), (0, Cp - C)))
    vp = jnp.pad(v.astype(jnp.bfloat16), ((0, 0), (0, Lk - L), (0, Cp - C)))

    out = pl.pallas_call(
        functools.partial(_attn_kernel, kv_len=L, tkv=tkv, mask_pad=mask_pad),
        out_shape=jax.ShapeDtypeStruct((G, Lq, Cp), jnp.bfloat16),
        grid_spec=pltpu.PrefetchScalarGridSpec(
            num_scalar_prefetch=0,
            grid=(G, Lq // tq, Lk // tkv),
            in_specs=[
                pl.BlockSpec((1, tq, Cp), lambda g, qi, ki: (g, qi, 0)),
                pl.BlockSpec((1, tkv, Cp), lambda g, qi, ki: (g, ki, 0)),
                pl.BlockSpec((1, tkv, Cp), lambda g, qi, ki: (g, ki, 0)),
            ],
            out_specs=pl.BlockSpec((1, tq, Cp), lambda g, qi, ki: (g, qi, 0)),
            scratch_shapes=[
                pltpu.VMEM((1, tq, 1), jnp.float32),
                pltpu.VMEM((1, tq, 1), jnp.float32),
                pltpu.VMEM((1, tq, Cp), jnp.float32),
            ],
        ),
        compiler_params=pltpu.CompilerParams(
            dimension_semantics=("parallel", "parallel", "arbitrary"),
            vmem_limit_bytes=_VMEM_LIMIT),
    )(qp, kp, vp)
    if Lq != L or Cp != C:
        out = out[:, :L, :C]
    return out


def mutual_attention_cl(ap, left, right):
    """Stereo mutual attention (channel-last (B,H,W,C) inputs).

    TODO(synk): MutualAttention_master definition unavailable; stand-in is a
    symmetric cross-attention with shared QKV/output 1x1 projections and a
    residual connection.
    """
    B, h, w, C = left.shape
    L = h * w
    x = jnp.stack([left, right], axis=0).reshape(2 * B * L, C)
    qkv = matmul_prepped(x, ap['qkv'],
                         out_dtype=jnp.bfloat16).reshape(2, B, L, 3 * C)
    q, k, v = qkv[..., :C], qkv[..., C:2 * C], qkv[..., 2 * C:]
    k_sw = jnp.concatenate([k[1:2], k[0:1]], axis=0)   # swap eyes
    v_sw = jnp.concatenate([v[1:2], v[0:1]], axis=0)
    attn = cross_attention(q.reshape(2 * B, L, C), k_sw.reshape(2 * B, L, C),
                           v_sw.reshape(2 * B, L, C))
    o = matmul_prepped(attn.reshape(2 * B * L, C), ap['o']).reshape(2, B, h, w, C)
    return left + o[0], right + o[1]


# ----------------------------------------------------------------------------
# Pallas kernel 4: Gaussian-conditional likelihood + STE quantization
# ----------------------------------------------------------------------------
def _gaussian_ste_kernel(y_ref, sc_ref, mu_ref, lik_ref, ste_ref):
    y = y_ref[...]
    mu = mu_ref[...]
    sc = jnp.maximum(sc_ref[...], 0.11)                 # compressai scale bound
    q = jnp.round(y - mu)                               # eval-mode quantization
    aq = jnp.abs(q)
    inv_sqrt2 = 0.7071067811865476

    def cdf(t):
        return 0.5 * (1.0 + jax.lax.erf(t * inv_sqrt2))

    upper = cdf((0.5 - aq) / sc)
    lower = cdf((-0.5 - aq) / sc)
    lik_ref[...] = jnp.maximum(upper - lower, 1e-9)
    ste_ref[...] = q + mu


def _gaussian_unit_kernel(y_ref, lik_ref, hat_ref):
    # Specialized scale=1, mean=0 path (z prior) -- no ones/zeros side inputs.
    y = y_ref[...]
    q = jnp.round(y)
    aq = jnp.abs(q)
    inv_sqrt2 = 0.7071067811865476
    upper = 0.5 * (1.0 + jax.lax.erf((0.5 - aq) * inv_sqrt2))
    lower = 0.5 * (1.0 + jax.lax.erf((-0.5 - aq) * inv_sqrt2))
    lik_ref[...] = jnp.maximum(upper - lower, 1e-9)
    hat_ref[...] = q


def _run_rows_elementwise(kernel, inputs, n_out):
    shape = inputs[0].shape
    n = inputs[0].size
    rows = pl.cdiv(n, _GAUSS_LANES)
    tr = _pick_row_tile(rows, 256, gran=8)
    rows_p = _ceil_to(rows, tr)
    total = rows_p * _GAUSS_LANES

    def prep(t):
        return jnp.pad(t.reshape(-1).astype(jnp.float32),
                       (0, total - n)).reshape(rows_p, _GAUSS_LANES)

    spec = pl.BlockSpec((tr, _GAUSS_LANES), lambda i: (i, 0))
    outs = pl.pallas_call(
        kernel,
        out_shape=tuple(jax.ShapeDtypeStruct((rows_p, _GAUSS_LANES),
                                             jnp.float32)
                        for _ in range(n_out)),
        grid_spec=pltpu.PrefetchScalarGridSpec(
            num_scalar_prefetch=0,
            grid=(rows_p // tr,),
            in_specs=[spec] * len(inputs),
            out_specs=[spec] * n_out,
        ),
        compiler_params=pltpu.CompilerParams(
            dimension_semantics=("parallel",),
            vmem_limit_bytes=_VMEM_LIMIT),
    )(*[prep(t) for t in inputs])
    return tuple(o.reshape(-1)[:n].reshape(shape) for o in outs)


def gaussian_conditional_ste(y, scales, means):
    """Returns (likelihoods, round(y - means) + means), same shape as y."""
    lik, ste = _run_rows_elementwise(_gaussian_ste_kernel, [y, scales, means], 2)
    return lik, ste


def gaussian_unit(z):
    """Unit-Gaussian likelihood and rounded z_hat (EntropyBottleneck stand-in)."""
    lik, zhat = _run_rows_elementwise(_gaussian_unit_kernel, [z], 2)
    return lik, zhat


# ----------------------------------------------------------------------------
# conv building blocks (channel-last, bf16 im2col + tiled matmul)
# ----------------------------------------------------------------------------
def prep_conv3d(w, b, mask=None):
    """w: (Cout, Cin, kd, kh, kw) PyTorch Conv3d layout."""
    if mask is not None:
        w = w * mask
    Cout, Cin, kd, kh, kw = w.shape
    w2 = jnp.transpose(w, (2, 3, 4, 1, 0)).reshape(kd * kh * kw * Cin, Cout)
    return {'wp': prep_matmul_weight(w2, b), 'kernel': (kd, kh, kw)}


def prep_conv3d_group(ws_bs, mask=None):
    """Per-slice conv weights stacked for one grouped launch."""
    preps = [prep_conv3d(w, b, mask=mask) for (w, b) in ws_bs]
    return {'w': jnp.stack([p['wp']['w'] for p in preps], 0),
            'b': jnp.stack([p['wp']['b'] for p in preps], 0),
            'k': preps[0]['wp']['k'], 'n': preps[0]['wp']['n'],
            'kernel': preps[0]['kernel']}


def _conv_geometry(shape_dhw, kernel, stride, padding):
    kd, kh, kw = kernel
    sd, sh, sw = stride
    (pd0, pd1), (ph0, ph1), (pw0, pw1) = padding
    Dp = shape_dhw[0] + pd0 + pd1
    Hp = shape_dhw[1] + ph0 + ph1
    Wq = shape_dhw[2] + pw0 + pw1
    Do = (Dp - kd) // sd + 1
    Ho = (Hp - kh) // sh + 1
    Wo = (Wq - kw) // sw + 1
    return Do, Ho, Wo


def conv3d_cl(x, cw, stride=(1, 1, 1), padding=((0, 0), (0, 0), (0, 0)),
              activation=None, out_dtype=jnp.float32):
    """x: (B, D, H, W, Cin) channel-last -> (B, Do, Ho, Wo, Cout)."""
    B, D, H, W, Cin = x.shape
    kd, kh, kw = cw['kernel']
    sd, sh, sw = stride
    (pd0, pd1), (ph0, ph1), (pw0, pw1) = padding
    xp = jnp.pad(x.astype(jnp.bfloat16),
                 ((0, 0), (pd0, pd1), (ph0, ph1), (pw0, pw1), (0, 0)))
    Do, Ho, Wo = _conv_geometry((D, H, W), (kd, kh, kw), stride, padding)

    # TODO(synk): im2col still materialized; fusing tap windows into the matmul
    # needs a manual-DMA halo pipeline (BlockSpec cannot express the offsets).
    taps = []
    for dz in range(kd):
        for dy in range(kh):
            for dx in range(kw):
                taps.append(xp[:, dz:dz + sd * (Do - 1) + 1:sd,
                               dy:dy + sh * (Ho - 1) + 1:sh,
                               dx:dx + sw * (Wo - 1) + 1:sw, :])
    cols = jnp.stack(taps, axis=4)                       # (B,Do,Ho,Wo,KT,Cin)
    A = cols.reshape(B * Do * Ho * Wo, kd * kh * kw * Cin)
    out = matmul_prepped(A, cw['wp'], activation, out_dtype)
    return out.reshape(B, Do, Ho, Wo, -1)


def conv3d_grouped_cl(xg, gcw, stride=(1, 1, 1),
                      padding=((0, 0), (0, 0), (0, 0)),
                      activation=None, out_dtype=jnp.float32):
    """xg: (G, B, D, H, W, Cin) with per-group weights -> (G, B, Do, Ho, Wo, Co)."""
    G, B, D, H, W, Cin = xg.shape
    kd, kh, kw = gcw['kernel']
    sd, sh, sw = stride
    (pd0, pd1), (ph0, ph1), (pw0, pw1) = padding
    xp = jnp.pad(xg.astype(jnp.bfloat16),
                 ((0, 0), (0, 0), (pd0, pd1), (ph0, ph1), (pw0, pw1), (0, 0)))
    Do, Ho, Wo = _conv_geometry((D, H, W), (kd, kh, kw), stride, padding)

    taps = []
    for dz in range(kd):
        for dy in range(kh):
            for dx in range(kw):
                taps.append(xp[:, :, dz:dz + sd * (Do - 1) + 1:sd,
                               dy:dy + sh * (Ho - 1) + 1:sh,
                               dx:dx + sw * (Wo - 1) + 1:sw, :])
    cols = jnp.stack(taps, axis=5)                       # (G,B,Do,Ho,Wo,KT,Cin)
    A = cols.reshape(G, B * Do * Ho * Wo, kd * kh * kw * Cin)
    out = matmul_grouped(A, gcw, activation, out_dtype)
    return out.reshape(G, B, Do, Ho, Wo, -1)


def _deconv_phase_plan_1d(K, s, p):
    base = K - 1 - p
    plans = []
    for r in range(s):
        k0 = (base - r) % s
        ks = list(range(k0, K, s))
        assert ks, "unsupported transposed-conv geometry"
        off0 = (ks[0] - base + r) // s
        plans.append((r, ks, off0))
    return plans


def prep_deconv3d(w, b, stride, padding, output_padding):
    """w: (Cin, Cout, kd, kh, kw) PyTorch ConvTranspose3d layout.

    Sub-pixel decomposition: one small stride-1 conv per output phase;
    avoids the 4x zero-dilation waste of the naive lowering.
    """
    Cin, Cout, kd, kh, kw = w.shape
    sd, sh, sw = stride
    assert sd == 1, "depth stride must be 1 for this model"
    w_t = jnp.transpose(w, (1, 0, 2, 3, 4))              # (Cout, Cin, kd, kh, kw)
    pz = _deconv_phase_plan_1d(kd, sd, padding[0])
    py = _deconv_phase_plan_1d(kh, sh, padding[1])
    px = _deconv_phase_plan_1d(kw, sw, padding[2])
    phases = []
    for (rz, kz, oz) in pz:
        for (ry, ky, oy) in py:
            for (rx, kx, ox) in px:
                iz = jnp.array([kd - 1 - t for t in kz])
                iy = jnp.array([kh - 1 - t for t in ky])
                ix = jnp.array([kw - 1 - t for t in kx])
                wph = w_t[:, :, iz[:, None, None], iy[None, :, None],
                          ix[None, None, :]]             # (Cout,Cin,lz,ly,lx)
                lz, ly, lx = len(kz), len(ky), len(kx)
                w2 = jnp.transpose(wph, (2, 3, 4, 1, 0)).reshape(
                    lz * ly * lx * Cin, Cout)
                phases.append({'wp': prep_matmul_weight(w2, b),
                               'kernel': (lz, ly, lx),
                               'r': (rz, ry, rx),
                               'off0': (oz, oy, ox)})
    return {'phases': phases, 'stride': stride, 'ksize': (kd, kh, kw),
            'padding': padding, 'output_padding': output_padding}


def conv_transpose3d_cl(x, dp, activation=None, out_dtype=jnp.float32):
    """x: (B, D, H, W, Cin) -> (B, Oz, Oy, Ox, Cout)."""
    # TODO(synk): consecutive deconvs could stay in phase-decomposed form to
    # skip the interleave shuffle; kept interleaved for clarity/correctness.
    B, D, H, W, _ = x.shape
    kd, kh, kw = dp['ksize']
    sd, sh, sw = dp['stride']
    pd, ph, pw = dp['padding']
    od, oh, ow = dp['output_padding']
    Oz = (D - 1) * sd - 2 * pd + kd + od
    Oy = (H - 1) * sh - 2 * ph + kh + oh
    Ox = (W - 1) * sw - 2 * pw + kw + ow

    def _pad1d(I, s, O, r, off0, taps):
        U = (O - r + s - 1) // s
        off_last = off0 + taps - 1
        lo = -off0
        hi = (U - 1 + off_last) - (I - 1)
        assert lo >= 0 and hi >= 0, "unsupported transposed-conv geometry"
        return (lo, hi), U

    outs = {}
    uref = None
    for phd in dp['phases']:
        rz, ry, rx = phd['r']
        lz, ly, lx = phd['kernel']
        oz, oy, ox = phd['off0']
        padz, Uz = _pad1d(D, sd, Oz, rz, oz, lz)
        pady, Uy = _pad1d(H, sh, Oy, ry, oy, ly)
        padx, Ux = _pad1d(W, sw, Ox, rx, ox, lx)
        res = conv3d_cl(x, phd, stride=(1, 1, 1), padding=(padz, pady, padx),
                        activation=activation, out_dtype=out_dtype)
        outs[(ry, rx)] = res
        if uref is None:
            uref = (Uz, Uy, Ux)
        assert (Uz, Uy, Ux) == uref

    Uz, Uy, Ux = uref
    Cout = outs[(0, 0)].shape[-1]
    stacked = jnp.stack(
        [jnp.stack([outs[(ry, rx)] for rx in range(sw)], axis=0)
         for ry in range(sh)], axis=0)                   # (sh,sw,B,Uz,Uy,Ux,C)
    out = stacked.transpose(2, 3, 4, 0, 5, 1, 6).reshape(
        B, Uz, Uy * sh, Ux * sw, Cout)
    assert out.shape[1] == Oz and out.shape[2] == Oy and out.shape[3] == Ox
    return out


# ----------------------------------------------------------------------------
# deterministic parameter construction (matching the PyTorch module layout)
# ----------------------------------------------------------------------------
_PARAM_COUNTER = [0]
_BASE_KEY = jax.random.PRNGKey(0)


def _param(shape, fan_in):
    _PARAM_COUNTER[0] += 1
    k = jax.random.fold_in(_BASE_KEY, _PARAM_COUNTER[0])
    return jax.random.normal(k, shape, jnp.float32) * (1.0 / math.sqrt(fan_in))


def conv3d_params(cout, cin, k):
    kd, kh, kw = k
    return (_param((cout, cin, kd, kh, kw), cin * kd * kh * kw),
            jnp.zeros((cout,), jnp.float32))


def deconv3d_params(cin, cout, k):
    kd, kh, kw = k
    return (_param((cin, cout, kd, kh, kw), cin * kd * kh * kw),
            jnp.zeros((cout,), jnp.float32))


def stack_params(dims):
    return [(_param((dims[i + 1], dims[i]), dims[i]),
             jnp.zeros((dims[i + 1],), jnp.float32))
            for i in range(len(dims) - 1)]


def attn_params(c):
    p = {}
    for nm in ('q', 'k', 'v', 'o'):
        p['w' + nm] = _param((c, c), c)
        p['b' + nm] = jnp.zeros((c,), jnp.float32)
    return p


def masked_conv_mask(kd, kh, kw):
    """MaskedConv3d mask, type 'A' (causal over the (h, w) plane)."""
    m = jnp.ones((kh, kw), jnp.float32)
    m = m.at[kh // 2, kw // 2:].set(0.0)
    m = m.at[kh // 2 + 1:, :].set(0.0)
    return m[None, None, None, :, :]


def make_params(N, M, num_slices):
    cps = N // num_slices
    P = {}
    P['enc_a1'] = conv3d_params(N, 3, (3, 5, 5))
    P['enc_a2'] = conv3d_params(N, N, (3, 5, 5))
    P['en_tr_a'] = attn_params(N)
    P['enc_b1'] = conv3d_params(N, N, (3, 5, 5))
    P['enc_b2'] = conv3d_params(N, N, (3, 5, 5))
    P['en_tr_b'] = attn_params(N)
    P['hyper'] = {'ha1': conv3d_params(M, N, (3, 5, 5)),
                  'ha2': conv3d_params(M, M, (3, 3, 3)),
                  'hs_means': deconv3d_params(M, 2 * N, (3, 5, 5)),
                  'hs_scales': deconv3d_params(M, 2 * N, (3, 5, 5))}
    P['chan_sam'] = attn_params(cps * 8)
    P['de_tr_a'] = attn_params(N)
    P['dec_a1'] = deconv3d_params(N, N, (3, 5, 5))
    P['dec_a2'] = deconv3d_params(N, N, (3, 5, 5))
    P['de_tr_b'] = attn_params(N)
    P['dec_b1'] = deconv3d_params(N, N, (3, 5, 5))
    P['dec_b2'] = deconv3d_params(N, 3, (3, 5, 5))
    P['ctx_pred'] = [conv3d_params(2 * cps, cps, (3, 5, 5))
                     for _ in range(num_slices)]
    P['ep_zero_means'] = stack_params([2 * N + 2 * cps, 384, 192, 96, cps])
    P['ep_zero_scales'] = stack_params([2 * N + 2 * cps, 384, 192, 96, cps])
    P['ep_list_means'] = [stack_params([2 * N + 10 * cps, 384, 192, 96, cps])
                          for _ in range(num_slices - 1)]
    P['ep_list_scales'] = [stack_params([2 * N + 10 * cps, 384, 192, 96, cps])
                           for _ in range(num_slices - 1)]
    P['channel_ctx'] = [stack_params([cps * i, 224, 192, 128, 8 * cps])
                        for i in range(1, num_slices)]
    P['lrp_zero'] = stack_params([2 * N + cps, 384, 192, 64, cps])
    P['lrp_list'] = [stack_params([2 * N + 9 * cps, 384, 192, 64, cps])
                     for _ in range(num_slices - 1)]
    return P


def prep_attention(p):
    c = p['wq'].shape[0]
    scale = 1.0 / math.sqrt(c)
    wq = p['wq'] * scale                      # fold attention scale into Wq
    bq = p['bq'] * scale
    wqkv = jnp.concatenate([wq, p['wk'], p['wv']], axis=0).T   # (C, 3C)
    bqkv = jnp.concatenate([bq, p['bk'], p['bv']], axis=0)
    return {'qkv': prep_matmul_weight(wqkv, bqkv),
            'o': prep_matmul_weight(p['wo'].T, p['bo'])}


def prep_stack_group(stacks):
    """stacks: list of G parameter stacks (each 4 layers of identical dims)."""
    layers = []
    for li in range(len(stacks[0])):
        preps = [prep_matmul_weight(s[li][0].T, s[li][1],
                                    k_align=128, n_align=128) for s in stacks]
        layers.append({'w': jnp.stack([p['w'] for p in preps], 0),
                       'b': jnp.stack([p['b'] for p in preps], 0),
                       'k': preps[0]['k'], 'n': preps[0]['n']})
    return layers


def prepare_params(P, N, M, num_slices):
    """Hoists all weight reshaping / padding / bf16 casting out of the forward."""
    R = {'N': N, 'M': M, 'num_slices': num_slices}
    for k in ('enc_a1', 'enc_a2', 'enc_b1', 'enc_b2'):
        R[k] = prep_conv3d(*P[k])
    R['ha1'] = prep_conv3d(*P['hyper']['ha1'])
    R['ha2'] = prep_conv3d(*P['hyper']['ha2'])
    R['hs_means'] = prep_deconv3d(*P['hyper']['hs_means'], stride=(1, 2, 2),
                                  padding=(1, 2, 2), output_padding=(0, 1, 1))
    R['hs_scales'] = prep_deconv3d(*P['hyper']['hs_scales'], stride=(1, 2, 2),
                                   padding=(1, 2, 2), output_padding=(0, 1, 1))
    for k in ('dec_a1', 'dec_a2', 'dec_b1', 'dec_b2'):
        R[k] = prep_deconv3d(*P[k], stride=(1, 2, 2), padding=(1, 2, 2),
                             output_padding=(0, 1, 1))
    for k in ('en_tr_a', 'en_tr_b', 'de_tr_a', 'de_tr_b', 'chan_sam'):
        R[k] = prep_attention(P[k])
    mask = masked_conv_mask(3, 5, 5)
    R['ctx_pred'] = prep_conv3d_group(P['ctx_pred'], mask=mask)
    R['ep_ms_zero'] = prep_stack_group([P['ep_zero_means'],
                                        P['ep_zero_scales']])
    R['ep_ms_list'] = [prep_stack_group([m, s]) for m, s in
                       zip(P['ep_list_means'], P['ep_list_scales'])]
    R['channel_ctx'] = [prep_stack_group([s]) for s in P['channel_ctx']]
    R['lrp_zero'] = prep_stack_group([P['lrp_zero']])
    R['lrp_list'] = [prep_stack_group([s]) for s in P['lrp_list']]
    return R


# ----------------------------------------------------------------------------
# BiSIC forward pass (eval mode)
# ----------------------------------------------------------------------------
def bisic_forward(R, x_left, x_right):
    num_slices = R['num_slices']

    xl = jnp.transpose(x_left, (0, 2, 3, 1))
    xr = jnp.transpose(x_right, (0, 2, 3, 1))
    x_mix = jnp.stack([xl, xr], axis=1)                  # (B, 2, H, W, 3)

    # --- 3-D stereo encoder ---
    h = conv3d_cl(x_mix, R['enc_a1'], (1, 2, 2), _sym((1, 2, 2)),
                  activation='gelu', out_dtype=jnp.bfloat16)
    y = conv3d_cl(h, R['enc_a2'], (1, 2, 2), _sym((1, 2, 2)))
    yl, yr = mutual_attention_cl(R['en_tr_a'], y[:, 0], y[:, 1])
    y = jnp.stack([yl, yr], axis=1)
    h = conv3d_cl(y, R['enc_b1'], (1, 2, 2), _sym((1, 2, 2)),
                  activation='gelu', out_dtype=jnp.bfloat16)
    y = conv3d_cl(h, R['enc_b2'], (1, 2, 2), _sym((1, 2, 2)))
    yl, yr = mutual_attention_cl(R['en_tr_b'], y[:, 0], y[:, 1])
    y_mix = jnp.stack([yl, yr], axis=1)                  # (B, 2, h, w, N)

    # --- hyperprior ---
    # TODO(synk): Hyperprior3D_LRP / learned EntropyBottleneck unavailable;
    # stand-in: stride-2 hyper encoder, unit-Gaussian factorized z prior and
    # separate transposed-conv mean/scale hyper decoders.
    hz = conv3d_cl(y_mix, R['ha1'], (1, 2, 2), _sym((1, 2, 2)),
                   activation='gelu', out_dtype=jnp.bfloat16)
    z = conv3d_cl(hz, R['ha2'], (1, 1, 1), _sym((1, 1, 1)))
    z_lik, z_hat = gaussian_unit(z)                      # eval-mode quantization
    hyper_means = conv_transpose3d_cl(z_hat, R['hs_means'])
    hyper_scales = conv_transpose3d_cl(z_hat, R['hs_scales'])
    hm_l, hm_r = hyper_means[:, 0], hyper_means[:, 1]
    hs_l, hs_r = hyper_scales[:, 0], hyper_scales[:, 1]

    y_left, y_right = y_mix[:, 0], y_mix[:, 1]
    Bq, hh, ww, Nchan = y_left.shape
    cps = Nchan // num_slices
    y_raw_l = jnp.split(y_left, num_slices, axis=-1)
    y_raw_r = jnp.split(y_right, num_slices, axis=-1)

    # --- masked-conv spatial context: all 12 slices in ONE grouped launch ---
    yq = jnp.stack([jnp.round(y_left), jnp.round(y_right)], axis=1)
    yq_g = yq.reshape(Bq, 2, hh, ww, num_slices, cps)
    yq_g = jnp.transpose(yq_g, (4, 0, 1, 2, 3, 5))       # (S, B, 2, h, w, cps)
    ctx_all = conv3d_grouped_cl(yq_g, R['ctx_pred'], (1, 1, 1), _sym((1, 2, 2)))
    ctx_l_all, ctx_r_all = ctx_all[:, :, 0], ctx_all[:, :, 1]

    y_hat_l, y_hat_r, lik_ls, lik_rs = [], [], [], []

    for si in range(num_slices):
        ctx_l, ctx_r = ctx_l_all[si], ctx_r_all[si]

        if si == 0:
            ch_l = ch_r = None
            means_l, means_r, scales_l, scales_r = run_ep_ms(
                R['ep_ms_zero'],
                [hm_l, ctx_l], [hm_r, ctx_r],
                [hs_l, ctx_l], [hs_r, ctx_r])
        else:
            ch_l, ch_r = run_stack_lr(R['channel_ctx'][si - 1],
                                      [jnp.concatenate(y_hat_l, -1)],
                                      [jnp.concatenate(y_hat_r, -1)])
            ch_l, ch_r = mutual_attention_cl(R['chan_sam'], ch_l, ch_r)
            means_l, means_r, scales_l, scales_r = run_ep_ms(
                R['ep_ms_list'][si - 1],
                [hm_l, ctx_l, ch_l], [hm_r, ctx_r, ch_r],
                [hs_l, ctx_l, ch_l], [hs_r, ctx_r, ch_r])

        # Gaussian conditional likelihood + STE (left/right batched in one call)
        lik, ste = gaussian_conditional_ste(
            jnp.stack([y_raw_l[si], y_raw_r[si]], 0),
            jnp.stack([scales_l, scales_r], 0),
            jnp.stack([means_l, means_r], 0))
        lik_ls.append(lik[0])
        lik_rs.append(lik[1])
        ste_l, ste_r = ste[0], ste[1]

        if si == 0:
            lrp_l, lrp_r = run_stack_lr(R['lrp_zero'], [hm_l, ste_l],
                                        [hm_r, ste_r], final_act='tanh_half')
        else:
            lrp_l, lrp_r = run_stack_lr(R['lrp_list'][si - 1],
                                        [hm_l, ch_l, ste_l], [hm_r, ch_r, ste_r],
                                        final_act='tanh_half')
        y_hat_l.append(ste_l + lrp_l)
        y_hat_r.append(ste_r + lrp_r)

    y_hat_left = jnp.concatenate(y_hat_l, axis=-1)
    y_hat_right = jnp.concatenate(y_hat_r, axis=-1)
    y_lik_left = jnp.concatenate(lik_ls, axis=-1)
    y_lik_right = jnp.concatenate(lik_rs, axis=-1)

    # --- 3-D stereo decoder ---
    yl, yr = mutual_attention_cl(R['de_tr_a'], y_hat_left, y_hat_right)
    yd = jnp.stack([yl, yr], axis=1)
    h = conv_transpose3d_cl(yd, R['dec_a1'], activation='gelu',
                            out_dtype=jnp.bfloat16)
    yd = conv_transpose3d_cl(h, R['dec_a2'])
    yl, yr = mutual_attention_cl(R['de_tr_b'], yd[:, 0], yd[:, 1])
    yd = jnp.stack([yl, yr], axis=1)
    h = conv_transpose3d_cl(yd, R['dec_b1'], activation='gelu',
                            out_dtype=jnp.bfloat16)
    xd = conv_transpose3d_cl(h, R['dec_b2'])

    def nchw(t):
        return jnp.transpose(t, (0, 3, 1, 2))

    return {
        'x_hat': [nchw(xd[:, 0]), nchw(xd[:, 1])],
        'likelihoods': [{'y': nchw(y_lik_left), 'z': nchw(z_lik[:, 0])},
                        {'y': nchw(y_lik_right), 'z': nchw(z_lik[:, 1])}],
        'feature': [nchw(y_hat_left), nchw(y_hat_right),
                    nchw(z_hat[:, 0]), nchw(z_hat[:, 1])],
    }


# ----------------------------------------------------------------------------
# main
# ----------------------------------------------------------------------------
if __name__ == "__main__":
    N = M = 24                         # small stand-in for (192, 192); N % 12 == 0
    num_slices = 12                    # as in BiSIC_master
    B, H, W = 1, 32, 32

    key = jax.random.PRNGKey(0)
    kl, kr = jax.random.split(key)
    x_left = jax.random.normal(kl, (B, 3, H, W), jnp.float32)
    x_right = jax.random.normal(kr, (B, 3, H, W), jnp.float32)

    params = make_params(N=N, M=M, num_slices=num_slices)
    prepped = prepare_params(params, N=N, M=M, num_slices=num_slices)

    out = bisic_forward(prepped, x_left, x_right)
    out = jax.block_until_ready(out)

    assert out['x_hat'][0].shape == (B, 3, H, W)
    assert out['x_hat'][1].shape == (B, 3, H, W)
    assert out['likelihoods'][0]['y'].shape == (B, N, H // 16, W // 16)
    assert out['likelihoods'][0]['z'].shape == (B, M, H // 32, W // 32)
    assert out['feature'][0].shape == (B, N, H // 16, W // 16)
    print("KERNEL_OK")
</pallas_src>

<mosaic_0001>
module attributes {stable_mosaic.version = 11 : i64} {
  func.func @_matmul_kernel(%arg0: i32, %arg1: i32, %arg2: i32, %arg3: memref<512x256xbf16, #tpu.memory_space<vmem>>, %arg4: memref<256x128xbf16, #tpu.memory_space<vmem>>, %arg5: memref<1x128xf32, #tpu.memory_space<vmem>>, %arg6: memref<512x128xbf16, #tpu.memory_space<vmem>>, %arg7: memref<512x128xf32, #tpu.memory_space<vmem>>) attributes {dimension_semantics = [#tpu.dimension_semantics<parallel>, #tpu.dimension_semantics<parallel>, #tpu.dimension_semantics<arbitrary>], iteration_bounds = array<i64: 1, 1, 1>, scalar_prefetch = 0 : i64, scratch_operands = 1 : i64, tpu.core_type = #tpu.core_type<tc>, window_params = [{transform_indices = @transform_0, window_bounds = array<i64: 512, 256>}, {transform_indices = @transform_1, window_bounds = array<i64: 256, 128>}, {transform_indices = @transform_2, window_bounds = array<i64: 1, 128>}, {transform_indices = @transform_3, window_bounds = array<i64: 512, 128>}]} {
    %c0_i32 = arith.constant 0 : i32
    %0 = arith.cmpi eq, %arg2, %c0_i32 : i32
    %1 = arith.extui %0 : i1 to i32
    %c0_i32_0 = arith.constant 0 : i32
    %2 = arith.cmpi ne, %1, %c0_i32_0 : i32
    scf.if %2 {
      %cst_10 = arith.constant 0.000000e+00 : f32
      %12 = vector.broadcast %cst_10 : f32 to vector<512x128xf32>
      %c0_11 = arith.constant 0 : index
      %c0_12 = arith.constant 0 : index
      %13 = vector.load %arg7[%c0_11, %c0_12] : memref<512x128xf32, #tpu.memory_space<vmem>>, vector<512x128xf32>
      tpu.vector_store %arg7[%c0_11, %c0_12], %12 {strides = array<i32>} : memref<512x128xf32, #tpu.memory_space<vmem>>, vector<512x128xf32>,
    } else {
    }
    %c0 = arith.constant 0 : index
    %c0_1 = arith.constant 0 : index
    %3 = vector.load %arg7[%c0, %c0_1] : memref<512x128xf32, #tpu.memory_space<vmem>>, vector<512x128xf32>
    %c0_2 = arith.constant 0 : index
    %c0_3 = arith.constant 0 : index
    %4 = vector.load %arg3[%c0_2, %c0_3] : memref<512x256xbf16, #tpu.memory_space<vmem>>, vector<512x256xbf16>
    %c0_4 = arith.constant 0 : index
    %c0_5 = arith.constant 0 : index
    %5 = vector.load %arg4[%c0_4, %c0_5] : memref<256x128xbf16, #tpu.memory_space<vmem>>, vector<256x128xbf16>
    %cst = arith.constant dense<0.000000e+00> : vector<512x128xf32>
    %6 = tpu.matmul %4, %5, %cst {dimension_numbers = #tpu.dot_dimension_numbers<[1], [0], [0], [1], [0, 0, 1, 1], [], []>} : vector<512x256xbf16>, vector<256x128xbf16>, vector<512x128xf32> -> vector<512x128xf32>
    %7 = arith.addf %3, %6 : vector<512x128xf32>
    %c0_6 = arith.constant 0 : index
    %c0_7 = arith.constant 0 : index
    %8 = vector.load %arg7[%c0_6, %c0_7] : memref<512x128xf32, #tpu.memory_space<vmem>>, vector<512x128xf32>
    tpu.vector_store %arg7[%c0_6, %c0_7], %7 {strides = array<i32>} : memref<512x128xf32, #tpu.memory_space<vmem>>, vector<512x128xf32>,
    %c0_i32_8 = arith.constant 0 : i32
    %9 = arith.cmpi eq, %arg2, %c0_i32_8 : i32
    %10 = arith.extui %9 : i1 to i32
    %c0_i32_9 = arith.constant 0 : i32
    %11 = arith.cmpi ne, %10, %c0_i32_9 : i32
    scf.if %11 {
      %c0_10 = arith.constant 0 : index
      %c0_11 = arith.constant 0 : index
      %12 = vector.load %arg7[%c0_10, %c0_11] : memref<512x128xf32, #tpu.memory_space<vmem>>, vector<512x128xf32>
      %c0_12 = arith.constant 0 : index
      %c0_13 = arith.constant 0 : index
      %13 = vector.load %arg5[%c0_12, %c0_13] : memref<1x128xf32, #tpu.memory_space<vmem>>, vector<1x128xf32>
      %14 = vector.broadcast %13 : vector<1x128xf32> to vector<512x128xf32>
      %15 = arith.addf %12, %14 : vector<512x128xf32>
      %cst_14 = arith.constant 5.000000e-01 : f32
      %16 = vector.broadcast %cst_14 : f32 to vector<512x128xf32>
      %17 = arith.mulf %16, %15 : vector<512x128xf32>
      %cst_15 = arith.constant 0.707106769 : f32
      %18 = vector.broadcast %cst_15 : f32 to vector<512x128xf32>
      %19 = arith.mulf %15, %18 : vector<512x128xf32>
      %20 = math.erf %19 : vector<512x128xf32>
      %cst_16 = arith.constant 1.000000e+00 : f32
      %21 = vector.broadcast %cst_16 : f32 to vector<512x128xf32>
      %22 = arith.addf %21, %20 : vector<512x128xf32>
      %23 = arith.mulf %17, %22 : vector<512x128xf32>
      %24 = arith.truncf %23 : vector<512x128xf32> to vector<512x128xbf16>
      %c0_17 = arith.constant 0 : index
      %c0_18 = arith.constant 0 : index
      %25 = vector.load %arg6[%c0_17, %c0_18] : memref<512x128xbf16, #tpu.memory_space<vmem>>, vector<512x128xbf16>
      tpu.vector_store %arg6[%c0_17, %c0_18], %24 {strides = array<i32>} : memref<512x128xbf16, #tpu.memory_space<vmem>>, vector<512x128xbf16>,
    } else {
    }
    return
  }
  func.func @transform_0(%arg0: i32, %arg1: i32, %arg2: i32) -> (i32, i32) {
    %c0_i32 = arith.constant 0 : i32
    return %arg0, %arg2 : i32, i32
  }
  func.func @transform_1(%arg0: i32, %arg1: i32, %arg2: i32) -> (i32, i32) {
    %c0_i32 = arith.constant 0 : i32
    return %arg2, %arg1 : i32, i32
  }
  func.func @transform_2(%arg0: i32, %arg1: i32, %arg2: i32) -> (i32, i32) {
    %c0_i32 = arith.constant 0 : i32
    %c0_i32_0 = arith.constant 0 : i32
    return %c0_i32, %arg1 : i32, i32
  }
  func.func @transform_3(%arg0: i32, %arg1: i32, %arg2: i32) -> (i32, i32) {
    %c0_i32 = arith.constant 0 : i32
    return %arg0, %arg1 : i32, i32
  }
}

</mosaic_0001>

<bundles_post_ra>
// kernel: tpu_custom_call.1
= control target key start
LH: loop header
LB: loop body
LE: loop exit
PB: predicated region body
PF: predicated region fallthrough
CT: control target
= control target key end

     0   :  { %8 = vsyncpa [#allocation4], 0  ;;  %s7687_s0 = inlined_call_operand.hbm [shape: bf16[512,256], index: 0, kind: input, shape index: {}]   ;;  %s7688_s1 = inlined_call_operand.hbm [shape: bf16[256,128], index: 1, kind: input, shape index: {}]   ;;  %s7689_s2 = inlined_call_operand.vmem [shape: f32[1,128], index: 2, kind: input, shape index: {}]   ;;  %s7690_s3 = inlined_call_operand.hbm [shape: bf16[512,128], index: 3, kind: output, shape index: {}]  }
   0x1   :  { %9 = vsyncpa [#allocation7], 0 }
   0x2   :  { %10 = vsyncpa [#allocation5], 0  ;;  %s15_s14 = sshll.u32 %s7687_s0, 4  ;;  %s5146_s15 = smov [#allocation3]   ;;  %s16_s14 = int_to_ptr.hbm [resolvable:$true] %s15_s14 }
   0x3   :  { %s17_s16 = sshll.u32 %s5146_s15, 4  ;;  %s28_s19 = sshll.u32 %s7688_s1, 4  ;;  %s18_s16 = int_to_ptr.vmem [resolvable:$true] %s17_s16  ;;  %s29_s19 = int_to_ptr.hbm [resolvable:$true] %s28_s19 }
   0x4   :  { %s5147_s20 = smov 128   ;;  %s5148_s21 = smov 8  }
   0x5   :  { %23 = dma.hbm_to_vmem [thread:$0]  %s16_s14, 8192, %s18_s16, [#allocation4], %s5147_s20, %s5147_s20, %s5148_s21  }
   0x6   :  { %s5149_s22 = smov [#allocation6]   ;;  %s5150_s24 = smov 64  }
   0x7   :  { %s30_s23 = sshll.u32 %s5149_s22, 4  ;;  %s5151_s25 = smov 4   ;;  %s31_s23 = int_to_ptr.vmem [resolvable:$true] %s30_s23 }
   0x8   :  { %36 = dma.hbm_to_vmem [thread:$0]  %s29_s19, 2048, %s31_s23, [#allocation7], %s5150_s24, %s5150_s24, %s5151_s25  }
   0x9   :  { %5140 = dma.done.wait [#allocation4], 8192  }
   0xa   :  { %5141 = vsyncadd [#allocation4], 4294959104 }
   0xb   :  { %5142 = dma.done.wait [#allocation7], 2048  }
   0xc   :  { %5143 = vsyncadd [#allocation7], 4294965248  ;;  %v4711_v0 = vld [vmem:[#allocation6 + $0x38] sm:$0xff]  ;;  %v4710_v2 = vld [vmem:[#allocation6 + $0x30] sm:$0xff]  ;;  %s4242_s12 = sshll.u32 %s7690_s3, 4  ;;  %s4243_s12 = int_to_ptr.hbm [resolvable:$true] %s4242_s12 }
   0xd   :  { %v4719_v1 = vld [vmem:[#allocation6 + $0x78] sm:$0xff]  ;;  %691 = vmatpush.bf16.msra.mxu0 %v4711_v0  ;;  %4911 = vmatpush.bf16.msra.mxu2 %v4711_v0  ;;  %v4718_v3 = vld [vmem:[#allocation6 + $0x70] sm:$0xff]  ;;  %v4709_v4 = vld [vmem:[#allocation6 + $0x28] sm:$0xff] }
   0xe   :  { %860 = vmatpush.bf16.msra.mxu1 %v4719_v1  ;;  %4919 = vmatpush.bf16.msra.mxu3 %v4719_v1  ;;  %v4717_v5 = vld [vmem:[#allocation6 + $0x68] sm:$0xff]  ;;  %v4708_v6 = vld [vmem:[#allocation6 + $0x20] sm:$0xff]  ;;  %v4707_v8 = vld [vmem:[#allocation6 + $0x18] sm:$0xff] }
   0xf   :  { %v4716_v7 = vld [vmem:[#allocation6 + $0x60] sm:$0xff]  ;;  %v4715_v9 = vld [vmem:[#allocation6 + $0x58] sm:$0xff]  ;;  %v4706_v10 = vld [vmem:[#allocation6 + $0x10] sm:$0xff] }
  0x10   :  { %v4714_v11 = vld [vmem:[#allocation6 + $0x50] sm:$0xff]  ;;  %v4705_v12 = vld [vmem:[#allocation6 + $0x8] sm:$0xff]  ;;  %v4704_v14 = vld [vmem:[#allocation6] sm:$0xff] }
  0x11   :  { %692 = vmatpush.bf16.msra.mxu0 %v4710_v2  ;;  %4912 = vmatpush.bf16.msra.mxu2 %v4710_v2  ;;  %v4713_v13 = vld [vmem:[#allocation6 + $0x48] sm:$0xff]  ;;  %v4712_v15 = vld [vmem:[#allocation6 + $0x40] sm:$0xff]  ;;  %v4266_v28 = vld [vmem:[#allocation3 + $0x10] sm:$0xf] }
  0x12   :  { %861 = vmatpush.bf16.msra.mxu1 %v4718_v3  ;;  %4920 = vmatpush.bf16.msra.mxu3 %v4718_v3  ;;  %v4258_v16 = vld [vmem:[#allocation3] sm:$0xf]  ;;  %v4641_v17 = vld [vmem:[#allocation3 + $0x4] sm:$0xf0]  ;;  %v4640_v20 = vld [vmem:[#allocation3 + $0x4] sm:$0xf] }
  0x13   :  { %v4386_v18 = vld [vmem:[#allocation3 + $0x100] sm:$0xf]  ;;  %v4673_v19 = vld [vmem:[#allocation3 + $0x104] sm:$0xf0]  ;;  %v4260_v21 = vld [vmem:[#allocation3 + $0x8] sm:$0xf0]  ;;  %v4259_v24 = vor.u32 %v4641_v17, %v4258_v16 }
  0x14   :  { %v4672_v22 = vld [vmem:[#allocation3 + $0x104] sm:$0xf]  ;;  %v4388_v23 = vld [vmem:[#allocation3 + $0x108] sm:$0xf0]  ;;  %v4387_v25 = vor.u32 %v4673_v19, %v4386_v18  ;;  %v4263_v26 = vor.u32 %v4640_v20, %v4260_v21  ;;  %v4643_v29 = vld [vmem:[#allocation3 + $0x14] sm:$0xf0] }
  0x15   :  { %693 = vmatpush.bf16.msra.mxu0 %v4709_v4  ;;  %4913 = vmatpush.bf16.msra.mxu2 %v4709_v4  ;;  %v4391_v27 = vor.u32 %v4672_v22, %v4388_v23  ;;  %v4394_v30 = vld [vmem:[#allocation3 + $0x110] sm:$0xf]  ;;  %v4675_v31 = vld [vmem:[#allocation3 + $0x114] sm:$0xf0]  ;;  %v4642_v32 = vld [vmem:[#allocation3 + $0x14] sm:$0xf]  ;;  %v4267_v36 = vor.u32 %v4643_v29, %v4266_v28 }
  0x16   :  { %862 = vmatpush.bf16.msra.mxu1 %v4717_v5  ;;  %4921 = vmatpush.bf16.msra.mxu3 %v4717_v5  ;;  %v4268_v33 = vld [vmem:[#allocation3 + $0x18] sm:$0xf0]  ;;  %v4674_v34 = vld [vmem:[#allocation3 + $0x114] sm:$0xf]  ;;  %v4395_v37 = vor.u32 %v4675_v31, %v4394_v30  ;;  %v4274_v40 = vld [vmem:[#allocation3 + $0x20] sm:$0xf] }
  0x17   :  { %v4396_v35 = vld [vmem:[#allocation3 + $0x118] sm:$0xf0]  ;;  %v4271_v38 = vor.u32 %v4642_v32, %v4268_v33  ;;  %v4645_v41 = vld [vmem:[#allocation3 + $0x24] sm:$0xf0]  ;;  %v4402_v42 = vld [vmem:[#allocation3 + $0x120] sm:$0xf] }
  0x18   :  { %v4399_v39 = vor.u32 %v4674_v34, %v4396_v35  ;;  %v4677_v43 = vld [vmem:[#allocation3 + $0x124] sm:$0xf0]  ;;  %v4644_v44 = vld [vmem:[#allocation3 + $0x24] sm:$0xf]  ;;  %v4276_v45 = vld [vmem:[#allocation3 + $0x28] sm:$0xf0]  ;;  %v4275_v48 = vor.u32 %v4645_v41, %v4274_v40 }
  0x19   :  { %694 = vmatpush.bf16.msra.mxu0 %v4708_v6  ;;  %4914 = vmatpush.bf16.msra.mxu2 %v4708_v6  ;;  %v4676_v46 = vld [vmem:[#allocation3 + $0x124] sm:$0xf]  ;;  %v4404_v47 = vld [vmem:[#allocation3 + $0x128] sm:$0xf0]  ;;  %v4403_v49 = vor.u32 %v4677_v43, %v4402_v42  ;;  %v4279_v50 = vor.u32 %v4644_v44, %v4276_v45  ;;  %v4282_v52 = vld [vmem:[#allocation3 + $0x30] sm:$0xf] }
  0x1a   :  { %863 = vmatpush.bf16.msra.mxu1 %v4716_v7  ;;  %4922 = vmatpush.bf16.msra.mxu3 %v4716_v7  ;;  %v4407_v51 = vor.u32 %v4676_v46, %v4404_v47  ;;  %v4647_v53 = vld [vmem:[#allocation3 + $0x34] sm:$0xf0]  ;;  %v4410_v54 = vld [vmem:[#allocation3 + $0x130] sm:$0xf]  ;;  %v4646_v56 = vld [vmem:[#allocation3 + $0x34] sm:$0xf] }
  0x1b   :  { %v4679_v55 = vld [vmem:[#allocation3 + $0x134] sm:$0xf0]  ;;  %v4284_v57 = vld [vmem:[#allocation3 + $0x38] sm:$0xf0]  ;;  %v4678_v58 = vld [vmem:[#allocation3 + $0x134] sm:$0xf]  ;;  %v4283_v60 = vor.u32 %v4647_v53, %v4282_v52 }
  0x1c   :  { %v4412_v59 = vld [vmem:[#allocation3 + $0x138] sm:$0xf0]  ;;  %v4411_v61 = vor.u32 %v4679_v55, %v4410_v54  ;;  %v4287_v62 = vor.u32 %v4646_v56, %v4284_v57  ;;  %v4290_v0 = vld [vmem:[#allocation3 + $0x40] sm:$0xf]  ;;  %v4649_v1 = vld [vmem:[#allocation3 + $0x44] sm:$0xf0] }
  0x1d   :  { %695 = vmatpush.bf16.msra.mxu0 %v4707_v8  ;;  %4915 = vmatpush.bf16.msra.mxu2 %v4707_v8  ;;  %v4415_v63 = vor.u32 %v4678_v58, %v4412_v59  ;;  %v4418_v2 = vld [vmem:[#allocation3 + $0x140] sm:$0xf]  ;;  %v4681_v3 = vld [vmem:[#allocation3 + $0x144] sm:$0xf0]  ;;  %v4648_v4 = vld [vmem:[#allocation3 + $0x44] sm:$0xf]  ;;  %v4291_v8 = vor.u32 %v4649_v1, %v4290_v0 }
  0x1e   :  { %864 = vmatpush.bf16.msra.mxu1 %v4715_v9  ;;  %4923 = vmatpush.bf16.msra.mxu3 %v4715_v9  ;;  %v4292_v5 = vld [vmem:[#allocation3 + $0x48] sm:$0xf0]  ;;  %v4680_v6 = vld [vmem:[#allocation3 + $0x144] sm:$0xf]  ;;  %v4419_v9 = vor.u32 %v4681_v3, %v4418_v2  ;;  %v4650_v16 = vld [vmem:[#allocation3 + $0x54] sm:$0xf] }
  0x1f   :  { %v4420_v7 = vld [vmem:[#allocation3 + $0x148] sm:$0xf0]  ;;  %v4300_v17 = vld [vmem:[#allocation3 + $0x58] sm:$0xf0]  ;;  %v4682_v18 = vld [vmem:[#allocation3 + $0x154] sm:$0xf] }
  0x20   :  { %v4428_v19 = vld [vmem:[#allocation3 + $0x158] sm:$0xf0]  ;;  %v4303_v22 = vor.u32 %v4650_v16, %v4300_v17  ;;  %v4652_v28 = vld [vmem:[#allocation3 + $0x64] sm:$0xf]  ;;  %v4308_v29 = vld [vmem:[#allocation3 + $0x68] sm:$0xf0] }
  0x21   :  { %696 = vmatpush.bf16.msra.mxu0 %v4706_v10  ;;  %4916 = vmatpush.bf16.msra.mxu2 %v4706_v10  ;;  %v4295_v10 = vor.u32 %v4648_v4, %v4292_v5  ;;  %v4431_v23 = vor.u32 %v4682_v18, %v4428_v19  ;;  %v4684_v30 = vld [vmem:[#allocation3 + $0x164] sm:$0xf]  ;;  %v4436_v31 = vld [vmem:[#allocation3 + $0x168] sm:$0xf0]  ;;  %v4311_v34 = vor.u32 %v4652_v28, %v4308_v29  ;;  %v4654_v40 = vld [vmem:[#allocation3 + $0x74] sm:$0xf] }
  0x22   :  { %865 = vmatpush.bf16.msra.mxu1 %v4714_v11  ;;  %4924 = vmatpush.bf16.msra.mxu3 %v4714_v11  ;;  %v4423_v11 = vor.u32 %v4680_v6, %v4420_v7  ;;  %v4439_v35 = vor.u32 %v4684_v30, %v4436_v31  ;;  %v4316_v41 = vld [vmem:[#allocation3 + $0x78] sm:$0xf0]  ;;  %v4686_v42 = vld [vmem:[#allocation3 + $0x174] sm:$0xf]  ;;  %v4656_v52 = vld [vmem:[#allocation3 + $0x84] sm:$0xf] }
  0x23   :  { %v4444_v43 = vld [vmem:[#allocation3 + $0x178] sm:$0xf0]  ;;  %v4319_v46 = vor.u32 %v4654_v40, %v4316_v41  ;;  %v4324_v53 = vld [vmem:[#allocation3 + $0x88] sm:$0xf0]  ;;  %v4688_v54 = vld [vmem:[#allocation3 + $0x184] sm:$0xf] }
  0x24   :  { %v4447_v47 = vor.u32 %v4686_v42, %v4444_v43  ;;  %v4452_v55 = vld [vmem:[#allocation3 + $0x188] sm:$0xf0]  ;;  %v5185_v59 = vld [vmem:[%s7689_s2] ss:$0 sm:$0xff]  ;;  %v4332_v19 = vld [vmem:[#allocation3 + $0x98] sm:$0xf0] }
  0x25   :  { %697 = vmatpush.bf16.msra.mxu0 %v4705_v12  ;;  %4917 = vmatpush.bf16.msra.mxu2 %v4705_v12  ;;  %v4298_v12 = vld [vmem:[#allocation3 + $0x50] sm:$0xf] }
  0x26   :  { %866 = vmatpush.bf16.msra.mxu1 %v4713_v13  ;;  %4925 = vmatpush.bf16.msra.mxu3 %v4713_v13  ;;  %v4651_v13 = vld [vmem:[#allocation3 + $0x54] sm:$0xf0] }
  0x27   :  { %v4299_v20 = vor.u32 %v4651_v13, %v4298_v12  ;;  %v4659_v12 = vld [vmem:[#allocation3 + $0x94] sm:$0xf0]  ;;  %v4458_v13 = vld [vmem:[#allocation3 + $0x190] sm:$0xf] }
  0x29   :  { %698 = vmatpush.bf16.msra.mxu0 %v4704_v14  ;;  %4918 = vmatpush.bf16.msra.mxu2 %v4704_v14  ;;  %v4426_v14 = vld [vmem:[#allocation3 + $0x150] sm:$0xf] }
  0x2a   :  { %867 = vmatpush.bf16.msra.mxu1 %v4712_v15  ;;  %4926 = vmatpush.bf16.msra.mxu3 %v4712_v15  ;;  %v4683_v15 = vld [vmem:[#allocation3 + $0x154] sm:$0xf0] }
  0x2b   :  { %v4427_v21 = vor.u32 %v4683_v15, %v4426_v14  ;;  %v4691_v14 = vld [vmem:[#allocation3 + $0x194] sm:$0xf0]  ;;  %v4658_v15 = vld [vmem:[#allocation3 + $0x94] sm:$0xf] }
  0x2c   :  { %699 = vmatmul.bf16.vlgmr.msra.gmra.mxu0 %v4259_v24  ;;  %779 = vmatmul.bf16.vlgmr.msra.gmra.mxu2 %v4387_v25  ;;  %v4306_v24 = vld [vmem:[#allocation3 + $0x60] sm:$0xf]  ;;  %v4653_v25 = vld [vmem:[#allocation3 + $0x64] sm:$0xf0]  ;;  %v4459_v30 = vor.u32 %v4691_v14, %v4458_v13  ;;  %v4335_v31 = vor.u32 %v4658_v15, %v4332_v19 }
  0x2d   :  { %868 = vmatmul.bf16.vlgmr.msra.gmra.mxu1 %v4263_v26  ;;  %948 = vmatmul.bf16.vlgmr.msra.gmra.mxu3 %v4391_v27  ;;  %v4434_v26 = vld [vmem:[#allocation3 + $0x160] sm:$0xf]  ;;  %v4685_v27 = vld [vmem:[#allocation3 + $0x164] sm:$0xf0]  ;;  %v4307_v32 = vor.u32 %v4653_v25, %v4306_v24 }
  0x2e   :  { %v4435_v33 = vor.u32 %v4685_v27, %v4434_v26 }
  0x3c   :  { %704 = vmatmul.bf16.gmra.mxu0 %v4267_v36  ;;  %784 = vmatmul.bf16.gmra.mxu2 %v4395_v37  ;;  %v4314_v36 = vld [vmem:[#allocation3 + $0x70] sm:$0xf]  ;;  %v4655_v37 = vld [vmem:[#allocation3 + $0x74] sm:$0xf0] }
  0x3d   :  { %873 = vmatmul.bf16.gmra.mxu1 %v4271_v38  ;;  %953 = vmatmul.bf16.gmra.mxu3 %v4399_v39  ;;  %v4442_v38 = vld [vmem:[#allocation3 + $0x170] sm:$0xf]  ;;  %v4687_v39 = vld [vmem:[#allocation3 + $0x174] sm:$0xf0]  ;;  %v4315_v44 = vor.u32 %v4655_v37, %v4314_v36 }
  0x3e   :  { %v4443_v45 = vor.u32 %v4687_v39, %v4442_v38 }
  0x4c   :  { %709 = vmatmul.bf16.gmra.mxu0 %v4275_v48  ;;  %789 = vmatmul.bf16.gmra.mxu2 %v4403_v49  ;;  %v4322_v48 = vld [vmem:[#allocation3 + $0x80] sm:$0xf]  ;;  %v4657_v49 = vld [vmem:[#allocation3 + $0x84] sm:$0xf0] }
  0x4d   :  { %878 = vmatmul.bf16.gmra.mxu1 %v4279_v50  ;;  %958 = vmatmul.bf16.gmra.mxu3 %v4407_v51  ;;  %v4450_v50 = vld [vmem:[#allocation3 + $0x180] sm:$0xf]  ;;  %v4689_v51 = vld [vmem:[#allocation3 + $0x184] sm:$0xf0]  ;;  %v4323_v56 = vor.u32 %v4657_v49, %v4322_v48 }
  0x4e   :  { %v4451_v57 = vor.u32 %v4689_v51, %v4450_v50 }
  0x5c   :  { %714 = vmatmul.bf16.gmra.mxu0 %v4283_v60  ;;  %794 = vmatmul.bf16.gmra.mxu2 %v4411_v61  ;;  %v4327_v60 = vor.u32 %v4656_v52, %v4324_v53  ;;  %v4455_v61 = vor.u32 %v4688_v54, %v4452_v55 }
  0x5d   :  { %883 = vmatmul.bf16.gmra.mxu1 %v4287_v62  ;;  %963 = vmatmul.bf16.gmra.mxu3 %v4415_v63 }
  0x6c   :  { %719 = vmatmul.bf16.gmra.mxu0 %v4291_v8  ;;  %799 = vmatmul.bf16.gmra.mxu2 %v4419_v9 }
  0x6d   :  { %888 = vmatmul.bf16.gmra.mxu1 %v4295_v10  ;;  %968 = vmatmul.bf16.gmra.mxu3 %v4423_v11  ;;  %v4330_v11 = vld [vmem:[#allocation3 + $0x90] sm:$0xf] }
  0x6e   :  { %v4331_v26 = vor.u32 %v4659_v12, %v4330_v11 }
  0x7c   :  { %724 = vmatmul.bf16.gmra.mxu0 %v4299_v20  ;;  %804 = vmatmul.bf16.gmra.mxu2 %v4427_v21  ;;  %v4690_v21 = vld [vmem:[#allocation3 + $0x194] sm:$0xf] }
  0x7d   :  { %893 = vmatmul.bf16.gmra.mxu1 %v4303_v22  ;;  %973 = vmatmul.bf16.gmra.mxu3 %v4431_v23  ;;  %v4460_v22 = vld [vmem:[#allocation3 + $0x198] sm:$0xf0] }
  0x8c   :  { %729 = vmatmul.bf16.gmra.mxu0 %v4307_v32  ;;  %809 = vmatmul.bf16.gmra.mxu2 %v4435_v33 }
  0x8d   :  { %898 = vmatmul.bf16.gmra.mxu1 %v4311_v34  ;;  %978 = vmatmul.bf16.gmra.mxu3 %v4439_v35  ;;  %v4463_v35 = vor.u32 %v4690_v21, %v4460_v22 }
  0x9c   :  { %734 = vmatmul.bf16.gmra.mxu0 %v4315_v44  ;;  %814 = vmatmul.bf16.gmra.mxu2 %v4443_v45 }
  0x9d   :  { %903 = vmatmul.bf16.gmra.mxu1 %v4319_v46  ;;  %983 = vmatmul.bf16.gmra.mxu3 %v4447_v47 }
  0xa9   :  { %v700_v58 = vpop.f32.mrf.mxu0 }
  0xaa   :  { %v869_v62 = vpop.f32.mrf.mxu1 }
  0xab   :  { %v870_v63 = vadd.f32 %v869_v62, %v700_v58 }
  0xac   :  { %739 = vmatmul.bf16.gmra.mxu0 %v4323_v56  ;;  %819 = vmatmul.bf16.gmra.mxu2 %v4451_v57 }
  0xad   :  { %v5188_v0 = vadd.f32 %v5185_v59, %v870_v63  ;;  %908 = vmatmul.bf16.gmra.mxu1 %v4327_v60  ;;  %988 = vmatmul.bf16.gmra.mxu3 %v4455_v61 }
  0xaf   :  { %v5191_v1 = vmul.f32 0.70710677, %v5188_v0  ;;  %v780_v2 = vpop.f32.mrf.mxu2 }
  0xb0   :  { %v949_v3 = vpop.f32.mrf.mxu3 }
  0xb1   :  { %v1420_v4 = vmul.f32 %v5191_v1, %v5191_v1  ;;  %v950_v5 = vadd.f32 %v949_v3, %v780_v2  ;;  %v702_v6 = vpop.f32.mrf.mxu0 }
  0xb2   :  { %v871_v7 = vpop.f32.mrf.mxu1 }
  0xb3   :  { %v5195_v8 = vmin.f32 %v1420_v4, 16.0  ;;  %v5198_v9 = vadd.f32 %v5185_v59, %v950_v5  ;;  %v872_v10 = vadd.f32 %v871_v7, %v702_v6 }
  0xb5   :  { %v1422_v16 = vmul.f32 2.1237322e-06, %v5195_v8  ;;  %v1433_v17 = vmul.f32 3.8918573e-05, %v5195_v8  ;;  %v5203_v18 = vadd.f32 %v5185_v59, %v872_v10  ;;  %v5206_v20 = vmul.f32 0.70710677, %v5198_v9 }
  0xb7   :  { %v1423_v23 = vadd.f32 0.00028619796, %v1422_v16  ;;  %v1434_v24 = vadd.f32 0.001143296, %v1433_v17  ;;  %v782_v25 = vpop.f32.mrf.mxu2  ;;  %v2700_v27 = vmul.f32 %v5206_v20, %v5206_v20  ;;  %v5211_v28 = vmul.f32 0.70710677, %v5203_v18 }
  0xb8   :  { %v951_v29 = vpop.f32.mrf.mxu3 }
  0xb9   :  { %v1424_v32 = vmul.f32 %v1423_v23, %v5195_v8  ;;  %v1435_v33 = vmul.f32 %v1434_v24, %v5195_v8  ;;  %v952_v34 = vadd.f32 %v951_v29, %v782_v25  ;;  %v5215_v36 = vmin.f32 %v2700_v27, 16.0  ;;  %v705_v41 = vpop.f32.mrf.mxu0 }
  0xba   :  { %v1460_v37 = vmul.f32 %v5211_v28, %v5211_v28  ;;  %v874_v42 = vpop.f32.mrf.mxu1 }
  0xbb   :  { %v1425_v38 = vadd.f32 0.0036580483, %v1424_v32  ;;  %v1436_v39 = vadd.f32 0.014752088, %v1435_v33  ;;  %v5220_v40 = vadd.f32 %v5185_v59, %v952_v34  ;;  %v2702_v43 = vmul.f32 2.1237322e-06, %v5215_v36 }
  0xbc   :  { %v2713_v44 = vmul.f32 3.8918573e-05, %v5215_v36  ;;  %v5224_v45 = vmin.f32 %v1460_v37, 16.0  ;;  %744 = vmatmul.bf16.gmra.mxu0 %v4331_v26  ;;  %824 = vmatmul.bf16.gmra.mxu2 %v4459_v30  ;;  %v875_v52 = vadd.f32 %v874_v42, %v705_v41 }
  0xbd   :  { %v1426_v46 = vmul.f32 %v1425_v38, %v5195_v8  ;;  %v1437_v47 = vmul.f32 %v1436_v39, %v5195_v8  ;;  %v5229_v48 = vmul.f32 0.70710677, %v5220_v40  ;;  %913 = vmatmul.bf16.gmra.mxu1 %v4335_v31  ;;  %993 = vmatmul.bf16.gmra.mxu3 %v4463_v35  ;;  %v2703_v49 = vadd.f32 0.00028619796, %v2702_v43 }
  0xbe   :  { %v2714_v50 = vadd.f32 0.001143296, %v2713_v44  ;;  %v1462_v51 = vmul.f32 2.1237322e-06, %v5224_v45  ;;  %v1473_v55 = vmul.f32 3.8918573e-05, %v5224_v45  ;;  %v5243_v6 = vadd.f32 %v5185_v59, %v875_v52 }
  0xbf   :  { %v1427_v53 = vadd.f32 0.05243302, %v1426_v46  ;;  %v1438_v54 = vadd.f32 0.112945676, %v1437_v47  ;;  %v2740_v56 = vmul.f32 %v5229_v48, %v5229_v48  ;;  %v2704_v57 = vmul.f32 %v2703_v49, %v5215_v36 }
  0xc0   :  { %v2715_v58 = vmul.f32 %v2714_v50, %v5215_v36  ;;  %v1463_v60 = vadd.f32 0.00028619796, %v1462_v51  ;;  %v1474_v63 = vadd.f32 0.001143296, %v1473_v55  ;;  %v5257_v30 = vmul.f32 0.70710677, %v5243_v6 }
  0xc1   :  { %v1428_v61 = vmul.f32 %v1427_v53, %v5195_v8  ;;  %v1439_v62 = vmul.f32 %v1438_v54, %v5195_v8  ;;  %v5239_v2 = vmin.f32 %v2740_v56, 16.0  ;;  %v2705_v3 = vadd.f32 0.0036580483, %v2704_v57 }
  0xc2   :  { %v2716_v4 = vadd.f32 0.014752088, %v2715_v58  ;;  %v1464_v5 = vmul.f32 %v1463_v60, %v5224_v45  ;;  %v1475_v11 = vmul.f32 %v1474_v63, %v5224_v45  ;;  %v1500_v43 = vmul.f32 %v5257_v30, %v5257_v30 }
  0xc3   :  { %v1429_v7 = vadd.f32 0.18741608, %v1428_v61  ;;  %v1440_v10 = vadd.f32 0.4994258, %v1439_v62  ;;  %v2742_v12 = vmul.f32 2.1237322e-06, %v5239_v2  ;;  %v2706_v13 = vmul.f32 %v2705_v3, %v5215_v36  ;;  %v954_v3 = vpop.f32.mrf.mxu3 }
  0xc4   :  { %v2717_v14 = vmul.f32 %v2716_v4, %v5215_v36  ;;  %v1465_v15 = vadd.f32 0.0036580483, %v1464_v5  ;;  %v2753_v16 = vmul.f32 3.8918573e-05, %v5239_v2  ;;  %v1476_v19 = vadd.f32 0.014752088, %v1475_v11 }
  0xc5   :  { %v1441_v17 = vmul.f32 %v1440_v10, %v5195_v8  ;;  %v2743_v21 = vadd.f32 0.00028619796, %v2742_v12  ;;  %v2707_v22 = vadd.f32 0.05243302, %v2706_v13  ;;  %v1430_v31 = vmul.f32 %v1429_v7, %v5195_v8 }
  0xc6   :  { %v2718_v23 = vadd.f32 0.112945676, %v2717_v14  ;;  %v1466_v24 = vmul.f32 %v1465_v15, %v5224_v45  ;;  %v2754_v25 = vadd.f32 0.001143296, %v2753_v16  ;;  %v1477_v27 = vmul.f32 %v1476_v19, %v5224_v45 }
  0xc7   :  { %v5252_v26 = vadd.f32 1.0, %v1441_v17  ;;  %v2744_v29 = vmul.f32 %v2743_v21, %v5239_v2  ;;  %v2708_v32 = vmul.f32 %v2707_v22, %v5215_v36  ;;  %v1431_v44 = vadd.f32 1.1283791, %v1430_v31 }
  0xc8   :  { %v2719_v33 = vmul.f32 %v2718_v23, %v5215_v36  ;;  %v1467_v34 = vadd.f32 0.05243302, %v1466_v24  ;;  %v2755_v35 = vmul.f32 %v2754_v25, %v5239_v2  ;;  %v1478_v41 = vadd.f32 0.112945676, %v1477_v27 }
  0xc9   :  { %4935 = vrcp.f32 %v5252_v26  ;;  %v2709_v37 = vadd.f32 0.18741608, %v2708_v32  ;;  %v2745_v42 = vadd.f32 0.0036580483, %v2744_v29  ;;  %v1452_v8 = vand.u32 2147483647, %v5252_v26 }
  0xca   :  { %v2720_v38 = vadd.f32 0.4994258, %v2719_v33  ;;  %v1468_v39 = vmul.f32 %v1467_v34, %v5224_v45  ;;  %v1479_v49 = vmul.f32 %v1478_v41, %v5224_v45  ;;  %v2756_v51 = vadd.f32 0.014752088, %v2755_v35 }
  0xcb   :  { %v2710_v46 = vmul.f32 %v2709_v37, %v5215_v36  ;;  %v2746_v50 = vmul.f32 %v2745_v42, %v5239_v2  ;;  %v5272_v52 = vmin.f32 %v1500_v43, 16.0  ;;  %v5275_v53 = vmul.f32 0.5, %v5188_v0 }
  0xcc   :  { %v2721_v47 = vmul.f32 %v2720_v38, %v5215_v36  ;;  %v5278_v54 = vmul.f32 0.5, %v5198_v9  ;;  %v1469_v56 = vadd.f32 0.18741608, %v1468_v39  ;;  %v1480_v58 = vadd.f32 0.4994258, %v1479_v49  ;;  %v785_v9 = vpop.f32.mrf.mxu2 }
  0xcd   :  { %v2747_v60 = vadd.f32 0.05243302, %v2746_v50  ;;  %v2757_v36 = vmul.f32 %v2756_v51, %v5239_v2  ;;  %v1502_v61 = vmul.f32 2.1237322e-06, %v5272_v52  ;;  %v1432_v62 = vmul.f32 %v1431_v44, %v5191_v1  ;;  %v707_v50 = vpop.f32.mrf.mxu0  ;;  %v876_v51 = vpop.f32.mrf.mxu1 }
  0xce   :  { %v5280_v55 = vadd.f32 1.0, %v2721_v47  ;;  %v5288_v0 = vmul.f32 0.5, %v5203_v18  ;;  %vm1448_vm0 = vweird.f32 %v5252_v26  ;;  %vm5291_vm1 = vcmp.eq.f32.partialorder %v1452_v8, 8.507059e+37 }
  0xcf   :  { %v4936_v57 = vpop.eup %4935  ;;  %v1454_v5 = vand.u32 2147483648, %v5252_v26  ;;  %v2711_v7 = vadd.f32 1.1283791, %v2710_v46  ;;  %v1481_v1 = vmul.f32 %v1480_v58, %v5224_v45  ;;  %v2748_v11 = vmul.f32 %v2747_v60, %v5239_v2 }
  0xd0   :  { %v1444_v63 = vmul.f32 %v4936_v57, %v5252_v26  ;;  %4937 = vrcp.f32 %v5280_v55  ;;  %v2758_v12 = vadd.f32 0.112945676, %v2757_v36  ;;  %vm1449_vm2 = vweird.f32 %v4936_v57 }
  0xd1   :  { %v1470_v18 = vmul.f32 %v1469_v56, %v5224_v45  ;;  %v1503_v13 = vadd.f32 0.00028619796, %v1502_v61  ;;  %v955_v14 = vadd.f32 %v954_v3, %v785_v9  ;;  %v2732_v16 = vand.u32 2147483647, %v5280_v55  ;;  %vm1450_vm3 = vmor %vm1448_vm0, %vm1449_vm2 }
  0xd2   :  { %v1445_v10 = vsub.f32 1.0, %v1444_v63  ;;  %v5300_v17 = vadd.f32 1.0, %v1481_v1  ;;  %v2759_v19 = vmul.f32 %v2758_v12, %v5239_v2  ;;  %v1455_v21 = vor.u32 1.1754944e-38, %v1454_v5 }
  0xd3   :  { %v2734_v22 = vand.u32 2147483648, %v5280_v55  ;;  %v2749_v23 = vadd.f32 0.18741608, %v2748_v11  ;;  %v1504_v24 = vmul.f32 %v1503_v13, %v5272_v52  ;;  %v5306_v29 = vmul.f32 %v2711_v7, %v5206_v20 }
  0xd4   :  { %v1446_v15 = vmul.f32 %v4936_v57, %v1445_v10  ;;  %4939 = vrcp.f32 %v5300_v17  ;;  %v1513_v45 = vmul.f32 3.8918573e-05, %v5272_v52  ;;  %vm2728_vm4 = vweird.f32 %v5280_v55  ;;  %v787_v1 = vpop.f32.mrf.mxu2 }
  0xd5   :  { %v1471_v32 = vadd.f32 1.1283791, %v1470_v18  ;;  %v5316_v33 = vadd.f32 %v5185_v59, %v955_v14  ;;  %vm5318_vm5 = vcmp.eq.f32.partialorder %v2732_v16, 8.507059e+37  ;;  %v2760_v35 = vadd.f32 0.4994258, %v2759_v19 }
  0xd6   :  { %v4938_v25 = vpop.eup %4937  ;;  %v1447_v27 = vadd.f32 %v4936_v57, %v1446_v15  ;;  %v1505_v37 = vadd.f32 0.0036580483, %v1504_v24  ;;  %v2735_v39 = vor.u32 1.1754944e-38, %v2734_v22  ;;  %v2750_v41 = vmul.f32 %v2749_v23, %v5239_v2 }
  0xd7   :  { %v2724_v31 = vmul.f32 %v4938_v25, %v5280_v55  ;;  %v2761_v43 = vmul.f32 %v2760_v35, %v5239_v2  ;;  %v1514_v8 = vadd.f32 0.001143296, %v1513_v45  ;;  %vm2729_vm6 = vweird.f32 %v4938_v25  ;;  %v956_v55 = vpop.f32.mrf.mxu3 }
  0xd8   :  { %v1451_v34 = vsel %vm1450_vm3, %v4936_v57, %v1447_v27  ;;  %v1506_v44 = vmul.f32 %v1505_v37, %v5272_v52  ;;  %v1492_v47 = vand.u32 2147483647, %v5300_v17  ;;  %v5329_v49 = vmul.f32 0.70710677, %v5316_v33  ;;  %vm5339_vm7 = vmor %vm2728_vm4, %vm2729_vm6 }
  0xd9   :  { %v1456_v38 = vsel %vm5291_vm1, %v1455_v21, %v1451_v34  ;;  %v2725_v26 = vsub.f32 1.0, %v2724_v31  ;;  %v1494_v58 = vand.u32 2147483648, %v5300_v17  ;;  %v5332_v60 = vadd.f32 1.0, %v2761_v43 }
  0xda   :  { %v1457_v42 = vmul.f32 %v1456_v38, %v1432_v62  ;;  %v4940_v56 = vpop.eup %4939  ;;  %v1515_v2 = vmul.f32 %v1514_v8, %v5272_v52  ;;  %v1472_v61 = vmul.f32 %v1471_v32, %v5211_v28  ;;  %v1507_v63 = vadd.f32 0.05243302, %v1506_v44 }
  0xdb   :  { %v2726_v46 = vmul.f32 %v4938_v25, %v2725_v26  ;;  %v1484_v62 = vmul.f32 %v4940_v56, %v5300_v17  ;;  %v2751_v3 = vadd.f32 1.1283791, %v2750_v41  ;;  %4941 = vrcp.f32 %v5332_v60 }
  0xdc   :  { %v4576_v57 = vclamps-f32 %v1457_v42, 1.0  ;;  %v2780_v4 = vmul.f32 %v5329_v49, %v5329_v49  ;;  %v877_v5 = vadd.f32 %v876_v51, %v707_v50  ;;  %vm1488_vm8 = vweird.f32 %v5300_v17 }
  0xdd   :  { %v2727_v36 = vadd.f32 %v4938_v25, %v2726_v46  ;;  %v1485_v10 = vsub.f32 1.0, %v1484_v62  ;;  %vm1489_vm9 = vweird.f32 %v4940_v56  ;;  %vm5349_vm10 = vcmp.eq.f32.partialorder %v1492_v47, 8.507059e+37 }
  0xde   :  { %v3980_v7 = vadd.f32 1.0, %v4576_v57  ;;  %v1495_v12 = vor.u32 1.1754944e-38, %v1494_v58  ;;  %v1516_v18 = vadd.f32 0.014752088, %v1515_v2  ;;  %v2772_v15 = vand.u32 2147483647, %v5332_v60  ;;  %vm1490_vm12 = vmor %vm1488_vm8, %vm1489_vm9 }
  0xdf   :  { %v2731_v28 = vsel %vm5339_vm7, %v4938_v25, %v2727_v36  ;;  %v1486_v14 = vmul.f32 %v4940_v56, %v1485_v10  ;;  %v1508_v16 = vmul.f32 %v1507_v63, %v5272_v52  ;;  %v2752_v19 = vmul.f32 %v2751_v3, %v5229_v48  ;;  %v879_v10 = vpop.f32.mrf.mxu1 }
  0xe0   :  { %v2736_v13 = vsel %vm5318_vm5, %v2735_v39, %v2731_v28  ;;  %v1517_v21 = vmul.f32 %v1516_v18, %v5272_v52  ;;  %v5359_v22 = vmin.f32 %v2780_v4, 16.0  ;;  %v957_v23 = vadd.f32 %v956_v55, %v787_v1  ;;  %v710_v28 = vpop.f32.mrf.mxu0 }
  0xe1   :  { %v5362_v24 = vmul.f32 %v3980_v7, %v5275_v53  ;;  %v1487_v25 = vadd.f32 %v4940_v56, %v1486_v14  ;;  %vm2768_vm11 = vweird.f32 %v5332_v60  ;;  %v2774_v27 = vand.u32 2147483648, %v5332_v60  ;;  %v4942_v45 = vpop.eup %4941 }
  0xe2   :  { %v2737_v31 = vmul.f32 %v2736_v13, %v5306_v29  ;;  %v1518_v48 = vadd.f32 0.112945676, %v1517_v21  ;;  %v2782_v32 = vmul.f32 2.1237322e-06, %v5359_v22  ;;  %v2793_v34 = vmul.f32 3.8918573e-05, %v5359_v22 }
  0xe3   :  { %v1491_v20 = vsel %vm1490_vm12, %v4940_v56, %v1487_v25  ;;  %v2764_v53 = vmul.f32 %v4942_v45, %v5332_v60  ;;  %vm5373_vm13 = vcmp.eq.f32.partialorder %v2772_v15, 8.507059e+37  ;;  %v1509_v37 = vadd.f32 0.18741608, %v1508_v16 }
  0xe4   :  { %v5378_v38 = vadd.f32 %v5185_v59, %v877_v5  ;;  %v1496_v17 = vsel %vm5349_vm10, %v1495_v12, %v1491_v20  ;;  %v1519_v29 = vmul.f32 %v1518_v48, %v5272_v52  ;;  %v2783_v26 = vadd.f32 0.00028619796, %v2782_v32 }
  0xe5   :  { %v5384_v39 = vadd.f32 %v5185_v59, %v957_v23  ;;  %v1497_v41 = vmul.f32 %v1496_v17, %v1472_v61  ;;  %v2765_v42 = vsub.f32 1.0, %v2764_v53  ;;  %v2775_v43 = vor.u32 1.1754944e-38, %v2774_v27 }
  0xe6   :  { %v2794_v44 = vadd.f32 0.001143296, %v2793_v34  ;;  %v4608_v8 = vclamps-f32 %v2737_v31, 1.0  ;;  %vm2769_vm14 = vweird.f32 %v4942_v45  ;;  %v1520_v46 = vadd.f32 0.4994258, %v1519_v29 }
  0xe7   :  { %v2784_v47 = vmul.f32 %v2783_v26, %v5359_v22  ;;  %v4577_v50 = vclamps-f32 %v1497_v41, 1.0  ;;  %v2766_v51 = vmul.f32 %v4942_v45, %v2765_v42  ;;  %v5389_v57 = vmul.f32 0.70710677, %v5378_v38  ;;  %vm2770_vm15 = vmor %vm2768_vm11, %vm2769_vm14 }
  0xe8   :  { %v2795_v56 = vmul.f32 %v2794_v44, %v5359_v22  ;;  %v1510_v58 = vmul.f32 %v1509_v37, %v5272_v52  ;;  %v1521_v2 = vmul.f32 %v1520_v46, %v5272_v52  ;;  %v5394_v61 = vmul.f32 0.70710677, %v5384_v39 }
  0xe9   :  { %v2785_v36 = vadd.f32 0.0036580483, %v2784_v47  ;;  %v3981_v62 = vadd.f32 1.0, %v4577_v50  ;;  %v2767_v63 = vadd.f32 %v4942_v45, %v2766_v51  ;;  %v1540_v3 = vmul.f32 %v5389_v57, %v5389_v57 }
  0xea   :  { %v2796_v9 = vadd.f32 0.014752088, %v2795_v56  ;;  %v4012_v4 = vadd.f32 1.0, %v4608_v8  ;;  %v5401_v5 = vadd.f32 1.0, %v1521_v2  ;;  %v2820_v52 = vmul.f32 %v5394_v61, %v5394_v61 }
  0xeb   :  { %v2786_v7 = vmul.f32 %v2785_v36, %v5359_v22  ;;  %v4045_v1 = vmul.f32 %v3981_v62, %v5288_v0  ;;  %v2771_v55 = vsel %vm2770_vm15, %v4942_v45, %v2767_v63  ;;  %v5408_v12 = vmin.f32 %v1540_v3, 16.0 }
  0xec   :  { %v2797_v11 = vmul.f32 %v2796_v9, %v5359_v22  ;;  %v1325_v18 = vmul.f32 0.5, %v5220_v40  ;;  %v2776_v60 = vsel %vm5373_vm13, %v2775_v43, %v2771_v55  ;;  %v5414_v13 = vmul.f32 0.5, %v5243_v6 }
  0xed   :  { %4943 = vrcp.f32 %v5401_v5  ;;  %v4723_v14 = vpack.c.bf16 %v4045_v1, %v5362_v24  ;;  %v2777_v15 = vmul.f32 %v2776_v60, %v2752_v19  ;;  %v2787_v16 = vadd.f32 0.05243302, %v2786_v7 }
  0xee   :  { %v880_v0 = vadd.f32 %v879_v10, %v710_v28  ;;  %v5419_v21 = vmul.f32 0.5, %v5316_v33  ;;  %v2798_v23 = vadd.f32 0.112945676, %v2797_v11  ;;  %v1542_v25 = vmul.f32 2.1237322e-06, %v5408_v12 }
  0xef   :  { %v5422_v40 = vmin.f32 %v2820_v52, 16.0  ;;  %v4076_v27 = vmul.f32 %v4012_v4, %v5278_v54  ;;  %4724 = vst [vmem:[#allocation8] sm:$0xff] %v4723_v14   ;;  %v4609_v6 = vclamps-f32 %v2777_v15, 1.0  ;;  %v1511_v45 = vadd.f32 1.1283791, %v1510_v58 }
  0xf0   :  { %v1553_v31 = vmul.f32 3.8918573e-05, %v5408_v12  ;;  %v2799_v24 = vmul.f32 %v2798_v23, %v5359_v22  ;;  %v1543_v19 = vadd.f32 0.00028619796, %v1542_v25  ;;  %v2788_v34 = vmul.f32 %v2787_v16, %v5359_v22  ;;  %v4338_v11 = vld [vmem:[#allocation3 + $0xa0] sm:$0xf] }
  0xf1   :  { %v2822_v48 = vmul.f32 2.1237322e-06, %v5422_v40  ;;  %v2833_v33 = vmul.f32 3.8918573e-05, %v5422_v40  ;;  %v4013_v32 = vadd.f32 1.0, %v4609_v6  ;;  %v5431_v53 = vadd.f32 %v5185_v59, %v880_v0 }
  0xf2   :  { %v1554_v20 = vadd.f32 0.001143296, %v1553_v31  ;;  %v2800_v35 = vadd.f32 0.4994258, %v2799_v24  ;;  %v1544_v37 = vmul.f32 %v1543_v19, %v5408_v12  ;;  %v1532_v42 = vand.u32 2147483647, %v5401_v5 }
  0xf3   :  { %v4944_v54 = vpop.eup %4943  ;;  %v2823_v17 = vadd.f32 0.00028619796, %v2822_v48  ;;  %v2834_v29 = vadd.f32 0.001143296, %v2833_v33  ;;  %v4077_v26 = vmul.f32 %v4013_v32, %v1325_v18  ;;  %v1534_v43 = vand.u32 2147483648, %v5401_v5 }
  0xf4   :  { %v1524_v41 = vmul.f32 %v4944_v54, %v5401_v5  ;;  %v2801_v44 = vmul.f32 %v2800_v35, %v5359_v22  ;;  %v1545_v8 = vadd.f32 0.0036580483, %v1544_v37  ;;  %v1555_v46 = vmul.f32 %v1554_v20, %v5408_v12  ;;  %v4661_v18 = vld [vmem:[#allocation3 + $0xa4] sm:$0xf0]  ;;  %v4466_v15 = vld [vmem:[#allocation3 + $0x1a0] sm:$0xf]  ;;  %v790_v20 = vpop.f32.mrf.mxu2 }
  0xf5   :  { %v2824_v47 = vmul.f32 %v2823_v17, %v5422_v40  ;;  %v4803_v50 = vpack.c.bf16 %v4077_v26, %v4076_v27  ;;  %v2789_v56 = vadd.f32 0.18741608, %v2788_v34  ;;  %v2835_v58 = vmul.f32 %v2834_v29, %v5422_v40  ;;  %v4693_v27 = vld [vmem:[#allocation3 + $0x1a4] sm:$0xf0]  ;;  %v4340_v34 = vld [vmem:[#allocation3 + $0xa8] sm:$0xf0] }
  0xf6   :  { %v1525_v51 = vsub.f32 1.0, %v1524_v41  ;;  %v5441_v2 = vadd.f32 1.0, %v2801_v44  ;;  %v1546_v36 = vmul.f32 %v1545_v8, %v5408_v12  ;;  %v1556_v62 = vadd.f32 0.014752088, %v1555_v46 }
  0xf7   :  { %v2825_v63 = vadd.f32 0.0036580483, %v2824_v47  ;;  %4895 = vst [vmem:[#allocation8 + $0x80] sm:$0xff] %v4803_v50   ;;  %vm1529_vm0 = vweird.f32 %v4944_v54  ;;  %v2836_v3 = vadd.f32 0.014752088, %v2835_v58  ;;  %v1512_v7 = vmul.f32 %v1511_v45, %v5257_v30 }
  0xf8   :  { %v1526_v9 = vmul.f32 %v4944_v54, %v1525_v51  ;;  %v5445_v4 = vmul.f32 0.70710677, %v5431_v53  ;;  %vm1528_vm1 = vweird.f32 %v5401_v5  ;;  %vm5449_vm2 = vcmp.eq.f32.partialorder %v1532_v42, 8.507059e+37  ;;  %v4692_v50 = vld [vmem:[#allocation3 + $0x1a4] sm:$0xf] }
  0xf9   :  { %4945 = vrcp.f32 %v5441_v2  ;;  %v1547_v10 = vadd.f32 0.05243302, %v1546_v36  ;;  %v1557_v1 = vmul.f32 %v1556_v62, %v5408_v12  ;;  %v2826_v55 = vmul.f32 %v2825_v63, %v5422_v40  ;;  %vm1530_vm3 = vmor %vm1528_vm1, %vm1529_vm0 }
  0xfa   :  { %v1527_v28 = vadd.f32 %v4944_v54, %v1526_v9  ;;  %v1535_v60 = vor.u32 1.1754944e-38, %v1534_v43  ;;  %v2790_v30 = vmul.f32 %v2789_v56, %v5359_v22  ;;  %v2837_v5 = vmul.f32 %v2836_v3, %v5422_v40  ;;  %v4660_v22 = vld [vmem:[#allocation3 + $0xa4] sm:$0xf]  ;;  %v4468_v3 = vld [vmem:[#allocation3 + $0x1a8] sm:$0xf0] }
  0xfb   :  { %v1580_v14 = vmul.f32 %v5445_v4, %v5445_v4  ;;  %v1548_v0 = vmul.f32 %v1547_v10, %v5408_v12  ;;  %v1558_v23 = vadd.f32 0.112945676, %v1557_v1  ;;  %v2827_v25 = vadd.f32 0.05243302, %v2826_v55 }
  0xfc   :  { %v1531_v16 = vsel %vm1530_vm3, %v4944_v54, %v1527_v28  ;;  %v2838_v45 = vadd.f32 0.112945676, %v2837_v5  ;;  %v4339_v24 = vor.u32 %v4661_v18, %v4338_v11  ;;  %v5466_v19 = vmul.f32 0.5, %v5378_v38  ;;  %v959_v54 = vpop.f32.mrf.mxu3 }
  0xfd   :  { %v1536_v6 = vsel %vm5449_vm2, %v1535_v60, %v1531_v16  ;;  %v5463_v31 = vmin.f32 %v1580_v14, 16.0  ;;  %v1549_v48 = vadd.f32 0.18741608, %v1548_v0  ;;  %v1559_v33 = vmul.f32 %v1558_v23, %v5408_v12  ;;  %v712_v16 = vpop.f32.mrf.mxu0  ;;  %v881_v0 = vpop.f32.mrf.mxu1 }
  0xfe   :  { %v2828_v32 = vmul.f32 %v2827_v25, %v5422_v40  ;;  %v2839_v37 = vmul.f32 %v2838_v45, %v5422_v40  ;;  %749 = vmatmul.bf16.gmra.mxu0 %v4339_v24  ;;  %v4467_v26 = vor.u32 %v4693_v27, %v4466_v15  ;;  %v1537_v41 = vmul.f32 %v1536_v6, %v1512_v7 }
  0xff   :  { %v4946_v35 = vpop.eup %4945  ;;  %v1582_v17 = vmul.f32 2.1237322e-06, %v5463_v31  ;;  %v1593_v29 = vmul.f32 3.8918573e-05, %v5463_v31  ;;  %v2791_v38 = vadd.f32 1.1283791, %v2790_v30  ;;  %v1550_v43 = vmul.f32 %v1549_v48, %v5408_v12 }
 0x100   :  { %v2804_v42 = vmul.f32 %v4946_v35, %v5441_v2  ;;  %v1560_v44 = vadd.f32 0.4994258, %v1559_v33  ;;  %v2829_v8 = vadd.f32 0.18741608, %v2828_v32  ;;  %v2840_v46 = vadd.f32 0.4994258, %v2839_v37  ;;  %829 = vmatmul.bf16.gmra.mxu2 %v4467_v26 }
 0x101   :  { %v4343_v47 = vor.u32 %v4660_v22, %v4340_v34  ;;  %vm2808_vm4 = vweird.f32 %v5441_v2  ;;  %v2812_v56 = vand.u32 2147483647, %v5441_v2  ;;  %v1583_v58 = vadd.f32 0.00028619796, %v1582_v17 }
 0x102   :  { %v2805_v51 = vsub.f32 1.0, %v2804_v42  ;;  %v2814_v36 = vand.u32 2147483648, %v5441_v2  ;;  %v1561_v62 = vmul.f32 %v1560_v44, %v5408_v12  ;;  %v2841_v63 = vmul.f32 %v2840_v46, %v5422_v40  ;;  %v792_v2 = vpop.f32.mrf.mxu2 }
 0x103   :  { %v1594_v9 = vadd.f32 0.001143296, %v1593_v29  ;;  %918 = vmatmul.bf16.gmra.mxu1 %v4343_v47  ;;  %vm2809_vm5 = vweird.f32 %v4946_v35  ;;  %v2830_v52 = vmul.f32 %v2829_v8, %v5422_v40  ;;  %v1584_v28 = vmul.f32 %v1583_v58, %v5463_v31 }
 0x104   :  { %v2806_v7 = vmul.f32 %v4946_v35, %v2805_v51  ;;  %v4578_v10 = vclamps-f32 %v1537_v41, 1.0  ;;  %v1551_v1 = vadd.f32 1.1283791, %v1550_v43  ;;  %v5482_v55 = vadd.f32 1.0, %v1561_v62  ;;  %vm5489_vm6 = vmor %vm2808_vm4, %vm2809_vm5  ;;  %v961_v27 = vpop.f32.mrf.mxu3 }
 0x105   :  { %v5484_v11 = vadd.f32 1.0, %v2841_v63  ;;  %v1585_v60 = vadd.f32 0.0036580483, %v1584_v28  ;;  %v1595_v12 = vmul.f32 %v1594_v9, %v5463_v31  ;;  %v4471_v30 = vor.u32 %v4692_v50, %v4468_v3 }
 0x106   :  { %v2807_v18 = vadd.f32 %v4946_v35, %v2806_v7  ;;  %v2815_v40 = vor.u32 1.1754944e-38, %v2814_v36  ;;  %4947 = vrcp.f32 %v5482_v55  ;;  %v5495_v14 = vmul.f32 0.5, %v5384_v39 }
 0x107   :  { %v960_v15 = vadd.f32 %v959_v54, %v790_v20  ;;  %vm2813_vm7 = vcmp.eq.f32.partialorder %v2812_v56, 8.507059e+37  ;;  %v2831_v25 = vadd.f32 1.1283791, %v2830_v52  ;;  %4949 = vrcp.f32 %v5484_v11  ;;  %998 = vmatmul.bf16.gmra.mxu3 %v4471_v30 }
 0x108   :  { %v2811_v23 = vsel %vm5489_vm6, %v4946_v35, %v2807_v18  ;;  %v5500_v6 = vadd.f32 1.0, %v4578_v10  ;;  %v2792_v45 = vmul.f32 %v2791_v38, %v5329_v49  ;;  %v1574_v39 = vand.u32 2147483648, %v5482_v55 }
 0x109   :  { %v2816_v24 = vsel %vm2813_vm7, %v2815_v40, %v2811_v23  ;;  %v1552_v22 = vmul.f32 %v1551_v1, %v5389_v57  ;;  %v1572_v48 = vand.u32 2147483647, %v5482_v55  ;;  %v1586_v33 = vmul.f32 %v1585_v60, %v5463_v31 }
 0x10a   :  { %v1596_v32 = vadd.f32 0.014752088, %v1595_v12  ;;  %v2852_v34 = vand.u32 2147483647, %v5484_v11  ;;  %v5509_v20 = vadd.f32 %v5185_v59, %v960_v15  ;;  %v882_v54 = vadd.f32 %v881_v0, %v712_v16 }
 0x10b   :  { %v962_v35 = vadd.f32 %v961_v27, %v792_v2  ;;  %v2817_v37 = vmul.f32 %v2816_v24, %v2792_v45  ;;  %vm1568_vm8 = vweird.f32 %v5482_v55  ;;  %v2832_v49 = vmul.f32 %v2831_v25, %v5394_v61 }
 0x10c   :  { %v1587_v17 = vadd.f32 0.05243302, %v1586_v33  ;;  %v1597_v57 = vmul.f32 %v1596_v32, %v5463_v31  ;;  %v4948_v29 = vpop.eup %4947  ;;  %v1575_v26 = vor.u32 1.1754944e-38, %v1574_v39  ;;  %vm2848_vm9 = vweird.f32 %v5484_v11 }
 0x10d   :  { %v5516_v41 = vmul.f32 0.70710677, %v5509_v20  ;;  %v5519_v38 = vadd.f32 %v5185_v59, %v882_v54  ;;  %v4950_v42 = vpop.eup %4949  ;;  %v1564_v43 = vmul.f32 %v4948_v29, %v5482_v55  ;;  %vm5522_vm10 = vcmp.eq.f32.partialorder %v1572_v48, 8.507059e+37 }
 0x10e   :  { %v2854_v61 = vand.u32 2147483648, %v5484_v11  ;;  %v1588_v8 = vmul.f32 %v1587_v17, %v5463_v31  ;;  %v5529_v46 = vadd.f32 %v5185_v59, %v962_v35  ;;  %v2844_v47 = vmul.f32 %v4950_v42, %v5484_v11 }
 0x10f   :  { %vm5532_vm11 = vcmp.eq.f32.partialorder %v2852_v34, 8.507059e+37  ;;  %v1598_v51 = vadd.f32 0.112945676, %v1597_v57  ;;  %v2860_v56 = vmul.f32 %v5516_v41, %v5516_v41  ;;  %v4610_v58 = vclamps-f32 %v2817_v37, 1.0 }
 0x110   :  { %v1565_v36 = vsub.f32 1.0, %v1564_v43  ;;  %vm1569_vm12 = vweird.f32 %v4948_v29  ;;  %v1589_v62 = vadd.f32 0.18741608, %v1588_v8  ;;  %v2845_v63 = vsub.f32 1.0, %v2844_v47 }
 0x111   :  { %v1599_v9 = vmul.f32 %v1598_v51, %v5463_v31  ;;  %v5539_v3 = vmin.f32 %v2860_v56, 16.0  ;;  %v5542_v59 = vmul.f32 0.70710677, %v5519_v38  ;;  %vm2849_vm13 = vweird.f32 %v4950_v42  ;;  %vm1570_vm14 = vmor %vm1568_vm8, %vm1569_vm12 }
 0x112   :  { %v1566_v7 = vmul.f32 %v4948_v29, %v1565_v36  ;;  %v1590_v52 = vmul.f32 %v1589_v62, %v5463_v31  ;;  %v5546_v28 = vmul.f32 0.70710677, %v5529_v46  ;;  %v2846_v10 = vmul.f32 %v4950_v42, %v2845_v63  ;;  %vm2850_vm15 = vmor %vm2848_vm9, %vm2849_vm13 }
 0x113   :  { %v1600_v1 = vadd.f32 0.4994258, %v1599_v9  ;;  %v2862_v18 = vmul.f32 2.1237322e-06, %v5539_v3  ;;  %v2873_v60 = vmul.f32 3.8918573e-05, %v5539_v3  ;;  %v1620_v5 = vmul.f32 %v5542_v59, %v5542_v59 }
 0x114   :  { %v1567_v12 = vadd.f32 %v4948_v29, %v1566_v7  ;;  %v2855_v30 = vor.u32 1.1754944e-38, %v2854_v61  ;;  %v2900_v40 = vmul.f32 %v5546_v28, %v5546_v28  ;;  %v2847_v15 = vadd.f32 %v4950_v42, %v2846_v10 }
 0x115   :  { %v1601_v16 = vmul.f32 %v1600_v1, %v5463_v31  ;;  %v2863_v0 = vadd.f32 0.00028619796, %v2862_v18  ;;  %v2874_v23 = vadd.f32 0.001143296, %v2873_v60  ;;  %v4014_v25 = vadd.f32 1.0, %v4610_v58  ;;  %v715_v1 = vpop.f32.mrf.mxu0  ;;  %v884_v18 = vpop.f32.mrf.mxu1 }
 0x116   :  { %v1571_v2 = vsel %vm1570_vm14, %v4948_v29, %v1567_v12  ;;  %v1591_v27 = vadd.f32 1.1283791, %v1590_v52  ;;  %v5561_v45 = vmin.f32 %v1620_v5, 16.0  ;;  %v2851_v39 = vsel %vm2850_vm15, %v4950_v42, %v2847_v15 }
 0x117   :  { %v1576_v24 = vsel %vm5522_vm10, %v1575_v26, %v1571_v2  ;;  %v5565_v55 = vadd.f32 1.0, %v1601_v16  ;;  %v2864_v48 = vmul.f32 %v2863_v0, %v5539_v3  ;;  %v2856_v33 = vsel %vm5532_vm11, %v2855_v30, %v2851_v39 }
 0x118   :  { %v1577_v31 = vmul.f32 %v1576_v24, %v1552_v22  ;;  %v2875_v32 = vmul.f32 %v2874_v23, %v5539_v3  ;;  %v1622_v11 = vmul.f32 2.1237322e-06, %v5561_v45  ;;  %v4046_v34 = vmul.f32 %v5500_v6, %v5414_v13 }
 0x119   :  { %v2857_v54 = vmul.f32 %v2856_v33, %v2832_v49  ;;  %4951 = vrcp.f32 %v5565_v55  ;;  %v5575_v35 = vmin.f32 %v2900_v40, 16.0  ;;  %v4078_v37 = vmul.f32 %v4014_v25, %v5419_v21 }
 0x11a   :  { %v4579_v17 = vclamps-f32 %v1577_v31, 1.0  ;;  %v2865_v57 = vadd.f32 0.0036580483, %v2864_v48  ;;  %v2876_v22 = vadd.f32 0.014752088, %v2875_v32  ;;  %v5579_v26 = vmul.f32 %v1591_v27, %v5445_v4 }
 0x11b   :  { %v4611_v29 = vclamps-f32 %v2857_v54, 1.0  ;;  %v1623_v42 = vadd.f32 0.00028619796, %v1622_v11  ;;  %v1633_v43 = vmul.f32 3.8918573e-05, %v5561_v45  ;;  %vm1608_vm0 = vweird.f32 %v5565_v55 }
 0x11c   :  { %v3983_v44 = vadd.f32 1.0, %v4579_v17  ;;  %v1612_v13 = vand.u32 2147483647, %v5565_v55  ;;  %v2866_v6 = vmul.f32 %v2865_v57, %v5539_v3  ;;  %v2877_v49 = vmul.f32 %v2876_v22, %v5539_v3 }
 0x11d   :  { %v4015_v61 = vadd.f32 1.0, %v4611_v29  ;;  %v1624_v21 = vmul.f32 %v1623_v42, %v5561_v45  ;;  %v1634_v8 = vadd.f32 0.001143296, %v1633_v43  ;;  %v2902_v47 = vmul.f32 2.1237322e-06, %v5575_v35 }
 0x11e   :  { %v4047_v50 = vmul.f32 %v3983_v44, %v5466_v19  ;;  %v2867_v4 = vadd.f32 0.05243302, %v2866_v6  ;;  %v2878_v51 = vadd.f32 0.112945676, %v2877_v49  ;;  %v2913_v56 = vmul.f32 3.8918573e-05, %v5575_v35 }
 0x11f   :  { %v4952_v58 = vpop.eup %4951  ;;  %v4079_v36 = vmul.f32 %v4015_v61, %v5495_v14  ;;  %v1625_v62 = vadd.f32 0.0036580483, %v1624_v21  ;;  %v1635_v63 = vmul.f32 %v1634_v8, %v5561_v45  ;;  %v2903_v9 = vadd.f32 0.00028619796, %v2902_v47  ;;  %v5616_v29 = vld [vmem:[%s7689_s2] ss:$0 sm:$0xff] }
 0x120   :  { %v4728_v7 = vpack.c.bf16 %v4047_v50, %v4046_v34  ;;  %v1604_v52 = vmul.f32 %v4952_v58, %v5565_v55  ;;  %v1614_v10 = vand.u32 2147483648, %v5565_v55  ;;  %v2868_v19 = vmul.f32 %v2867_v4, %v5539_v3  ;;  %v4346_v6 = vld [vmem:[#allocation3 + $0xb0] sm:$0xf]  ;;  %v4663_v21 = vld [vmem:[#allocation3 + $0xb4] sm:$0xf0] }
 0x121   :  { %v4808_v60 = vpack.c.bf16 %v4079_v36, %v4078_v37  ;;  %v2879_v12 = vmul.f32 %v2878_v51, %v5539_v3  ;;  %v1626_v30 = vmul.f32 %v1625_v62, %v5561_v45  ;;  %v1636_v5 = vadd.f32 0.014752088, %v1635_v63  ;;  %v4474_v8 = vld [vmem:[#allocation3 + $0x1b0] sm:$0xf]  ;;  %v4695_v4 = vld [vmem:[#allocation3 + $0x1b4] sm:$0xf0] }
 0x122   :  { %4880 = vst [vmem:[#allocation8 + $0x8] sm:$0xff] %v4728_v7   ;;  %v1605_v14 = vsub.f32 1.0, %v1604_v52  ;;  %v2869_v40 = vadd.f32 0.18741608, %v2868_v19  ;;  %v2904_v15 = vmul.f32 %v2903_v9, %v5575_v35  ;;  %v2914_v16 = vadd.f32 0.001143296, %v2913_v56 }
 0x123   :  { %4896 = vst [vmem:[#allocation8 + $0x88] sm:$0xff] %v4808_v60   ;;  %v2880_v0 = vadd.f32 0.4994258, %v2879_v12  ;;  %v1627_v23 = vadd.f32 0.05243302, %v1626_v30  ;;  %v1637_v25 = vmul.f32 %v1636_v5, %v5561_v45  ;;  %v885_v2 = vadd.f32 %v884_v18, %v715_v1  ;;  %v795_v30 = vpop.f32.mrf.mxu2  ;;  %v964_v5 = vpop.f32.mrf.mxu3 }
 0x124   :  { %v1606_v27 = vmul.f32 %v4952_v58, %v1605_v14  ;;  %vm1609_vm1 = vweird.f32 %v4952_v58  ;;  %v2905_v24 = vadd.f32 0.0036580483, %v2904_v15  ;;  %v2915_v39 = vmul.f32 %v2914_v16, %v5575_v35  ;;  %v4662_v51 = vld [vmem:[#allocation3 + $0xb4] sm:$0xf]  ;;  %v4348_v7 = vld [vmem:[#allocation3 + $0xb8] sm:$0xf0] }
 0x125   :  { %vm5600_vm2 = vcmp.eq.f32.partialorder %v1612_v13, 8.507059e+37  ;;  %v2881_v31 = vmul.f32 %v2880_v0, %v5539_v3  ;;  %v1628_v33 = vmul.f32 %v1627_v23, %v5561_v45  ;;  %v1638_v32 = vadd.f32 0.112945676, %v1637_v25  ;;  %vm1610_vm3 = vmor %vm1608_vm0, %vm1609_vm1  ;;  %v717_v0 = vpop.f32.mrf.mxu0  ;;  %v886_v23 = vpop.f32.mrf.mxu1  ;;  %v4694_v25 = vld [vmem:[#allocation3 + $0x1b4] sm:$0xf] }
 0x126   :  { %v1607_v11 = vadd.f32 %v4952_v58, %v1606_v27  ;;  %v1615_v34 = vor.u32 1.1754944e-38, %v1614_v10  ;;  %v2906_v54 = vmul.f32 %v2905_v24, %v5575_v35  ;;  %v2916_v37 = vadd.f32 0.014752088, %v2915_v39 }
 0x127   :  { %v2870_v17 = vmul.f32 %v2869_v40, %v5539_v3  ;;  %v5610_v57 = vadd.f32 1.0, %v2881_v31  ;;  %v1639_v22 = vmul.f32 %v1638_v32, %v5561_v45  ;;  %v5619_v42 = vadd.f32 %v5616_v29, %v885_v2  ;;  %v4476_v2 = vld [vmem:[#allocation3 + $0x1b8] sm:$0xf0] }
 0x128   :  { %v1611_v43 = vsel %vm1610_vm3, %v4952_v58, %v1607_v11  ;;  %v1629_v44 = vadd.f32 0.18741608, %v1628_v33  ;;  %v2907_v13 = vadd.f32 0.05243302, %v2906_v54  ;;  %v2917_v55 = vmul.f32 %v2916_v37, %v5575_v35 }
 0x129   :  { %v5623_v3 = vmul.f32 0.5, %v5431_v53  ;;  %v1616_v49 = vsel %vm5600_vm2, %v1615_v34, %v1611_v43  ;;  %v5628_v61 = vmul.f32 0.5, %v5509_v20  ;;  %4953 = vrcp.f32 %v5610_v57 }
 0x12a   :  { %v1617_v47 = vmul.f32 %v1616_v49, %v5579_v26  ;;  %v1640_v50 = vadd.f32 0.4994258, %v1639_v22  ;;  %v2871_v56 = vadd.f32 1.1283791, %v2870_v17  ;;  %v2908_v58 = vmul.f32 %v2907_v13, %v5575_v35 }
 0x12b   :  { %v2918_v53 = vadd.f32 0.112945676, %v2917_v55  ;;  %v5634_v36 = vmul.f32 0.70710677, %v5619_v42  ;;  %v2892_v20 = vand.u32 2147483647, %v5610_v57  ;;  %v1630_v63 = vmul.f32 %v1629_v44, %v5561_v45 }
 0x12c   :  { %v4580_v62 = vclamps-f32 %v1617_v47, 1.0  ;;  %v1641_v9 = vmul.f32 %v1640_v50, %v5561_v45  ;;  %v2909_v52 = vadd.f32 0.18741608, %v2908_v58  ;;  %v4347_v19 = vor.u32 %v4663_v21, %v4346_v6  ;;  %v797_v58 = vpop.f32.mrf.mxu2 }
 0x12d   :  { %v2919_v26 = vmul.f32 %v2918_v53, %v5575_v35  ;;  %v1660_v10 = vmul.f32 %v5634_v36, %v5634_v36  ;;  %v5643_v1 = vmul.f32 0.5, %v5519_v38  ;;  %v5648_v60 = vmul.f32 0.5, %v5529_v46  ;;  %v966_v53 = vpop.f32.mrf.mxu3 }
 0x12e   :  { %v5645_v18 = vadd.f32 1.0, %v1641_v9  ;;  %v4475_v12 = vor.u32 %v4695_v4, %v4474_v8  ;;  %v2872_v14 = vmul.f32 %v2871_v56, %v5516_v41  ;;  %754 = vmatmul.bf16.gmra.mxu0 %v4347_v19  ;;  %v4351_v16 = vor.u32 %v4662_v51, %v4348_v7  ;;  %v720_v9 = vpop.f32.mrf.mxu0  ;;  %v889_v7 = vpop.f32.mrf.mxu1 }
 0x12f   :  { %v4954_v45 = vpop.eup %4953  ;;  %v2920_v40 = vadd.f32 0.4994258, %v2919_v26  ;;  %v5651_v15 = vmin.f32 %v1660_v10, 16.0  ;;  %vm2888_vm4 = vweird.f32 %v5610_v57  ;;  %v2894_v46 = vand.u32 2147483648, %v5610_v57 }
 0x130   :  { %v2884_v38 = vmul.f32 %v4954_v45, %v5610_v57  ;;  %4955 = vrcp.f32 %v5645_v18  ;;  %834 = vmatmul.bf16.gmra.mxu2 %v4475_v12  ;;  %v3984_v27 = vadd.f32 1.0, %v4580_v62  ;;  %vm5657_vm5 = vcmp.eq.f32.partialorder %v2892_v20, 8.507059e+37  ;;  %923 = vmatmul.bf16.gmra.mxu1 %v4351_v16 }
 0x131   :  { %v1631_v24 = vadd.f32 1.1283791, %v1630_v63  ;;  %v2910_v39 = vmul.f32 %v2909_v52, %v5575_v35  ;;  %v2921_v31 = vmul.f32 %v2920_v40, %v5575_v35  ;;  %v1662_v33 = vmul.f32 2.1237322e-06, %v5651_v15 }
 0x132   :  { %v2885_v48 = vsub.f32 1.0, %v2884_v38  ;;  %v1673_v32 = vmul.f32 3.8918573e-05, %v5651_v15  ;;  %vm2889_vm6 = vweird.f32 %v4954_v45  ;;  %v1652_v11 = vand.u32 2147483647, %v5645_v18 }
 0x133   :  { %v1654_v34 = vand.u32 2147483648, %v5645_v18  ;;  %v4479_v54 = vor.u32 %v4694_v25, %v4476_v2  ;;  %v5667_v17 = vadd.f32 1.0, %v2921_v31  ;;  %v1663_v22 = vadd.f32 0.00028619796, %v1662_v33  ;;  %vm2890_vm8 = vmor %vm2888_vm4, %vm2889_vm6 }
 0x134   :  { %v2886_v37 = vmul.f32 %v4954_v45, %v2885_v48  ;;  %v1674_v43 = vadd.f32 0.001143296, %v1673_v32  ;;  %v2895_v44 = vor.u32 1.1754944e-38, %v2894_v46  ;;  %v1632_v13 = vmul.f32 %v1631_v24, %v5542_v59 }
 0x135   :  { %v2911_v55 = vadd.f32 1.1283791, %v2910_v39  ;;  %1003 = vmatmul.bf16.gmra.mxu3 %v4479_v54  ;;  %v965_v35 = vadd.f32 %v964_v5, %v795_v30  ;;  %v5671_v49 = vmul.f32 %v3984_v27, %v5623_v3  ;;  %vm1648_vm7 = vweird.f32 %v5645_v18 }
 0x136   :  { %v4956_v6 = vpop.eup %4955  ;;  %v2887_v21 = vadd.f32 %v4954_v45, %v2886_v37  ;;  %4957 = vrcp.f32 %v5667_v17  ;;  %vm5679_vm9 = vcmp.eq.f32.partialorder %v1652_v11, 8.507059e+37  ;;  %v1664_v47 = vmul.f32 %v1663_v22, %v5651_v15 }
 0x137   :  { %v1644_v8 = vmul.f32 %v4956_v6, %v5645_v18  ;;  %v887_v50 = vadd.f32 %v886_v23, %v717_v0  ;;  %v1655_v4 = vor.u32 1.1754944e-38, %v1654_v34  ;;  %v1675_v51 = vmul.f32 %v1674_v43, %v5651_v15 }
 0x138   :  { %v2891_v3 = vsel %vm2890_vm8, %v4954_v45, %v2887_v21  ;;  %v5686_v56 = vadd.f32 %v5616_v29, %v965_v35  ;;  %v2912_v20 = vmul.f32 %v2911_v55, %v5546_v28  ;;  %v1665_v63 = vadd.f32 0.0036580483, %v1664_v47 }
 0x139   :  { %v2896_v57 = vsel %vm5657_vm5, %v2895_v44, %v2891_v3  ;;  %v1645_v62 = vsub.f32 1.0, %v1644_v8  ;;  %vm1649_vm10 = vweird.f32 %v4956_v6  ;;  %v2932_v52 = vand.u32 2147483647, %v5667_v17 }
 0x13a   :  { %v1676_v26 = vadd.f32 0.014752088, %v1675_v51  ;;  %v5693_v10 = vmul.f32 0.70710677, %v5686_v56  ;;  %v2897_v19 = vmul.f32 %v2896_v57, %v2872_v14  ;;  %v1666_v30 = vmul.f32 %v1665_v63, %v5651_v15  ;;  %vm1650_vm12 = vmor %vm1648_vm7, %vm1649_vm10 }
 0x13b   :  { %v1646_v12 = vmul.f32 %v4956_v6, %v1645_v62  ;;  %v5697_v5 = vadd.f32 %v5616_v29, %v887_v50  ;;  %v967_v16 = vadd.f32 %v966_v53, %v797_v58  ;;  %v890_v0 = vadd.f32 %v889_v7, %v720_v9 }
 0x13c   :  { %v4958_v45 = vpop.eup %4957  ;;  %v1677_v28 = vmul.f32 %v1676_v26, %v5651_v15  ;;  %v2940_v40 = vmul.f32 %v5693_v10, %v5693_v10  ;;  %vm2928_vm11 = vweird.f32 %v5667_v17  ;;  %v1667_v14 = vadd.f32 0.05243302, %v1666_v30 }
 0x13d   :  { %v1647_v23 = vadd.f32 %v4956_v6, %v1646_v12  ;;  %v2924_v38 = vmul.f32 %v4958_v45, %v5667_v17  ;;  %vm5707_vm13 = vcmp.eq.f32.partialorder %v2932_v52, 8.507059e+37  ;;  %v2934_v25 = vand.u32 2147483648, %v5667_v17 }
 0x13e   :  { %v1678_v2 = vadd.f32 0.112945676, %v1677_v28  ;;  %v5712_v27 = vmin.f32 %v2940_v40, 16.0  ;;  %v4612_v41 = vclamps-f32 %v2897_v19, 1.0  ;;  %v5715_v48 = vmul.f32 0.70710677, %v5697_v5 }
 0x13f   :  { %v1651_v24 = vsel %vm1650_vm12, %v4956_v6, %v1647_v23  ;;  %v2925_v39 = vsub.f32 1.0, %v2924_v38  ;;  %v1668_v18 = vmul.f32 %v1667_v14, %v5651_v15  ;;  %vm2929_vm14 = vweird.f32 %v4958_v45  ;;  %v4665_v28 = vld [vmem:[#allocation3 + $0xc4] sm:$0xf0] }
 0x140   :  { %v1656_v31 = vsel %vm5679_vm9, %v1655_v4, %v1651_v24  ;;  %v1679_v33 = vmul.f32 %v1678_v2, %v5651_v15  ;;  %v2942_v32 = vmul.f32 2.1237322e-06, %v5712_v27  ;;  %v2953_v54 = vmul.f32 3.8918573e-05, %v5712_v27  ;;  %vm2930_vm15 = vmor %vm2928_vm11, %vm2929_vm14 }
 0x141   :  { %v1657_v11 = vmul.f32 %v1656_v31, %v1632_v13  ;;  %v2926_v34 = vmul.f32 %v4958_v45, %v2925_v39  ;;  %v2935_v37 = vor.u32 1.1754944e-38, %v2934_v25  ;;  %v1700_v44 = vmul.f32 %v5715_v48, %v5715_v48 }
 0x142   :  { %v1680_v22 = vadd.f32 0.4994258, %v1679_v33  ;;  %v2943_v43 = vadd.f32 0.00028619796, %v2942_v32  ;;  %v2954_v6 = vadd.f32 0.001143296, %v2953_v54  ;;  %v5726_v21 = vadd.f32 %v5616_v29, %v967_v16 }
 0x143   :  { %v4581_v55 = vclamps-f32 %v1657_v11, 1.0  ;;  %v2927_v35 = vadd.f32 %v4958_v45, %v2926_v34  ;;  %v1669_v13 = vadd.f32 0.18741608, %v1668_v18  ;;  %v5732_v47 = vmin.f32 %v1700_v44, 16.0 }
 0x144   :  { %v1681_v8 = vmul.f32 %v1680_v22, %v5651_v15  ;;  %v2944_v59 = vmul.f32 %v2943_v43, %v5712_v27  ;;  %v4016_v50 = vadd.f32 1.0, %v4612_v41  ;;  %v2955_v51 = vmul.f32 %v2954_v6, %v5712_v27 }
 0x145   :  { %v3985_v3 = vadd.f32 1.0, %v4581_v55  ;;  %v2931_v4 = vsel %vm2930_vm15, %v4958_v45, %v2927_v35  ;;  %v1702_v17 = vmul.f32 2.1237322e-06, %v5732_v47  ;;  %v5742_v7 = vmul.f32 0.70710677, %v5726_v21 }
 0x146   :  { %v2936_v58 = vsel %vm5707_vm13, %v2935_v37, %v2931_v4  ;;  %v5737_v53 = vadd.f32 1.0, %v1681_v8  ;;  %v2945_v57 = vadd.f32 0.0036580483, %v2944_v59  ;;  %v2956_v9 = vadd.f32 0.014752088, %v2955_v51 }
 0x147   :  { %v4049_v62 = vmul.f32 %v3985_v3, %v5643_v1  ;;  %v2937_v63 = vmul.f32 %v2936_v58, %v2912_v20  ;;  %v5745_v52 = vmul.f32 0.5, %v5619_v42  ;;  %v1670_v26 = vmul.f32 %v1669_v13, %v5651_v15  ;;  %v4354_v45 = vld [vmem:[#allocation3 + $0xc0] sm:$0xf] }
 0x148   :  { %4959 = vrcp.f32 %v5737_v53  ;;  %v5750_v19 = vadd.f32 %v5616_v29, %v890_v0  ;;  %v2946_v1 = vmul.f32 %v2945_v57, %v5712_v27  ;;  %v2957_v20 = vmul.f32 %v2956_v9, %v5712_v27 }
 0x149   :  { %v4733_v12 = vpack.c.bf16 %v4049_v62, %v5671_v49  ;;  %v4613_v30 = vclamps-f32 %v2937_v63, 1.0  ;;  %v4080_v40 = vmul.f32 %v4016_v50, %v5628_v61  ;;  %v5757_v42 = vmul.f32 0.5, %v5686_v56 }
 0x14a   :  { %v1703_v15 = vadd.f32 0.00028619796, %v1702_v17  ;;  %v1713_v16 = vmul.f32 3.8918573e-05, %v5732_v47  ;;  %v2947_v23 = vadd.f32 0.05243302, %v2946_v1  ;;  %v2980_v49 = vmul.f32 %v5742_v7, %v5742_v7 }
 0x14b   :  { %4881 = vst [vmem:[#allocation8 + $0x10] sm:$0xff] %v4733_v12   ;;  %v4017_v0 = vadd.f32 1.0, %v4613_v30  ;;  %v2958_v38 = vadd.f32 0.112945676, %v2957_v20  ;;  %v1671_v14 = vadd.f32 1.1283791, %v1670_v26  ;;  %v4355_v32 = vor.u32 %v4665_v28, %v4354_v45 }
 0x14c   :  { %v1704_v46 = vmul.f32 %v1703_v15, %v5732_v47  ;;  %v1714_v25 = vadd.f32 0.001143296, %v1713_v16  ;;  %v5764_v2 = vmul.f32 0.70710677, %v5750_v19  ;;  %v2948_v56 = vmul.f32 %v2947_v23, %v5712_v27  ;;  %v4482_v20 = vld [vmem:[#allocation3 + $0x1c0] sm:$0xf] }
 0x14d   :  { %v4081_v61 = vmul.f32 %v4017_v0, %v5648_v60  ;;  %v2959_v41 = vmul.f32 %v2958_v38, %v5712_v27  ;;  %v5769_v24 = vmin.f32 %v2980_v49, 16.0  ;;  %v1692_v54 = vand.u32 2147483647, %v5737_v53  ;;  %759 = vmatmul.bf16.gmra.mxu0 %v4355_v32  ;;  %v4697_v16 = vld [vmem:[#allocation3 + $0x1c4] sm:$0xf0] }
 0x14e   :  { %v4960_v39 = vpop.eup %4959  ;;  %v1705_v31 = vadd.f32 0.0036580483, %v1704_v46  ;;  %v1715_v18 = vmul.f32 %v1714_v25, %v5732_v47  ;;  %v1740_v33 = vmul.f32 %v5764_v2, %v5764_v2  ;;  %v2949_v60 = vadd.f32 0.18741608, %v2948_v56  ;;  %v4664_v38 = vld [vmem:[#allocation3 + $0xc4] sm:$0xf] }
 0x14f   :  { %v4813_v11 = vpack.c.bf16 %v4081_v61, %v4080_v40  ;;  %v1684_v34 = vmul.f32 %v4960_v39, %v5737_v53  ;;  %v2960_v37 = vadd.f32 0.4994258, %v2959_v41  ;;  %v2982_v44 = vmul.f32 2.1237322e-06, %v5769_v24  ;;  %v4356_v56 = vld [vmem:[#allocation3 + $0xc8] sm:$0xf0] }
 0x150   :  { %v1706_v22 = vmul.f32 %v1705_v31, %v5732_v47  ;;  %v1716_v43 = vadd.f32 0.014752088, %v1715_v18  ;;  %v1694_v35 = vand.u32 2147483648, %v5737_v53  ;;  %v2993_v6 = vmul.f32 3.8918573e-05, %v5769_v24 }
 0x151   :  { %4897 = vst [vmem:[#allocation8 + $0x90] sm:$0xff] %v4813_v11   ;;  %v1685_v55 = vsub.f32 1.0, %v1684_v34  ;;  %v5780_v13 = vmin.f32 %v1740_v33, 16.0  ;;  %v2961_v8 = vmul.f32 %v2960_v37, %v5712_v27  ;;  %v2983_v3 = vadd.f32 0.00028619796, %v2982_v44 }
 0x152   :  { %v1707_v59 = vadd.f32 0.05243302, %v1706_v22  ;;  %v1717_v50 = vmul.f32 %v1716_v43, %v5732_v47  ;;  %vm1689_vm0 = vweird.f32 %v4960_v39  ;;  %v2994_v51 = vadd.f32 0.001143296, %v2993_v6  ;;  %v4696_v11 = vld [vmem:[#allocation3 + $0x1c4] sm:$0xf] }
 0x153   :  { %v1686_v4 = vmul.f32 %v4960_v39, %v1685_v55  ;;  %v1742_v58 = vmul.f32 2.1237322e-06, %v5780_v13  ;;  %v5785_v57 = vadd.f32 1.0, %v2961_v8  ;;  %v2984_v63 = vmul.f32 %v2983_v3, %v5769_v24 }
 0x154   :  { %v1708_v17 = vmul.f32 %v1707_v59, %v5732_v47  ;;  %v1718_v62 = vadd.f32 0.112945676, %v1717_v50  ;;  %vm1688_vm1 = vweird.f32 %v5737_v53  ;;  %v2950_v26 = vmul.f32 %v2949_v60, %v5712_v27 }
 0x155   :  { %v1687_v9 = vadd.f32 %v4960_v39, %v1686_v4  ;;  %v2995_v12 = vmul.f32 %v2994_v51, %v5769_v24  ;;  %vm1690_vm2 = vmor %vm1688_vm1, %vm1689_vm0  ;;  %vm1693_vm3 = vcmp.eq.f32.partialorder %v1692_v54, 8.507059e+37  ;;  %v1695_v30 = vor.u32 1.1754944e-38, %v1694_v35  ;;  %v800_v4 = vpop.f32.mrf.mxu2  ;;  %v969_v51 = vpop.f32.mrf.mxu3 }
 0x156   :  { %4961 = vrcp.f32 %v5785_v57  ;;  %v1743_v1 = vadd.f32 0.00028619796, %v1742_v58  ;;  %v1709_v28 = vadd.f32 0.18741608, %v1708_v17  ;;  %v1719_v40 = vmul.f32 %v1718_v62, %v5732_v47 }
 0x157   :  { %v1691_v45 = vsel %vm1690_vm2, %v4960_v39, %v1687_v9  ;;  %v2985_v15 = vadd.f32 0.0036580483, %v2984_v63  ;;  %v5795_v53 = vmul.f32 0.5, %v5697_v5  ;;  %v5798_v27 = vmul.f32 0.5, %v5726_v21 }
 0x158   :  { %v1696_v0 = vsel %vm1693_vm3, %v1695_v30, %v1691_v45  ;;  %v2996_v23 = vadd.f32 0.014752088, %v2995_v12  ;;  %v1672_v49 = vmul.f32 %v1671_v14, %v5634_v36  ;;  %v2951_v46 = vadd.f32 1.1283791, %v2950_v26  ;;  %v4484_v36 = vld [vmem:[#allocation3 + $0x1c8] sm:$0xf0] }
 0x159   :  { %v1720_v25 = vadd.f32 0.4994258, %v1719_v40  ;;  %v2986_v61 = vmul.f32 %v2985_v15, %v5769_v24  ;;  %v1744_v39 = vmul.f32 %v1743_v1, %v5780_v13  ;;  %v1753_v31 = vmul.f32 3.8918573e-05, %v5780_v13  ;;  %v722_v15 = vpop.f32.mrf.mxu0 }
 0x15a   :  { %v2997_v41 = vmul.f32 %v2996_v23, %v5769_v24  ;;  %v4483_v5 = vor.u32 %v4697_v16, %v4482_v20  ;;  %v1697_v18 = vmul.f32 %v1696_v0, %v1672_v49  ;;  %v1710_v21 = vmul.f32 %v1709_v28, %v5732_v47  ;;  %v891_v16 = vpop.f32.mrf.mxu1 }
 0x15b   :  { %v1721_v33 = vmul.f32 %v1720_v25, %v5732_v47  ;;  %v2987_v32 = vadd.f32 0.05243302, %v2986_v61  ;;  %v1745_v54 = vadd.f32 0.0036580483, %v1744_v39  ;;  %v1754_v60 = vadd.f32 0.001143296, %v1753_v31 }
 0x15c   :  { %v4962_v14 = vpop.eup %4961  ;;  %v2998_v34 = vadd.f32 0.112945676, %v2997_v41  ;;  %839 = vmatmul.bf16.gmra.mxu2 %v4483_v5  ;;  %v4359_v37 = vor.u32 %v4664_v38, %v4356_v56  ;;  %v2952_v22 = vmul.f32 %v2951_v46, %v5693_v10  ;;  %v2972_v44 = vand.u32 2147483647, %v5785_v57 }
 0x15d   :  { %v2964_v43 = vmul.f32 %v4962_v14, %v5785_v57  ;;  %v2974_v55 = vand.u32 2147483648, %v5785_v57  ;;  %v5811_v35 = vadd.f32 1.0, %v1721_v33  ;;  %v2988_v47 = vmul.f32 %v2987_v32, %v5769_v24 }
 0x15e   :  { %v2999_v6 = vmul.f32 %v2998_v34, %v5769_v24  ;;  %v1746_v8 = vmul.f32 %v1745_v54, %v5780_v13  ;;  %928 = vmatmul.bf16.gmra.mxu1 %v4359_v37  ;;  %v4582_v59 = vclamps-f32 %v1697_v18, 1.0  ;;  %v1755_v3 = vmul.f32 %v1754_v60, %v5780_v13  ;;  %v802_v34 = vpop.f32.mrf.mxu2  ;;  %v971_v54 = vpop.f32.mrf.mxu3 }
 0x15f   :  { %v2965_v50 = vsub.f32 1.0, %v2964_v43  ;;  %v4487_v10 = vor.u32 %v4696_v11, %v4484_v36  ;;  %vm2968_vm4 = vweird.f32 %v5785_v57  ;;  %vm2969_vm5 = vweird.f32 %v4962_v14 }
 0x160   :  { %v1711_v58 = vadd.f32 1.1283791, %v1710_v21  ;;  %4963 = vrcp.f32 %v5811_v35  ;;  %v2989_v62 = vadd.f32 0.18741608, %v2988_v47  ;;  %v3000_v63 = vadd.f32 0.4994258, %v2999_v6  ;;  %vm2970_vm7 = vmor %vm2968_vm4, %vm2969_vm5 }
 0x161   :  { %v2966_v17 = vmul.f32 %v4962_v14, %v2965_v50  ;;  %v1747_v9 = vadd.f32 0.05243302, %v1746_v8  ;;  %1008 = vmatmul.bf16.gmra.mxu3 %v4487_v10  ;;  %vm5819_vm6 = vcmp.eq.f32.partialorder %v2972_v44, 8.507059e+37  ;;  %v2975_v12 = vor.u32 1.1754944e-38, %v2974_v55 }
 0x162   :  { %v1756_v30 = vadd.f32 0.014752088, %v1755_v3  ;;  %v970_v1 = vadd.f32 %v969_v51, %v800_v4  ;;  %v3986_v20 = vadd.f32 1.0, %v4582_v59  ;;  %v3001_v28 = vmul.f32 %v3000_v63, %v5769_v24  ;;  %v894_v33 = vpop.f32.mrf.mxu1 }
 0x163   :  { %v2967_v45 = vadd.f32 %v4962_v14, %v2966_v17  ;;  %v1748_v40 = vmul.f32 %v1747_v9, %v5780_v13  ;;  %v1732_v0 = vand.u32 2147483647, %v5811_v35  ;;  %v2990_v23 = vmul.f32 %v2989_v62, %v5769_v24 }
 0x164   :  { %v1757_v38 = vmul.f32 %v1756_v30, %v5780_v13  ;;  %v5832_v49 = vadd.f32 %v5616_v29, %v970_v1  ;;  %v1712_v25 = vmul.f32 %v1711_v58, %v5715_v48  ;;  %v1734_v61 = vand.u32 2147483648, %v5811_v35 }
 0x165   :  { %v2971_v46 = vsel %vm2970_vm7, %v4962_v14, %v2967_v45  ;;  %v5836_v56 = vadd.f32 1.0, %v3001_v28  ;;  %v892_v24 = vadd.f32 %v891_v16, %v722_v15  ;;  %v5844_v5 = vmul.f32 %v3986_v20, %v5745_v52 }
 0x166   :  { %v4964_v41 = vpop.eup %4963  ;;  %v2976_v57 = vsel %vm5819_vm6, %v2975_v12, %v2971_v46  ;;  %v1758_v39 = vadd.f32 0.112945676, %v1757_v38  ;;  %v5841_v31 = vmul.f32 0.70710677, %v5832_v49  ;;  %v1749_v48 = vadd.f32 0.18741608, %v1748_v40 }
 0x167   :  { %v2977_v18 = vmul.f32 %v2976_v57, %v2952_v22  ;;  %v1724_v21 = vmul.f32 %v4964_v41, %v5811_v35  ;;  %vm1728_vm8 = vweird.f32 %v5811_v35  ;;  %vm5848_vm9 = vcmp.eq.f32.partialorder %v1732_v0, 8.507059e+37 }
 0x168   :  { %v2991_v32 = vadd.f32 1.1283791, %v2990_v23  ;;  %4965 = vrcp.f32 %v5836_v56  ;;  %v1735_v36 = vor.u32 1.1754944e-38, %v1734_v61  ;;  %v3014_v14 = vand.u32 2147483648, %v5836_v56 }
 0x169   :  { %v1725_v11 = vsub.f32 1.0, %v1724_v21  ;;  %v1759_v52 = vmul.f32 %v1758_v39, %v5780_v13  ;;  %v4614_v60 = vclamps-f32 %v2977_v18, 1.0  ;;  %vm1729_vm10 = vweird.f32 %v4964_v41 }
 0x16a   :  { %v3020_v37 = vmul.f32 %v5841_v31, %v5841_v31  ;;  %v5858_v22 = vadd.f32 %v5616_v29, %v892_v24  ;;  %v3012_v44 = vand.u32 2147483647, %v5836_v56  ;;  %v1750_v55 = vmul.f32 %v1749_v48, %v5780_v13  ;;  %vm1730_vm12 = vmor %vm1728_vm8, %vm1729_vm10  ;;  %v725_v48 = vpop.f32.mrf.mxu0 }
 0x16b   :  { %v1726_v43 = vmul.f32 %v4964_v41, %v1725_v11  ;;  %v1760_v47 = vadd.f32 0.4994258, %v1759_v52  ;;  %v2992_v6 = vmul.f32 %v2991_v32, %v5742_v7  ;;  %v972_v50 = vadd.f32 %v971_v54, %v802_v34 }
 0x16c   :  { %v5863_v8 = vmin.f32 %v3020_v37, 16.0  ;;  %v5866_v59 = vmul.f32 0.70710677, %v5858_v22  ;;  %vm3008_vm11 = vweird.f32 %v5836_v56  ;;  %v3015_v10 = vor.u32 1.1754944e-38, %v3014_v14 }
 0x16d   :  { %v1727_v3 = vadd.f32 %v4964_v41, %v1726_v43  ;;  %v1761_v4 = vmul.f32 %v1760_v47, %v5780_v13  ;;  %v4018_v58 = vadd.f32 1.0, %v4614_v60  ;;  %vm5878_vm13 = vcmp.eq.f32.partialorder %v3012_v44, 8.507059e+37 }
 0x16e   :  { %v4966_v51 = vpop.eup %4965  ;;  %v3022_v7 = vmul.f32 2.1237322e-06, %v5863_v8  ;;  %v3033_v17 = vmul.f32 3.8918573e-05, %v5863_v8  ;;  %v1780_v62 = vmul.f32 %v5866_v59, %v5866_v59  ;;  %v1751_v13 = vadd.f32 1.1283791, %v1750_v55 }
 0x16f   :  { %v1731_v63 = vsel %vm1730_vm12, %v4964_v41, %v1727_v3  ;;  %v3004_v9 = vmul.f32 %v4966_v51, %v5836_v56  ;;  %v5882_v12 = vadd.f32 1.0, %v1761_v4  ;;  %v5890_v40 = vadd.f32 %v5616_v29, %v972_v50 }
 0x170   :  { %v1736_v35 = vsel %vm5848_vm9, %v1735_v36, %v1731_v63  ;;  %v3023_v30 = vadd.f32 0.00028619796, %v3022_v7  ;;  %v3034_v1 = vadd.f32 0.001143296, %v3033_v17  ;;  %v5886_v20 = vmin.f32 %v1780_v62, 16.0 }
 0x171   :  { %v1737_v45 = vmul.f32 %v1736_v35, %v1712_v25  ;;  %v3005_v28 = vsub.f32 1.0, %v3004_v9  ;;  %4967 = vrcp.f32 %v5882_v12  ;;  %v5893_v15 = vmul.f32 %v4018_v58, %v5757_v42 }
 0x172   :  { %vm3009_vm14 = vweird.f32 %v4966_v51  ;;  %v3024_v16 = vmul.f32 %v3023_v30, %v5863_v8  ;;  %v3035_v0 = vmul.f32 %v3034_v1, %v5863_v8  ;;  %v1782_v46 = vmul.f32 2.1237322e-06, %v5886_v20 }
 0x173   :  { %v4583_v23 = vclamps-f32 %v1737_v45, 1.0  ;;  %v3006_v38 = vmul.f32 %v4966_v51, %v3005_v28  ;;  %v1793_v25 = vmul.f32 3.8918573e-05, %v5886_v20  ;;  %v5900_v61 = vmul.f32 %v1751_v13, %v5764_v2  ;;  %vm3010_vm15 = vmor %vm3008_vm11, %vm3009_vm14 }
 0x174   :  { %v1772_v41 = vand.u32 2147483647, %v5882_v12  ;;  %v3025_v57 = vadd.f32 0.0036580483, %v3024_v16  ;;  %v3036_v39 = vadd.f32 0.014752088, %v3035_v0  ;;  %vm1768_vm0 = vweird.f32 %v5882_v12 }
 0x175   :  { %v3987_v42 = vadd.f32 1.0, %v4583_v23  ;;  %v3007_v24 = vadd.f32 %v4966_v51, %v3006_v38  ;;  %v1783_v18 = vadd.f32 0.00028619796, %v1782_v46  ;;  %v1794_v21 = vadd.f32 0.001143296, %v1793_v25 }
 0x176   :  { %v1774_v32 = vand.u32 2147483648, %v5882_v12  ;;  %v3026_v2 = vmul.f32 %v3025_v57, %v5863_v8  ;;  %v3037_v11 = vmul.f32 %v3036_v39, %v5863_v8  ;;  %v5911_v36 = vmul.f32 0.70710677, %v5890_v40 }
 0x177   :  { %v4968_v14 = vpop.eup %4967  ;;  %v4051_v52 = vmul.f32 %v3987_v42, %v5795_v53  ;;  %v3011_v34 = vsel %vm3010_vm15, %v4966_v51, %v3007_v24  ;;  %v1784_v54 = vmul.f32 %v1783_v18, %v5886_v20  ;;  %v1795_v56 = vmul.f32 %v1794_v21, %v5886_v20 }
 0x178   :  { %v3016_v60 = vsel %vm5878_vm13, %v3015_v10, %v3011_v34  ;;  %v1764_v37 = vmul.f32 %v4968_v14, %v5882_v12  ;;  %vm5919_vm1 = vcmp.eq.f32.partialorder %v1772_v41, 8.507059e+37  ;;  %v3027_v44 = vadd.f32 0.05243302, %v3026_v2  ;;  %v4490_v2 = vld [vmem:[#allocation3 + $0x1d0] sm:$0xf] }
 0x179   :  { %v895_v55 = vadd.f32 %v894_v33, %v725_v48  ;;  %v4738_v47 = vpack.c.bf16 %v4051_v52, %v5844_v5  ;;  %v3017_v50 = vmul.f32 %v3016_v60, %v2992_v6  ;;  %v3038_v53 = vadd.f32 0.112945676, %v3037_v11  ;;  %v4362_v48 = vld [vmem:[#allocation3 + $0xd0] sm:$0xf]  ;;  %v4667_v33 = vld [vmem:[#allocation3 + $0xd4] sm:$0xf0] }
 0x17a   :  { %v1785_v3 = vadd.f32 0.0036580483, %v1784_v54  ;;  %v1765_v4 = vsub.f32 1.0, %v1764_v37  ;;  %v3028_v51 = vmul.f32 %v3027_v44, %v5863_v8  ;;  %v1796_v58 = vadd.f32 0.014752088, %v1795_v56 }
 0x17b   :  { %v3060_v10 = vmul.f32 %v5911_v36, %v5911_v36  ;;  %4882 = vst [vmem:[#allocation8 + $0x18] sm:$0xff] %v4738_v47   ;;  %v4615_v7 = vclamps-f32 %v3017_v50, 1.0  ;;  %vm1769_vm2 = vweird.f32 %v4968_v14  ;;  %v3039_v17 = vmul.f32 %v3038_v53, %v5863_v8  ;;  %v4699_v34 = vld [vmem:[#allocation3 + $0x1d4] sm:$0xf0]  ;;  %v4666_v53 = vld [vmem:[#allocation3 + $0xd4] sm:$0xf] }
 0x17c   :  { %v1786_v62 = vmul.f32 %v1785_v3, %v5886_v20  ;;  %v1766_v63 = vmul.f32 %v4968_v14, %v1765_v4  ;;  %v3029_v9 = vadd.f32 0.18741608, %v3028_v51  ;;  %v1797_v5 = vmul.f32 %v1796_v58, %v5886_v20  ;;  %vm1770_vm3 = vmor %vm1768_vm0, %vm1769_vm2  ;;  %v4364_v3 = vld [vmem:[#allocation3 + $0xd8] sm:$0xf0]  ;;  %v4698_v51 = vld [vmem:[#allocation3 + $0x1d4] sm:$0xf] }
 0x17d   :  { %v5930_v6 = vmin.f32 %v3060_v10, 16.0  ;;  %v4019_v26 = vadd.f32 1.0, %v4615_v7  ;;  %v1775_v13 = vor.u32 1.1754944e-38, %v1774_v32  ;;  %v3040_v35 = vadd.f32 0.4994258, %v3039_v17 }
 0x17e   :  { %v1787_v30 = vadd.f32 0.05243302, %v1786_v62  ;;  %v1767_v1 = vadd.f32 %v4968_v14, %v1766_v63  ;;  %v1798_v45 = vadd.f32 0.112945676, %v1797_v5  ;;  %v5934_v16 = vadd.f32 %v5616_v29, %v895_v55  ;;  %v4492_v62 = vld [vmem:[#allocation3 + $0x1d8] sm:$0xf0]  ;;  %v805_v63 = vpop.f32.mrf.mxu2 }
 0x17f   :  { %v3062_v28 = vmul.f32 2.1237322e-06, %v5930_v6  ;;  %v4083_v0 = vmul.f32 %v4019_v26, %v5798_v27  ;;  %v3030_v23 = vmul.f32 %v3029_v9, %v5863_v8  ;;  %v3041_v38 = vmul.f32 %v3040_v35, %v5863_v8  ;;  %v974_v9 = vpop.f32.mrf.mxu3 }
 0x180   :  { %v1788_v46 = vmul.f32 %v1787_v30, %v5886_v20  ;;  %v1771_v25 = vsel %vm1770_vm3, %v4968_v14, %v1767_v1  ;;  %v1799_v41 = vmul.f32 %v1798_v45, %v5886_v20  ;;  %v3073_v39 = vmul.f32 3.8918573e-05, %v5930_v6  ;;  %v896_v30 = vpop.f32.mrf.mxu1 }
 0x181   :  { %v3063_v57 = vadd.f32 0.00028619796, %v3062_v28  ;;  %v4818_v42 = vpack.c.bf16 %v4083_v0, %v5893_v15  ;;  %v1776_v27 = vsel %vm5919_vm1, %v1775_v13, %v1771_v25  ;;  %v5948_v24 = vadd.f32 1.0, %v3041_v38 }
 0x182   :  { %v1789_v12 = vadd.f32 0.18741608, %v1788_v46  ;;  %v1777_v18 = vmul.f32 %v1776_v27, %v5900_v61  ;;  %v1800_v21 = vadd.f32 0.4994258, %v1799_v41  ;;  %v3031_v32 = vadd.f32 1.1283791, %v3030_v23 }
 0x183   :  { %v3064_v8 = vmul.f32 %v3063_v57, %v5930_v6  ;;  %4898 = vst [vmem:[#allocation8 + $0x98] sm:$0xff] %v4818_v42   ;;  %4969 = vrcp.f32 %v5948_v24  ;;  %v3052_v15 = vand.u32 2147483647, %v5948_v24  ;;  %v3054_v61 = vand.u32 2147483648, %v5948_v24 }
 0x184   :  { %v1790_v11 = vmul.f32 %v1789_v12, %v5886_v20  ;;  %v1801_v14 = vmul.f32 %v1800_v21, %v5886_v20  ;;  %v3074_v54 = vadd.f32 0.001143296, %v3073_v39  ;;  %v5958_v56 = vmul.f32 0.70710677, %v5934_v16 }
 0x185   :  { %v3065_v52 = vadd.f32 0.0036580483, %v3064_v8  ;;  %v4584_v60 = vclamps-f32 %v1777_v18, 1.0  ;;  %v4363_v20 = vor.u32 %v4667_v33, %v4362_v48  ;;  %v4491_v50 = vor.u32 %v4699_v34, %v4490_v2 }
 0x186   :  { %v1791_v37 = vadd.f32 1.1283791, %v1790_v11  ;;  %v5960_v43 = vadd.f32 1.0, %v1801_v14  ;;  %v3075_v55 = vmul.f32 %v3074_v54, %v5930_v6  ;;  %v1820_v47 = vmul.f32 %v5958_v56, %v5958_v56 }
 0x187   :  { %v3066_v44 = vmul.f32 %v3065_v52, %v5930_v6  ;;  %v5967_v4 = vmul.f32 0.5, %v5750_v19  ;;  %v3032_v10 = vmul.f32 %v3031_v32, %v5841_v31  ;;  %vm3048_vm4 = vweird.f32 %v5948_v24  ;;  %764 = vmatmul.bf16.gmra.mxu0 %v4363_v20  ;;  %844 = vmatmul.bf16.gmra.mxu2 %v4491_v50  ;;  %v727_v31 = vpop.f32.mrf.mxu0 }
 0x188   :  { %4971 = vrcp.f32 %v5960_v43  ;;  %v5972_v17 = vmin.f32 %v1820_v47, 16.0  ;;  %vm5975_vm5 = vcmp.eq.f32.partialorder %v3052_v15, 8.507059e+37  ;;  %v3055_v26 = vor.u32 1.1754944e-38, %v3054_v61 }
 0x189   :  { %v4970_v58 = vpop.eup %4969  ;;  %v3067_v7 = vadd.f32 0.05243302, %v3066_v44  ;;  %v3076_v13 = vadd.f32 0.014752088, %v3075_v55  ;;  %v4367_v35 = vor.u32 %v4666_v53, %v4364_v3  ;;  %v5979_v1 = vadd.f32 1.0, %v4584_v60 }
 0x18a   :  { %v3044_v5 = vmul.f32 %v4970_v58, %v5948_v24  ;;  %v5982_v45 = vmul.f32 %v1791_v37, %v5866_v59  ;;  %v1822_v0 = vmul.f32 2.1237322e-06, %v5972_v17  ;;  %v1833_v46 = vmul.f32 3.8918573e-05, %v5972_v17 }
 0x18b   :  { %v3068_v28 = vmul.f32 %v3067_v7, %v5930_v6  ;;  %v3077_v38 = vmul.f32 %v3076_v13, %v5930_v6  ;;  %933 = vmatmul.bf16.gmra.mxu1 %v4367_v35  ;;  %v4495_v25 = vor.u32 %v4698_v51, %v4492_v62  ;;  %vm1808_vm6 = vweird.f32 %v5960_v43  ;;  %v807_v62 = vpop.f32.mrf.mxu2 }
 0x18c   :  { %v3045_v23 = vsub.f32 1.0, %v3044_v5  ;;  %v1812_v41 = vand.u32 2147483647, %v5960_v43  ;;  %v1823_v57 = vadd.f32 0.00028619796, %v1822_v0  ;;  %v975_v39 = vadd.f32 %v974_v9, %v805_v63  ;;  %v976_v63 = vpop.f32.mrf.mxu3 }
 0x18d   :  { %v897_v42 = vadd.f32 %v896_v30, %v727_v31  ;;  %vm3049_vm7 = vweird.f32 %v4970_v58  ;;  %v3078_v12 = vadd.f32 0.112945676, %v3077_v38  ;;  %v1834_v18 = vadd.f32 0.001143296, %v1833_v46  ;;  %1013 = vmatmul.bf16.gmra.mxu3 %v4495_v25 }
 0x18e   :  { %v4972_v59 = vpop.eup %4971  ;;  %v3046_v27 = vmul.f32 %v4970_v58, %v3045_v23  ;;  %v1814_v8 = vand.u32 2147483648, %v5960_v43  ;;  %v3069_v48 = vadd.f32 0.18741608, %v3068_v28  ;;  %v1824_v33 = vmul.f32 %v1823_v57, %v5972_v17  ;;  %vm3050_vm8 = vmor %vm3048_vm4, %vm3049_vm7 }
 0x18f   :  { %v1804_v21 = vmul.f32 %v4972_v59, %v5960_v43  ;;  %v3079_v2 = vmul.f32 %v3078_v12, %v5930_v6  ;;  %v1835_v15 = vmul.f32 %v1834_v18, %v5972_v17  ;;  %v5996_v11 = vadd.f32 %v5616_v29, %v975_v39 }
 0x190   :  { %v3047_v32 = vadd.f32 %v4970_v58, %v3046_v27  ;;  %vm6000_vm9 = vcmp.eq.f32.partialorder %v1812_v41, 8.507059e+37  ;;  %v1825_v34 = vadd.f32 0.0036580483, %v1824_v33  ;;  %v6005_v61 = vadd.f32 %v5616_v29, %v897_v42 }
 0x191   :  { %v1805_v14 = vsub.f32 1.0, %v1804_v21  ;;  %vm1809_vm10 = vweird.f32 %v4972_v59  ;;  %v3080_v60 = vadd.f32 0.4994258, %v3079_v2  ;;  %v1836_v37 = vadd.f32 0.014752088, %v1835_v15 }
 0x192   :  { %v3051_v54 = vsel %vm3050_vm8, %v4970_v58, %v3047_v32  ;;  %v3070_v24 = vmul.f32 %v3069_v48, %v5930_v6  ;;  %v1826_v47 = vmul.f32 %v1825_v34, %v5972_v17  ;;  %v6014_v29 = vmul.f32 0.70710677, %v5996_v11  ;;  %vm1810_vm11 = vmor %vm1808_vm6, %vm1809_vm10  ;;  %v730_v34 = vpop.f32.mrf.mxu0 }
 0x193   :  { %v3056_v44 = vsel %vm5975_vm5, %v3055_v26, %v3051_v54  ;;  %v1806_v55 = vmul.f32 %v4972_v59, %v1805_v14  ;;  %v3081_v50 = vmul.f32 %v3080_v60, %v5930_v6  ;;  %v1837_v53 = vmul.f32 %v1836_v37, %v5972_v17  ;;  %v899_v54 = vpop.f32.mrf.mxu1 }
 0x194   :  { %v3057_v20 = vmul.f32 %v3056_v44, %v3032_v10  ;;  %v1815_v51 = vor.u32 1.1754944e-38, %v1814_v8  ;;  %v1827_v58 = vadd.f32 0.05243302, %v1826_v47  ;;  %v6017_v7 = vmul.f32 0.70710677, %v6005_v61 }
 0x195   :  { %v1807_v3 = vadd.f32 %v4972_v59, %v1806_v55  ;;  %v6022_v10 = vadd.f32 1.0, %v3081_v50  ;;  %v1838_v6 = vadd.f32 0.112945676, %v1837_v53  ;;  %v3100_v5 = vmul.f32 %v6014_v29, %v6014_v29 }
 0x196   :  { %v4616_v9 = vclamps-f32 %v3057_v20, 1.0  ;;  %v3071_v26 = vadd.f32 1.1283791, %v3070_v24  ;;  %v1828_v13 = vmul.f32 %v1827_v58, %v5972_v17  ;;  %v1860_v35 = vmul.f32 %v6017_v7, %v6017_v7 }
 0x197   :  { %v1811_v19 = vsel %vm1810_vm11, %v4972_v59, %v1807_v3  ;;  %v1332_v31 = vmul.f32 0.5, %v5832_v49  ;;  %4973 = vrcp.f32 %v6022_v10  ;;  %v977_v43 = vadd.f32 %v976_v63, %v807_v62  ;;  %v4370_v3 = vld [vmem:[#allocation3 + $0xe0] sm:$0xf] }
 0x198   :  { %v1816_v30 = vsel %vm6000_vm9, %v1815_v51, %v1811_v19  ;;  %v4020_v28 = vadd.f32 1.0, %v4616_v9  ;;  %v1301_v0 = vmul.f32 0.5, %v5858_v22  ;;  %v6036_v38 = vmul.f32 0.5, %v5890_v40  ;;  %v4669_v51 = vld [vmem:[#allocation3 + $0xe4] sm:$0xf0] }
 0x199   :  { %v1817_v23 = vmul.f32 %v1816_v30, %v5982_v45  ;;  %v4052_v46 = vmul.f32 %v5979_v1, %v5967_v4  ;;  %v1839_v25 = vmul.f32 %v1838_v6, %v5972_v17  ;;  %v6041_v49 = vmin.f32 %v3100_v5, 16.0  ;;  %v6054_v4 = vld [vmem:[%s7689_s2] ss:$0 sm:$0xff] }
 0x19a   :  { %v6043_v41 = vmin.f32 %v1860_v35, 16.0  ;;  %v6046_v39 = vmul.f32 %v3071_v26, %v5911_v36  ;;  %v3092_v22 = vand.u32 2147483647, %v6022_v10  ;;  %v1829_v42 = vadd.f32 0.18741608, %v1828_v13 }
 0x19b   :  { %v4585_v57 = vclamps-f32 %v1817_v23, 1.0  ;;  %v1840_v45 = vadd.f32 0.4994258, %v1839_v25  ;;  %v3102_v40 = vmul.f32 2.1237322e-06, %v6041_v49  ;;  %v6057_v1 = vadd.f32 %v6054_v4, %v977_v43 }
 0x19c   :  { %v3113_v59 = vmul.f32 3.8918573e-05, %v6041_v49  ;;  %v6059_v27 = vmul.f32 %v4020_v28, %v1332_v31  ;;  %vm3088_vm12 = vweird.f32 %v6022_v10  ;;  %v3094_v12 = vand.u32 2147483648, %v6022_v10 }
 0x19d   :  { %v3989_v36 = vadd.f32 1.0, %v4585_v57  ;;  %v1862_v18 = vmul.f32 2.1237322e-06, %v6043_v41  ;;  %v4974_v21 = vpop.eup %4973  ;;  %v1841_v8 = vmul.f32 %v1840_v45, %v5972_v17  ;;  %v3103_v48 = vadd.f32 0.00028619796, %v3102_v40 }
 0x19e   :  { %v3114_v33 = vadd.f32 0.001143296, %v3113_v59  ;;  %v1873_v32 = vmul.f32 3.8918573e-05, %v6043_v41  ;;  %v3084_v15 = vmul.f32 %v4974_v21, %v6022_v10  ;;  %vm6067_vm13 = vcmp.eq.f32.partialorder %v3092_v22, 8.507059e+37 }
 0x19f   :  { %v4053_v2 = vmul.f32 %v3989_v36, %v1301_v0  ;;  %v1830_v52 = vmul.f32 %v1829_v42, %v5972_v17  ;;  %v6072_v60 = vadd.f32 1.0, %v1841_v8  ;;  %v3104_v37 = vmul.f32 %v3103_v48, %v6041_v49 }
 0x1a0   :  { %v3115_v44 = vmul.f32 %v3114_v33, %v6041_v49  ;;  %v1863_v55 = vadd.f32 0.00028619796, %v1862_v18  ;;  %v3085_v47 = vsub.f32 1.0, %v3084_v15  ;;  %v1874_v20 = vadd.f32 0.001143296, %v1873_v32 }
 0x1a1   :  { %v4743_v24 = vpack.c.bf16 %v4053_v2, %v4052_v46  ;;  %v6077_v50 = vmul.f32 0.70710677, %v6057_v1  ;;  %vm3089_vm14 = vweird.f32 %v4974_v21  ;;  %v3095_v53 = vor.u32 1.1754944e-38, %v3094_v12 }
 0x1a2   :  { %4975 = vrcp.f32 %v6072_v60  ;;  %v6080_v17 = vadd.f32 %v899_v54, %v730_v34  ;;  %v3086_v58 = vmul.f32 %v4974_v21, %v3085_v47  ;;  %v3105_v62 = vadd.f32 0.0036580483, %v3104_v37  ;;  %vm3090_vm15 = vmor %vm3088_vm12, %vm3089_vm14 }
 0x1a3   :  { %4883 = vst [vmem:[#allocation8 + $0x20] sm:$0xff] %v4743_v24   ;;  %v3116_v63 = vadd.f32 0.014752088, %v3115_v44  ;;  %v1864_v9 = vmul.f32 %v1863_v55, %v6043_v41  ;;  %v1831_v6 = vadd.f32 1.1283791, %v1830_v52  ;;  %v1875_v19 = vmul.f32 %v1874_v20, %v6043_v41 }
 0x1a4   :  { %v1852_v5 = vand.u32 2147483647, %v6072_v60  ;;  %v3140_v26 = vmul.f32 %v6077_v50, %v6077_v50  ;;  %v3087_v13 = vadd.f32 %v4974_v21, %v3086_v58  ;;  %v3106_v35 = vmul.f32 %v3105_v62, %v6041_v49 }
 0x1a5   :  { %v3117_v31 = vmul.f32 %v3116_v63, %v6041_v49  ;;  %v1865_v30 = vadd.f32 0.0036580483, %v1864_v9  ;;  %v1854_v43 = vand.u32 2147483648, %v6072_v60  ;;  %v1876_v28 = vadd.f32 0.014752088, %v1875_v19 }
 0x1a6   :  { %v6093_v0 = vmin.f32 %v3140_v26, 16.0  ;;  %v4371_v23 = vor.u32 %v4669_v51, %v4370_v3  ;;  %v3091_v46 = vsel %vm3090_vm15, %v4974_v21, %v3087_v13  ;;  %vm1848_vm0 = vweird.f32 %v6072_v60 }
 0x1a7   :  { %v3107_v25 = vadd.f32 0.05243302, %v3106_v35  ;;  %v3118_v57 = vadd.f32 0.112945676, %v3117_v31  ;;  %v1866_v22 = vmul.f32 %v1865_v30, %v6043_v41  ;;  %v3096_v45 = vsel %vm6067_vm13, %v3095_v53, %v3091_v46 }
 0x1a8   :  { %v4976_v42 = vpop.eup %4975  ;;  %v1877_v10 = vmul.f32 %v1876_v28, %v6043_v41  ;;  %v3142_v40 = vmul.f32 2.1237322e-06, %v6093_v0  ;;  %v3153_v59 = vmul.f32 3.8918573e-05, %v6093_v0  ;;  %769 = vmatmul.bf16.gmra.mxu0 %v4371_v23  ;;  %v3097_v36 = vmul.f32 %v3096_v45, %v6046_v39  ;;  %v4498_v28 = vld [vmem:[#allocation3 + $0x1e0] sm:$0xf] }
 0x1a9   :  { %v1844_v12 = vmul.f32 %v4976_v42, %v6072_v60  ;;  %vm1849_vm1 = vweird.f32 %v4976_v42  ;;  %v3108_v18 = vmul.f32 %v3107_v25, %v6041_v49  ;;  %v3119_v21 = vmul.f32 %v3118_v57, %v6041_v49  ;;  %v4668_v25 = vld [vmem:[#allocation3 + $0xe4] sm:$0xf] }
 0x1aa   :  { %v1867_v8 = vadd.f32 0.05243302, %v1866_v22  ;;  %v1878_v48 = vadd.f32 0.112945676, %v1877_v10  ;;  %v3143_v33 = vadd.f32 0.00028619796, %v3142_v40  ;;  %vm1850_vm3 = vmor %vm1848_vm0, %vm1849_vm1  ;;  %v810_v40 = vpop.f32.mrf.mxu2 }
 0x1ab   :  { %v4617_v32 = vclamps-f32 %v3097_v36, 1.0  ;;  %v1845_v2 = vsub.f32 1.0, %v1844_v12  ;;  %v3109_v15 = vadd.f32 0.18741608, %v3108_v18  ;;  %v3154_v14 = vadd.f32 0.001143296, %v3153_v59  ;;  %v979_v59 = vpop.f32.mrf.mxu3 }
 0x1ac   :  { %v3120_v52 = vadd.f32 0.4994258, %v3119_v21  ;;  %v1868_v34 = vmul.f32 %v1867_v8, %v6043_v41  ;;  %v1879_v54 = vmul.f32 %v1878_v48, %v6043_v41  ;;  %v3144_v39 = vmul.f32 %v3143_v33, %v6093_v0  ;;  %v4700_v10 = vld [vmem:[#allocation3 + $0x1e4] sm:$0xf]  ;;  %v4500_v21 = vld [vmem:[#allocation3 + $0x1e8] sm:$0xf0] }
 0x1ad   :  { %v4021_v37 = vadd.f32 1.0, %v4617_v32  ;;  %v1846_v44 = vmul.f32 %v4976_v42, %v1845_v2  ;;  %v3110_v55 = vmul.f32 %v3109_v15, %v6041_v49  ;;  %v3155_v24 = vmul.f32 %v3154_v14, %v6093_v0  ;;  %v732_v15 = vpop.f32.mrf.mxu0  ;;  %v901_v14 = vpop.f32.mrf.mxu1 }
 0x1ae   :  { %v3121_v47 = vmul.f32 %v3120_v52, %v6041_v49  ;;  %v1869_v20 = vadd.f32 0.18741608, %v1868_v34  ;;  %v1880_v53 = vadd.f32 0.4994258, %v1879_v54  ;;  %v3145_v3 = vadd.f32 0.0036580483, %v3144_v39 }
 0x1af   :  { %v4085_v51 = vmul.f32 %v4021_v37, %v6036_v38  ;;  %v1847_v58 = vadd.f32 %v4976_v42, %v1846_v44  ;;  %vm1853_vm2 = vcmp.eq.f32.partialorder %v1852_v5, 8.507059e+37  ;;  %v3156_v62 = vadd.f32 0.014752088, %v3155_v24 }
 0x1b0   :  { %v1855_v63 = vor.u32 1.1754944e-38, %v1854_v43  ;;  %v6116_v9 = vadd.f32 1.0, %v3121_v47  ;;  %v1881_v19 = vmul.f32 %v1880_v53, %v6043_v41  ;;  %v3146_v26 = vmul.f32 %v3145_v3, %v6093_v0 }
 0x1b1   :  { %v4823_v49 = vpack.c.bf16 %v4085_v51, %v6059_v27  ;;  %v1851_v13 = vsel %vm1850_vm3, %v4976_v42, %v1847_v58  ;;  %v1870_v35 = vmul.f32 %v1869_v20, %v6043_v41  ;;  %v3157_v38 = vmul.f32 %v3156_v62, %v6093_v0  ;;  %v4701_v27 = vld [vmem:[#allocation3 + $0x1e4] sm:$0xf0] }
 0x1b2   :  { %v1832_v5 = vmul.f32 %v1831_v6, %v5958_v56  ;;  %v1856_v31 = vsel %vm1853_vm2, %v1855_v63, %v1851_v13  ;;  %v3111_v30 = vadd.f32 1.1283791, %v3110_v55  ;;  %4977 = vrcp.f32 %v6116_v9  ;;  %v4372_v6 = vld [vmem:[#allocation3 + $0xe8] sm:$0xf0] }
 0x1b3   :  { %4899 = vst [vmem:[#allocation8 + $0xa0] sm:$0xff] %v4823_v49   ;;  %v6125_v60 = vadd.f32 1.0, %v1881_v19  ;;  %v6129_v43 = vadd.f32 %v6054_v4, %v6080_v17  ;;  %v3147_v46 = vadd.f32 0.05243302, %v3146_v26  ;;  %v3158_v41 = vadd.f32 0.112945676, %v3157_v38 }
 0x1b4   :  { %v1857_v23 = vmul.f32 %v1856_v31, %v1832_v5  ;;  %v3134_v57 = vand.u32 2147483648, %v6116_v9  ;;  %v1871_v56 = vadd.f32 1.1283791, %v1870_v35  ;;  %v6134_v22 = vmul.f32 0.5, %v5934_v16 }
 0x1b5   :  { %4979 = vrcp.f32 %v6125_v60  ;;  %v6137_v42 = vmul.f32 0.5, %v5996_v11  ;;  %v6140_v17 = vmul.f32 %v3111_v30, %v6014_v29  ;;  %v6143_v45 = vmul.f32 0.5, %v6005_v61 }
 0x1b6   :  { %v3132_v36 = vand.u32 2147483647, %v6116_v9  ;;  %v3159_v12 = vmul.f32 %v3158_v41, %v6093_v0  ;;  %v6148_v18 = vmul.f32 0.70710677, %v6129_v43  ;;  %v4499_v16 = vor.u32 %v4701_v27, %v4498_v28  ;;  %v812_v27 = vpop.f32.mrf.mxu2 }
 0x1b7   :  { %v4586_v8 = vclamps-f32 %v1857_v23, 1.0  ;;  %vm3128_vm4 = vweird.f32 %v6116_v9  ;;  %v3148_v29 = vmul.f32 %v3147_v46, %v6093_v0  ;;  %v4375_v61 = vor.u32 %v4668_v25, %v4372_v6  ;;  %v981_v23 = vpop.f32.mrf.mxu3 }
 0x1b8   :  { %v4978_v11 = vpop.eup %4977  ;;  %v3135_v33 = vor.u32 1.1754944e-38, %v3134_v57  ;;  %v1872_v32 = vmul.f32 %v1871_v56, %v6017_v7  ;;  %v3160_v2 = vadd.f32 0.4994258, %v3159_v12  ;;  %849 = vmatmul.bf16.gmra.mxu2 %v4499_v16  ;;  %vm1888_vm5 = vweird.f32 %v6125_v60 }
 0x1b9   :  { %v3124_v48 = vmul.f32 %v4978_v11, %v6116_v9  ;;  %v1900_v52 = vmul.f32 %v6148_v18, %v6148_v18  ;;  %938 = vmatmul.bf16.gmra.mxu1 %v4375_v61  ;;  %v4503_v34 = vor.u32 %v4700_v10, %v4500_v21  ;;  %v980_v54 = vadd.f32 %v979_v59, %v810_v40 }
 0x1ba   :  { %vm6157_vm6 = vcmp.eq.f32.partialorder %v3132_v36, 8.507059e+37  ;;  %v1892_v7 = vand.u32 2147483647, %v6125_v60  ;;  %v1894_v55 = vand.u32 2147483648, %v6125_v60  ;;  %v3161_v24 = vmul.f32 %v3160_v2, %v6093_v0 }
 0x1bb   :  { %v4980_v39 = vpop.eup %4979  ;;  %v3125_v37 = vsub.f32 1.0, %v3124_v48  ;;  %v3149_v20 = vadd.f32 0.18741608, %v3148_v29  ;;  %v6165_v53 = vmin.f32 %v1900_v52, 16.0  ;;  %1018 = vmatmul.bf16.gmra.mxu3 %v4503_v34  ;;  %v902_v3 = vadd.f32 %v901_v14, %v732_v15 }
 0x1bc   :  { %v1884_v47 = vmul.f32 %v4980_v39, %v6125_v60  ;;  %vm3129_vm7 = vweird.f32 %v4978_v11  ;;  %v6167_v58 = vadd.f32 1.0, %v3161_v24  ;;  %v6170_v62 = vadd.f32 %v6054_v4, %v980_v54 }
 0x1bd   :  { %v3126_v51 = vmul.f32 %v4978_v11, %v3125_v37  ;;  %v3990_v63 = vadd.f32 1.0, %v4586_v8  ;;  %v1902_v26 = vmul.f32 2.1237322e-06, %v6165_v53  ;;  %v1913_v49 = vmul.f32 3.8918573e-05, %v6165_v53  ;;  %vm6181_vm10 = vmor %vm3128_vm4, %vm3129_vm7 }
 0x1be   :  { %v1885_v19 = vsub.f32 1.0, %v1884_v47  ;;  %vm1889_vm8 = vweird.f32 %v4980_v39  ;;  %vm6174_vm9 = vcmp.eq.f32.partialorder %v1892_v7, 8.507059e+37  ;;  %4981 = vrcp.f32 %v6167_v58 }
 0x1bf   :  { %v3127_v13 = vadd.f32 %v4978_v11, %v3126_v51  ;;  %v1903_v31 = vadd.f32 0.00028619796, %v1902_v26  ;;  %v1914_v30 = vadd.f32 0.001143296, %v1913_v49  ;;  %v6186_v28 = vadd.f32 %v6054_v4, %v902_v3  ;;  %vm1890_vm11 = vmor %vm1888_vm5, %vm1889_vm8  ;;  %v735_v49 = vpop.f32.mrf.mxu0 }
 0x1c0   :  { %v1886_v5 = vmul.f32 %v4980_v39, %v1885_v19  ;;  %v1895_v41 = vor.u32 1.1754944e-38, %v1894_v55  ;;  %v3150_v25 = vmul.f32 %v3149_v20, %v6093_v0  ;;  %v6192_v9 = vmul.f32 0.70710677, %v6170_v62 }
 0x1c1   :  { %v3131_v46 = vsel %vm6181_vm10, %v4978_v11, %v3127_v13  ;;  %v3172_v56 = vand.u32 2147483647, %v6167_v58  ;;  %v3174_v6 = vand.u32 2147483648, %v6167_v58  ;;  %v1904_v10 = vmul.f32 %v1903_v31, %v6165_v53  ;;  %v904_v13 = vpop.f32.mrf.mxu1 }
 0x1c2   :  { %v1887_v57 = vadd.f32 %v4980_v39, %v1886_v5  ;;  %v4054_v40 = vmul.f32 %v3990_v63, %v6134_v22  ;;  %v1915_v59 = vmul.f32 %v1914_v30, %v6165_v53  ;;  %v3180_v0 = vmul.f32 %v6192_v9, %v6192_v9 }
 0x1c3   :  { %v982_v36 = vadd.f32 %v981_v23, %v812_v27  ;;  %v3136_v12 = vsel %vm6157_vm6, %v3135_v33, %v3131_v46  ;;  %v1905_v21 = vadd.f32 0.0036580483, %v1904_v10  ;;  %v6207_v11 = vmul.f32 0.70710677, %v6186_v28 }
 0x1c4   :  { %v1891_v16 = vsel %vm1890_vm11, %v4980_v39, %v1887_v57  ;;  %v4982_v8 = vpop.eup %4981  ;;  %v3151_v60 = vadd.f32 1.1283791, %v3150_v25  ;;  %v1916_v29 = vadd.f32 0.014752088, %v1915_v59  ;;  %v6211_v61 = vmin.f32 %v3180_v0, 16.0 }
 0x1c5   :  { %v1896_v22 = vsel %vm6174_vm9, %v1895_v41, %v1891_v16  ;;  %v3164_v2 = vmul.f32 %v4982_v8, %v6167_v58  ;;  %vm6214_vm12 = vcmp.eq.f32.partialorder %v3172_v56, 8.507059e+37  ;;  %v3175_v33 = vor.u32 1.1754944e-38, %v3174_v6 }
 0x1c6   :  { %v1897_v48 = vmul.f32 %v1896_v22, %v1872_v32  ;;  %v1906_v14 = vmul.f32 %v1905_v21, %v6165_v53  ;;  %v3137_v52 = vmul.f32 %v3136_v12, %v6140_v17  ;;  %v1917_v34 = vmul.f32 %v1916_v29, %v6165_v53 }
 0x1c7   :  { %v3182_v54 = vmul.f32 2.1237322e-06, %v6211_v61  ;;  %v3193_v39 = vmul.f32 3.8918573e-05, %v6211_v61  ;;  %v3165_v44 = vsub.f32 1.0, %v3164_v2  ;;  %v1940_v7 = vmul.f32 %v6207_v11, %v6207_v11 }
 0x1c8   :  { %v4587_v37 = vclamps-f32 %v1897_v48, 1.0  ;;  %v1907_v32 = vadd.f32 0.05243302, %v1906_v14  ;;  %vm3168_vm13 = vweird.f32 %v6167_v58  ;;  %v1918_v55 = vadd.f32 0.112945676, %v1917_v34 }
 0x1c9   :  { %v3183_v24 = vadd.f32 0.00028619796, %v3182_v54  ;;  %v3194_v47 = vadd.f32 0.001143296, %v3193_v39  ;;  %v3166_v3 = vmul.f32 %v4982_v8, %v3165_v44  ;;  %vm3169_vm14 = vweird.f32 %v4982_v8  ;;  %v4378_v54 = vld [vmem:[#allocation3 + $0xf0] sm:$0xf] }
 0x1ca   :  { %v3991_v20 = vadd.f32 1.0, %v4587_v37  ;;  %v6226_v17 = vmin.f32 %v1940_v7, 16.0  ;;  %v4618_v51 = vclamps-f32 %v3137_v52, 1.0  ;;  %v1919_v63 = vmul.f32 %v1918_v55, %v6165_v53  ;;  %vm3170_vm15 = vmor %vm3168_vm13, %vm3169_vm14  ;;  %v4671_v44 = vld [vmem:[#allocation3 + $0xf4] sm:$0xf0] }
 0x1cb   :  { %v3184_v19 = vmul.f32 %v3183_v24, %v6211_v61  ;;  %v3195_v26 = vmul.f32 %v3194_v47, %v6211_v61  ;;  %v3167_v38 = vadd.f32 %v4982_v8, %v3166_v3  ;;  %v1908_v5 = vmul.f32 %v1907_v32, %v6165_v53  ;;  %v4506_v24 = vld [vmem:[#allocation3 + $0x1f0] sm:$0xf] }
 0x1cc   :  { %v4055_v35 = vmul.f32 %v3991_v20, %v6143_v45  ;;  %v1942_v31 = vmul.f32 2.1237322e-06, %v6226_v17  ;;  %v3152_v30 = vmul.f32 %v3151_v60, %v6077_v50  ;;  %v1920_v27 = vadd.f32 0.4994258, %v1919_v63 }
 0x1cd   :  { %v3185_v23 = vadd.f32 0.0036580483, %v3184_v19  ;;  %v3196_v46 = vadd.f32 0.014752088, %v3195_v26  ;;  %v3171_v25 = vsel %vm3170_vm15, %v4982_v8, %v3167_v38  ;;  %v905_v56 = vadd.f32 %v904_v13, %v735_v49  ;;  %v4703_v26 = vld [vmem:[#allocation3 + $0x1f4] sm:$0xf0] }
 0x1ce   :  { %v4748_v41 = vpack.c.bf16 %v4055_v35, %v4054_v40  ;;  %v1943_v57 = vadd.f32 0.00028619796, %v1942_v31  ;;  %v3176_v45 = vsel %vm6214_vm12, %v3175_v33, %v3171_v25  ;;  %v1921_v6 = vmul.f32 %v1920_v27, %v6165_v53 }
 0x1cf   :  { %v3186_v10 = vmul.f32 %v3185_v23, %v6211_v61  ;;  %v3197_v59 = vmul.f32 %v3196_v46, %v6211_v61  ;;  %v3177_v50 = vmul.f32 %v3176_v45, %v3152_v30  ;;  %v1909_v58 = vadd.f32 0.18741608, %v1908_v5 }
 0x1d0   :  { %4884 = vst [vmem:[#allocation8 + $0x28] sm:$0xff] %v4748_v41   ;;  %v1944_v0 = vmul.f32 %v1943_v57, %v6226_v17  ;;  %v1953_v12 = vmul.f32 3.8918573e-05, %v6226_v17  ;;  %v6244_v40 = vadd.f32 1.0, %v1921_v6  ;;  %v1273_v8 = vadd.f32 %v6054_v4, %v982_v36 }
 0x1d1   :  { %v3187_v16 = vadd.f32 0.05243302, %v3186_v10  ;;  %v3198_v21 = vadd.f32 0.112945676, %v3197_v59  ;;  %v4022_v22 = vadd.f32 1.0, %v4618_v51  ;;  %v4619_v60 = vclamps-f32 %v3177_v50, 1.0 }
 0x1d2   :  { %v1945_v29 = vadd.f32 0.0036580483, %v1944_v0  ;;  %v1954_v48 = vadd.f32 0.001143296, %v1953_v12  ;;  %v1335_v2 = vmul.f32 0.5, %v6057_v1  ;;  %v6249_v15 = vmul.f32 0.5, %v6129_v43 }
 0x1d3   :  { %4983 = vrcp.f32 %v6244_v40  ;;  %v6253_v33 = vadd.f32 %v6054_v4, %v905_v56  ;;  %v4023_v14 = vadd.f32 1.0, %v4619_v60  ;;  %v1910_v52 = vmul.f32 %v1909_v58, %v6165_v53  ;;  %v4380_v59 = vld [vmem:[#allocation3 + $0xf8] sm:$0xf0] }
 0x1d4   :  { %v3188_v34 = vmul.f32 %v3187_v16, %v6211_v61  ;;  %v3199_v36 = vmul.f32 %v3198_v21, %v6211_v61  ;;  %v6259_v39 = vmul.f32 0.5, %v6170_v62  ;;  %v1946_v1 = vmul.f32 %v1945_v29, %v6226_v17 }
 0x1d5   :  { %v1955_v43 = vmul.f32 %v1954_v48, %v6226_v17  ;;  %v6263_v37 = vmul.f32 0.70710677, %v1273_v8  ;;  %v4086_v32 = vmul.f32 %v4022_v22, %v6137_v42  ;;  %v4087_v7 = vmul.f32 %v4023_v14, %v1335_v2 }
 0x1d6   :  { %v3200_v55 = vadd.f32 0.4994258, %v3199_v36  ;;  %v6267_v53 = vmul.f32 0.5, %v6186_v28  ;;  %v3189_v47 = vadd.f32 0.18741608, %v3188_v34  ;;  %v4379_v38 = vor.u32 %v4671_v44, %v4378_v54 }
 0x1d7   :  { %v1956_v20 = vadd.f32 0.014752088, %v1955_v43  ;;  %v3220_v62 = vmul.f32 %v6263_v37, %v6263_v37  ;;  %v6272_v3 = vmul.f32 0.70710677, %v6253_v33  ;;  %v4828_v51 = vpack.c.bf16 %v4087_v7, %v4086_v32 }
 0x1d8   :  { %v1911_v63 = vadd.f32 1.1283791, %v1910_v52  ;;  %v1932_v19 = vand.u32 2147483647, %v6244_v40  ;;  %v3201_v42 = vmul.f32 %v3200_v55, %v6211_v61  ;;  %v1947_v13 = vadd.f32 0.05243302, %v1946_v1  ;;  %774 = vmatmul.bf16.gmra.mxu0 %v4379_v38 }
 0x1d9   :  { %v4984_v49 = vpop.eup %4983  ;;  %v1957_v28 = vmul.f32 %v1956_v20, %v6226_v17  ;;  %v6277_v35 = vmin.f32 %v3220_v62, 16.0  ;;  %4900 = vst [vmem:[#allocation8 + $0xa8] sm:$0xff] %v4828_v51   ;;  %v1934_v31 = vand.u32 2147483648, %v6244_v40  ;;  %v1980_v27 = vmul.f32 %v6272_v3, %v6272_v3 }
 0x1da   :  { %v1924_v5 = vmul.f32 %v4984_v49, %v6244_v40  ;;  %v6281_v30 = vadd.f32 1.0, %v3201_v42  ;;  %v3190_v23 = vmul.f32 %v3189_v47, %v6211_v61  ;;  %v4507_v25 = vor.u32 %v4703_v26, %v4506_v24  ;;  %v4670_v61 = vld [vmem:[#allocation3 + $0xf4] sm:$0xf] }
 0x1db   :  { %v1958_v46 = vadd.f32 0.112945676, %v1957_v28  ;;  %v3222_v41 = vmul.f32 2.1237322e-06, %v6277_v35  ;;  %v1912_v57 = vmul.f32 %v1911_v63, %v6148_v18  ;;  %v6289_v45 = vmul.f32 0.5, %v1273_v8 }
 0x1dc   :  { %v1925_v56 = vsub.f32 1.0, %v1924_v5  ;;  %4985 = vrcp.f32 %v6281_v30  ;;  %vm1928_vm0 = vweird.f32 %v6244_v40  ;;  %vm1929_vm1 = vweird.f32 %v4984_v49  ;;  %854 = vmatmul.bf16.gmra.mxu2 %v4507_v25  ;;  %v4508_v28 = vld [vmem:[#allocation3 + $0x1f8] sm:$0xf0] }
 0x1dd   :  { %v1948_v6 = vmul.f32 %v1947_v13, %v6226_v17  ;;  %v1959_v10 = vmul.f32 %v1958_v46, %v6226_v17  ;;  %v3223_v58 = vadd.f32 0.00028619796, %v3222_v41  ;;  %v3233_v0 = vmul.f32 3.8918573e-05, %v6277_v35  ;;  %vm1930_vm3 = vmor %vm1928_vm0, %vm1929_vm1  ;;  %v4702_v13 = vld [vmem:[#allocation3 + $0x1f4] sm:$0xf] }
 0x1de   :  { %v1926_v50 = vmul.f32 %v4984_v49, %v1925_v56  ;;  %v6295_v18 = vmin.f32 %v1980_v27, 16.0  ;;  %vm6297_vm2 = vcmp.eq.f32.partialorder %v1932_v19, 8.507059e+37  ;;  %v1935_v16 = vor.u32 1.1754944e-38, %v1934_v31  ;;  %v815_v27 = vpop.f32.mrf.mxu2 }
 0x1df   :  { %v3191_v21 = vadd.f32 1.1283791, %v3190_v23  ;;  %v1960_v8 = vadd.f32 0.4994258, %v1959_v10  ;;  %v3224_v60 = vmul.f32 %v3223_v58, %v6277_v35  ;;  %v3234_v29 = vadd.f32 0.001143296, %v3233_v0  ;;  %v984_v23 = vpop.f32.mrf.mxu3 }
 0x1e0   :  { %v1927_v22 = vadd.f32 %v4984_v49, %v1926_v50  ;;  %v1982_v48 = vmul.f32 2.1237322e-06, %v6295_v18  ;;  %v3212_v2 = vand.u32 2147483647, %v6281_v30  ;;  %v1949_v14 = vadd.f32 0.18741608, %v1948_v6 }
 0x1e1   :  { %v1961_v52 = vmul.f32 %v1960_v8, %v6226_v17  ;;  %v4383_v34 = vor.u32 %v4670_v61, %v4380_v59  ;;  %v3225_v1 = vadd.f32 0.0036580483, %v3224_v60  ;;  %v3235_v43 = vmul.f32 %v3234_v29, %v6277_v35 }
 0x1e2   :  { %v4986_v36 = vpop.eup %4985  ;;  %v1931_v54 = vsel %vm1930_vm3, %v4984_v49, %v1927_v22  ;;  %v1983_v44 = vadd.f32 0.00028619796, %v1982_v48  ;;  %v1993_v40 = vmul.f32 3.8918573e-05, %v6295_v18  ;;  %v3214_v24 = vand.u32 2147483648, %v6281_v30 }
 0x1e3   :  { %v1936_v32 = vsel %vm6297_vm2, %v1935_v16, %v1931_v54  ;;  %v3204_v7 = vmul.f32 %v4986_v36, %v6281_v30  ;;  %v6312_v55 = vadd.f32 1.0, %v1961_v52  ;;  %943 = vmatmul.bf16.gmra.mxu1 %v4383_v34  ;;  %v3226_v47 = vmul.f32 %v3225_v1, %v6277_v35 }
 0x1e4   :  { %v3236_v20 = vadd.f32 0.014752088, %v3235_v43  ;;  %v1984_v62 = vmul.f32 %v1983_v44, %v6295_v18  ;;  %v3192_v51 = vmul.f32 %v3191_v21, %v6192_v9  ;;  %vm3208_vm4 = vweird.f32 %v6281_v30 }
 0x1e5   :  { %v3205_v63 = vsub.f32 1.0, %v3204_v7  ;;  %4987 = vrcp.f32 %v6312_v55  ;;  %v1937_v19 = vmul.f32 %v1936_v32, %v1912_v57  ;;  %v1950_v42 = vmul.f32 %v1949_v14, %v6226_v17  ;;  %v737_v17 = vpop.f32.mrf.mxu0  ;;  %v906_v57 = vpop.f32.mrf.mxu1 }
 0x1e6   :  { %v3227_v26 = vadd.f32 0.05243302, %v3226_v47  ;;  %v3237_v49 = vmul.f32 %v3236_v20, %v6277_v35  ;;  %vm3209_vm5 = vweird.f32 %v4986_v36  ;;  %v1985_v5 = vadd.f32 0.0036580483, %v1984_v62 }
 0x1e7   :  { %v3206_v38 = vmul.f32 %v4986_v36, %v3205_v63  ;;  %v1994_v31 = vadd.f32 0.001143296, %v1993_v40  ;;  %vm6323_vm6 = vcmp.eq.f32.partialorder %v3212_v2, 8.507059e+37  ;;  %v3215_v46 = vor.u32 1.1754944e-38, %v3214_v24  ;;  %vm3210_vm7 = vmor %vm3208_vm4, %vm3209_vm5 }
 0x1e8   :  { %v3228_v41 = vmul.f32 %v3227_v26, %v6277_v35  ;;  %v3238_v25 = vadd.f32 0.112945676, %v3237_v49  ;;  %v1986_v6 = vmul.f32 %v1985_v5, %v6295_v18  ;;  %v4511_v61 = vor.u32 %v4702_v13, %v4508_v28 }
 0x1e9   :  { %v3207_v56 = vadd.f32 %v4986_v36, %v3206_v38  ;;  %v1995_v10 = vmul.f32 %v1994_v31, %v6295_v18  ;;  %v4588_v59 = vclamps-f32 %v1937_v19, 1.0  ;;  %v1951_v50 = vadd.f32 1.1283791, %v1950_v42  ;;  %v817_v31 = vpop.f32.mrf.mxu2 }
 0x1ea   :  { %v3239_v58 = vmul.f32 %v3238_v25, %v6277_v35  ;;  %v985_v0 = vadd.f32 %v984_v23, %v815_v27  ;;  %v1987_v21 = vadd.f32 0.05243302, %v1986_v6  ;;  %1023 = vmatmul.bf16.gmra.mxu3 %v4511_v61  ;;  %v907_v22 = vadd.f32 %v906_v57, %v737_v17 }
 0x1eb   :  { %v4988_v12 = vpop.eup %4987  ;;  %v3211_v16 = vsel %vm3210_vm7, %v4986_v36, %v3207_v56  ;;  %v1996_v8 = vadd.f32 0.014752088, %v1995_v10  ;;  %v1972_v48 = vand.u32 2147483647, %v6312_v55  ;;  %v3229_v2 = vadd.f32 0.18741608, %v3228_v41 }
 0x1ec   :  { %v3216_v60 = vsel %vm6323_vm6, %v3215_v46, %v3211_v16  ;;  %v1964_v29 = vmul.f32 %v4988_v12, %v6312_v55  ;;  %v3240_v14 = vadd.f32 0.4994258, %v3239_v58  ;;  %v1988_v52 = vmul.f32 %v1987_v21, %v6295_v18 }
 0x1ed   :  { %v3217_v30 = vmul.f32 %v3216_v60, %v3192_v51  ;;  %v1997_v34 = vmul.f32 %v1996_v8, %v6295_v18  ;;  %v1974_v36 = vand.u32 2147483648, %v6312_v55  ;;  %v6342_v1 = vadd.f32 %v6054_v4, %v985_v0  ;;  %v909_v60 = vpop.f32.mrf.mxu1 }
 0x1ee   :  { %v1965_v54 = vsub.f32 1.0, %v1964_v29  ;;  %v6345_v43 = vadd.f32 %v6054_v4, %v907_v22  ;;  %v3992_v44 = vadd.f32 1.0, %v4588_v59  ;;  %vm1969_vm8 = vweird.f32 %v4988_v12 }
 0x1ef   :  { %v3241_v32 = vmul.f32 %v3240_v14, %v6277_v35  ;;  %v1998_v7 = vadd.f32 0.112945676, %v1997_v34  ;;  %v4620_v40 = vclamps-f32 %v3217_v30, 1.0  ;;  %v3230_v47 = vmul.f32 %v3229_v2, %v6277_v35 }
 0x1f0   :  { %v1966_v24 = vmul.f32 %v4988_v12, %v1965_v54  ;;  %v6350_v20 = vmul.f32 0.70710677, %v6342_v1  ;;  %v1952_v62 = vmul.f32 %v1951_v50, %v6207_v11  ;;  %v1989_v63 = vadd.f32 0.18741608, %v1988_v52 }
 0x1f1   :  { %v6353_v51 = vadd.f32 1.0, %v3241_v32  ;;  %v1999_v19 = vmul.f32 %v1998_v7, %v6295_v18  ;;  %vm1968_vm9 = vweird.f32 %v6312_v55  ;;  %v6360_v49 = vmul.f32 0.70710677, %v6345_v43  ;;  %v986_v55 = vpop.f32.mrf.mxu3 }
 0x1f2   :  { %v1967_v42 = vadd.f32 %v4988_v12, %v1966_v24  ;;  %v3260_v26 = vmul.f32 %v6350_v20, %v6350_v20  ;;  %v4056_v35 = vmul.f32 %v3992_v44, %v6249_v15  ;;  %vm1970_vm10 = vmor %vm1968_vm9, %vm1969_vm8  ;;  %vm1973_vm11 = vcmp.eq.f32.partialorder %v1972_v48, 8.507059e+37 }
 0x1f3   :  { %v1975_v11 = vor.u32 1.1754944e-38, %v1974_v36  ;;  %4989 = vrcp.f32 %v6353_v51  ;;  %v4024_v13 = vadd.f32 1.0, %v4620_v40  ;;  %v3231_v38 = vadd.f32 1.1283791, %v3230_v47 }
 0x1f4   :  { %v1971_v28 = vsel %vm1970_vm10, %v4988_v12, %v1967_v42  ;;  %v2000_v5 = vadd.f32 0.4994258, %v1999_v19  ;;  %v1990_v23 = vmul.f32 %v1989_v63, %v6295_v18  ;;  %v6366_v9 = vmin.f32 %v3260_v26, 16.0 }
 0x1f5   :  { %v1976_v27 = vsel %vm1973_vm11, %v1975_v11, %v1971_v28  ;;  %v2020_v15 = vmul.f32 %v6360_v49, %v6360_v49  ;;  %v3252_v41 = vand.u32 2147483647, %v6353_v51  ;;  %v3254_v25 = vand.u32 2147483648, %v6353_v51 }
 0x1f6   :  { %v1977_v46 = vmul.f32 %v1976_v27, %v1952_v62  ;;  %v2001_v17 = vmul.f32 %v2000_v5, %v6295_v18  ;;  %v3262_v57 = vmul.f32 2.1237322e-06, %v6366_v9  ;;  %v3273_v56 = vmul.f32 3.8918573e-05, %v6366_v9 }
 0x1f7   :  { %v6375_v6 = vmin.f32 %v2020_v15, 16.0  ;;  %v987_v10 = vadd.f32 %v986_v55, %v817_v31  ;;  %v6378_v61 = vmul.f32 %v4024_v13, %v6259_v39  ;;  %v3232_v50 = vmul.f32 %v3231_v38, %v6263_v37  ;;  %v740_v39 = vpop.f32.mrf.mxu0 }
 0x1f8   :  { %v4589_v59 = vclamps-f32 %v1977_v46, 1.0  ;;  %v6381_v58 = vadd.f32 1.0, %v2001_v17  ;;  %vm3248_vm12 = vweird.f32 %v6353_v51  ;;  %v3263_v12 = vadd.f32 0.00028619796, %v3262_v57 }
 0x1f9   :  { %v4990_v0 = vpop.eup %4989  ;;  %v3274_v18 = vadd.f32 0.001143296, %v3273_v56  ;;  %v2022_v16 = vmul.f32 2.1237322e-06, %v6375_v6  ;;  %v6386_v22 = vadd.f32 1.1283791, %v1990_v23  ;;  %v6395_v2 = vadd.f32 %v6054_v4, %v987_v10 }
 0x1fa   :  { %v3993_v21 = vadd.f32 1.0, %v4589_v59  ;;  %v3244_v8 = vmul.f32 %v4990_v0, %v6353_v51  ;;  %4991 = vrcp.f32 %v6381_v58  ;;  %vm6389_vm13 = vcmp.eq.f32.partialorder %v3252_v41, 8.507059e+37 }
 0x1fb   :  { %v3255_v29 = vor.u32 1.1754944e-38, %v3254_v25  ;;  %v3264_v48 = vmul.f32 %v3263_v12, %v6366_v9  ;;  %v3275_v52 = vmul.f32 %v3274_v18, %v6366_v9  ;;  %v2023_v34 = vadd.f32 0.00028619796, %v2022_v16 }
 0x1fc   :  { %v4057_v30 = vmul.f32 %v3993_v21, %v6267_v53  ;;  %v3245_v14 = vsub.f32 1.0, %v3244_v8  ;;  %vm3249_vm14 = vweird.f32 %v4990_v0  ;;  %v2033_v36 = vmul.f32 3.8918573e-05, %v6375_v6 }
 0x1fd   :  { %v3265_v54 = vadd.f32 0.0036580483, %v3264_v48  ;;  %v910_v44 = vadd.f32 %v909_v60, %v740_v39  ;;  %v3276_v40 = vadd.f32 0.014752088, %v3275_v52  ;;  %v2024_v24 = vmul.f32 %v2023_v34, %v6375_v6  ;;  %vm3250_vm0 = vmor %vm3248_vm12, %vm3249_vm14 }
 0x1fe   :  { %v4753_v32 = vpack.c.bf16 %v4057_v30, %v4056_v35  ;;  %v3246_v7 = vmul.f32 %v4990_v0, %v3245_v14  ;;  %vm2008_vm15 = vweird.f32 %v6381_v58  ;;  %v2034_v62 = vadd.f32 0.001143296, %v2033_v36 }
 0x1ff   :  { %v3266_v47 = vmul.f32 %v3265_v54, %v6366_v9  ;;  %v6404_v53 = vmul.f32 0.70710677, %v6395_v2  ;;  %v2012_v42 = vand.u32 2147483647, %v6381_v58  ;;  %v3277_v26 = vmul.f32 %v3276_v40, %v6366_v9  ;;  %v989_v40 = vpop.f32.mrf.mxu3 }
 0x200   :  { %v4992_v63 = vpop.eup %4991  ;;  %4885 = vst [vmem:[#allocation8 + $0x30] sm:$0xff] %v4753_v32   ;;  %v3247_v19 = vadd.f32 %v4990_v0, %v3246_v7  ;;  %v2025_v35 = vadd.f32 0.0036580483, %v2024_v24  ;;  %v2014_v13 = vand.u32 2147483648, %v6381_v58  ;;  %v2035_v38 = vmul.f32 %v2034_v62, %v6375_v6  ;;  %v820_v7 = vpop.f32.mrf.mxu2 }
 0x201   :  { %v2004_v11 = vmul.f32 %v4992_v63, %v6381_v58  ;;  %v3267_v28 = vadd.f32 0.05243302, %v3266_v47  ;;  %v3278_v31 = vadd.f32 0.112945676, %v3277_v26  ;;  %v3300_v27 = vmul.f32 %v6404_v53, %v6404_v53 }
 0x202   :  { %v3251_v5 = vsel %vm3250_vm0, %v4990_v0, %v3247_v19  ;;  %v2026_v55 = vmul.f32 %v2025_v35, %v6375_v6  ;;  %v2036_v46 = vadd.f32 0.014752088, %v2035_v38  ;;  %vm2009_vm1 = vweird.f32 %v4992_v63 }
 0x203   :  { %v3256_v23 = vsel %vm6389_vm13, %v3255_v29, %v3251_v5  ;;  %v2005_v15 = vsub.f32 1.0, %v2004_v11  ;;  %v3268_v51 = vmul.f32 %v3267_v28, %v6366_v9  ;;  %v3279_v25 = vmul.f32 %v3278_v31, %v6366_v9  ;;  %vm2010_vm3 = vmor %vm2008_vm15, %vm2009_vm1  ;;  %v6466_v5 = vld [vmem:[%s7689_s2] ss:$0 sm:$0xff] }
 0x204   :  { %v3257_v41 = vmul.f32 %v3256_v23, %v3232_v50  ;;  %v2027_v17 = vadd.f32 0.05243302, %v2026_v55  ;;  %v6421_v57 = vmin.f32 %v3300_v27, 16.0  ;;  %vm6423_vm2 = vcmp.eq.f32.partialorder %v2012_v42, 8.507059e+37 }
 0x205   :  { %v2006_v56 = vmul.f32 %v4992_v63, %v2005_v15  ;;  %v2037_v59 = vmul.f32 %v2036_v46, %v6375_v6  ;;  %v3280_v12 = vadd.f32 0.4994258, %v3279_v25  ;;  %v3269_v21 = vadd.f32 0.18741608, %v3268_v51 }
 0x206   :  { %v4621_v0 = vclamps-f32 %v3257_v41, 1.0  ;;  %v2028_v18 = vmul.f32 %v2027_v17, %v6375_v6  ;;  %v3302_v16 = vmul.f32 2.1237322e-06, %v6421_v57  ;;  %v3313_v39 = vmul.f32 3.8918573e-05, %v6421_v57 }
 0x207   :  { %v2007_v50 = vadd.f32 %v4992_v63, %v2006_v56  ;;  %v2038_v8 = vadd.f32 0.112945676, %v2037_v59  ;;  %v2015_v37 = vor.u32 1.1754944e-38, %v2014_v13  ;;  %v3281_v29 = vmul.f32 %v3280_v12, %v6366_v9 }
 0x208   :  { %v4025_v60 = vadd.f32 1.0, %v4621_v0  ;;  %v3303_v48 = vadd.f32 0.00028619796, %v3302_v16  ;;  %v2029_v14 = vadd.f32 0.18741608, %v2028_v18  ;;  %v6436_v34 = vadd.f32 %v6054_v4, %v910_v44 }
 0x209   :  { %v2011_v30 = vsel %vm2010_vm3, %v4992_v63, %v2007_v50  ;;  %v2039_v52 = vmul.f32 %v2038_v8, %v6375_v6  ;;  %v6441_v32 = vadd.f32 1.0, %v3281_v29  ;;  %v3314_v58 = vadd.f32 0.001143296, %v3313_v39  ;;  %v742_v29 = vpop.f32.mrf.mxu0 }
 0x20a   :  { %v4089_v54 = vmul.f32 %v4025_v60, %v6289_v45  ;;  %v2016_v36 = vsel %vm6423_vm2, %v2015_v37, %v2011_v30  ;;  %v1992_v24 = vmul.f32 %v6386_v22, %v6272_v3  ;;  %v3270_v47 = vmul.f32 %v3269_v21, %v6366_v9 }
 0x20b   :  { %v2040_v62 = vadd.f32 0.4994258, %v2039_v52  ;;  %v3304_v63 = vmul.f32 %v3303_v48, %v6421_v57  ;;  %4993 = vrcp.f32 %v6441_v32  ;;  %v990_v19 = vadd.f32 %v989_v40, %v820_v7  ;;  %v911_v48 = vpop.f32.mrf.mxu1 }
 0x20c   :  { %v4833_v4 = vpack.c.bf16 %v4089_v54, %v6378_v61  ;;  %v2017_v45 = vmul.f32 %v2016_v36, %v1992_v24  ;;  %v2030_v42 = vmul.f32 %v2029_v14, %v6375_v6  ;;  %v3315_v35 = vmul.f32 %v3314_v58, %v6421_v57 }
 0x20d   :  { %v2041_v44 = vmul.f32 %v2040_v62, %v6375_v6  ;;  %v3305_v26 = vadd.f32 0.0036580483, %v3304_v63  ;;  %v6453_v3 = vmul.f32 0.70710677, %v6436_v34  ;;  %v3271_v9 = vadd.f32 1.1283791, %v3270_v47 }
 0x20e   :  { %4901 = vst [vmem:[#allocation8 + $0xb0] sm:$0xff] %v4833_v4   ;;  %v3292_v61 = vand.u32 2147483647, %v6441_v32  ;;  %v3316_v13 = vadd.f32 0.014752088, %v3315_v35  ;;  %v4590_v38 = vclamps-f32 %v2017_v45, 1.0  ;;  %v6469_v31 = vadd.f32 %v6466_v5, %v990_v19 }
 0x20f   :  { %v6455_v22 = vadd.f32 1.0, %v2041_v44  ;;  %v3306_v11 = vmul.f32 %v3305_v26, %v6421_v57  ;;  %v2060_v28 = vmul.f32 %v6453_v3, %v6453_v3  ;;  %v3294_v6 = vand.u32 2147483648, %v6441_v32 }
 0x210   :  { %v2031_v27 = vadd.f32 1.1283791, %v2030_v42  ;;  %v3317_v15 = vmul.f32 %v3316_v13, %v6421_v57  ;;  %v6475_v46 = vmul.f32 0.5, %v6253_v33  ;;  %v6478_v41 = vmul.f32 0.5, %v6342_v1 }
 0x211   :  { %4995 = vrcp.f32 %v6455_v22  ;;  %v4994_v55 = vpop.eup %4993  ;;  %v3307_v23 = vadd.f32 0.05243302, %v3306_v11  ;;  %v6472_v51 = vmin.f32 %v2060_v28, 16.0  ;;  %v3272_v25 = vmul.f32 %v3271_v9, %v6350_v20 }
 0x212   :  { %v3284_v17 = vmul.f32 %v4994_v55, %v6441_v32  ;;  %vm3288_vm4 = vweird.f32 %v6441_v32  ;;  %v3318_v10 = vadd.f32 0.112945676, %v3317_v15  ;;  %v6485_v0 = vadd.f32 1.0, %v4590_v38  ;;  %v822_v15 = vpop.f32.mrf.mxu2 }
 0x213   :  { %v3308_v56 = vmul.f32 %v3307_v23, %v6421_v57  ;;  %v2062_v59 = vmul.f32 2.1237322e-06, %v6472_v51  ;;  %vm6487_vm5 = vcmp.eq.f32.partialorder %v3292_v61, 8.507059e+37  ;;  %v2073_v1 = vmul.f32 3.8918573e-05, %v6472_v51 }
 0x214   :  { %v3285_v12 = vsub.f32 1.0, %v3284_v17  ;;  %v6493_v20 = vmul.f32 0.70710677, %v6469_v31  ;;  %v3295_v18 = vor.u32 1.1754944e-38, %v3294_v6  ;;  %v2032_v16 = vmul.f32 %v2031_v27, %v6360_v49  ;;  %v991_v17 = vpop.f32.mrf.mxu3 }
 0x215   :  { %v3319_v50 = vmul.f32 %v3318_v10, %v6421_v57  ;;  %v2063_v21 = vadd.f32 0.00028619796, %v2062_v59  ;;  %vm3289_vm6 = vweird.f32 %v4994_v55  ;;  %v2074_v60 = vadd.f32 0.001143296, %v2073_v1 }
 0x216   :  { %v3286_v39 = vmul.f32 %v4994_v55, %v3285_v12  ;;  %v3340_v37 = vmul.f32 %v6493_v20, %v6493_v20  ;;  %v2052_v14 = vand.u32 2147483647, %v6455_v22  ;;  %v3309_v52 = vadd.f32 0.18741608, %v3308_v56  ;;  %vm6507_vm7 = vmor %vm3288_vm4, %vm3289_vm6 }
 0x217   :  { %v4996_v8 = vpop.eup %4995  ;;  %v3320_v54 = vadd.f32 0.4994258, %v3319_v50  ;;  %v2064_v49 = vmul.f32 %v2063_v21, %v6472_v51  ;;  %v2075_v58 = vmul.f32 %v2074_v60, %v6472_v51  ;;  %v2054_v47 = vand.u32 2147483648, %v6455_v22 }
 0x218   :  { %v2044_v30 = vmul.f32 %v4996_v8, %v6455_v22  ;;  %v3287_v36 = vadd.f32 %v4994_v55, %v3286_v39  ;;  %v6503_v7 = vmin.f32 %v3340_v37, 16.0  ;;  %v912_v63 = vadd.f32 %v911_v48, %v742_v29 }
 0x219   :  { %v3321_v62 = vmul.f32 %v3320_v54, %v6421_v57  ;;  %v2065_v45 = vadd.f32 0.0036580483, %v2064_v49  ;;  %v2076_v44 = vadd.f32 0.014752088, %v2075_v58  ;;  %vm2049_vm8 = vweird.f32 %v4996_v8 }
 0x21a   :  { %v2045_v24 = vsub.f32 1.0, %v2044_v30  ;;  %v3291_v4 = vsel %vm6507_vm7, %v4994_v55, %v3287_v36  ;;  %v3342_v19 = vmul.f32 2.1237322e-06, %v6503_v7  ;;  %v3310_v32 = vmul.f32 %v3309_v52, %v6421_v57 }
 0x21b   :  { %v6517_v26 = vadd.f32 1.0, %v3321_v62  ;;  %vm2048_vm9 = vweird.f32 %v6455_v22  ;;  %v2066_v35 = vmul.f32 %v2065_v45, %v6472_v51  ;;  %v2077_v9 = vmul.f32 %v2076_v44, %v6472_v51  ;;  %v745_v44 = vpop.f32.mrf.mxu0 }
 0x21c   :  { %v2046_v42 = vmul.f32 %v4996_v8, %v2045_v24  ;;  %v3343_v61 = vadd.f32 0.00028619796, %v3342_v19  ;;  %v3296_v11 = vsel %vm6487_vm5, %v3295_v18, %v3291_v4  ;;  %vm2053_vm10 = vcmp.eq.f32.partialorder %v2052_v14, 8.507059e+37  ;;  %vm2050_vm11 = vmor %vm2048_vm9, %vm2049_vm8  ;;  %v914_v19 = vpop.f32.mrf.mxu1 }
 0x21d   :  { %4997 = vrcp.f32 %v6517_v26  ;;  %v2055_v28 = vor.u32 1.1754944e-38, %v2054_v47  ;;  %v2067_v38 = vadd.f32 0.05243302, %v2066_v35  ;;  %v2078_v57 = vadd.f32 0.112945676, %v2077_v9 }
 0x21e   :  { %v2047_v13 = vadd.f32 %v4996_v8, %v2046_v42  ;;  %v6526_v6 = vadd.f32 %v6466_v5, %v912_v63  ;;  %v3311_v55 = vadd.f32 1.1283791, %v3310_v32  ;;  %v3344_v27 = vmul.f32 %v3343_v61, %v6503_v7 }
 0x21f   :  { %v3353_v23 = vmul.f32 3.8918573e-05, %v6503_v7  ;;  %v3297_v56 = vmul.f32 %v3296_v11, %v3272_v25  ;;  %v1307_v10 = vmul.f32 0.5, %v6345_v43  ;;  %v6532_v12 = vmul.f32 0.5, %v6395_v2 }
 0x220   :  { %v2051_v22 = vsel %vm2050_vm11, %v4996_v8, %v2047_v13  ;;  %v2079_v1 = vmul.f32 %v2078_v57, %v6472_v51  ;;  %v3345_v18 = vadd.f32 0.0036580483, %v3344_v27  ;;  %v4058_v21 = vmul.f32 %v6485_v0, %v6475_v46 }
 0x221   :  { %v2056_v59 = vsel %vm2053_vm10, %v2055_v28, %v2051_v22  ;;  %v3354_v50 = vadd.f32 0.001143296, %v3353_v23  ;;  %v2068_v8 = vmul.f32 %v2067_v38, %v6472_v51  ;;  %v6539_v39 = vmul.f32 0.70710677, %v6526_v6 }
 0x222   :  { %v2057_v33 = vmul.f32 %v2056_v59, %v2032_v16  ;;  %v992_v25 = vadd.f32 %v991_v17, %v822_v15  ;;  %v3312_v37 = vmul.f32 %v3311_v55, %v6404_v53  ;;  %v2080_v2 = vadd.f32 0.4994258, %v2079_v1 }
 0x223   :  { %v4998_v60 = vpop.eup %4997  ;;  %v3355_v16 = vmul.f32 %v3354_v50, %v6503_v7  ;;  %v3332_v48 = vand.u32 2147483647, %v6517_v26  ;;  %v3346_v30 = vmul.f32 %v3345_v18, %v6503_v7  ;;  %v2100_v46 = vmul.f32 %v6539_v39, %v6539_v39 }
 0x224   :  { %v4591_v43 = vclamps-f32 %v2057_v33, 1.0  ;;  %v3324_v29 = vmul.f32 %v4998_v60, %v6517_v26  ;;  %v4622_v0 = vclamps-f32 %v3297_v56, 1.0  ;;  %v2081_v52 = vmul.f32 %v2080_v2, %v6472_v51 }
 0x225   :  { %v3356_v54 = vadd.f32 0.014752088, %v3355_v16  ;;  %v3334_v53 = vand.u32 2147483648, %v6517_v26  ;;  %v2069_v49 = vadd.f32 0.18741608, %v2068_v8  ;;  %v6550_v58 = vmin.f32 %v2100_v46, 16.0 }
 0x226   :  { %v3995_v14 = vadd.f32 1.0, %v4591_v43  ;;  %v3325_v36 = vsub.f32 1.0, %v3324_v29  ;;  %vm3329_vm12 = vweird.f32 %v4998_v60  ;;  %v6552_v24 = vadd.f32 1.0, %v2081_v52 }
 0x227   :  { %v3357_v47 = vmul.f32 %v3356_v54, %v6503_v7  ;;  %v3347_v63 = vadd.f32 0.05243302, %v3346_v30  ;;  %v2102_v4 = vmul.f32 2.1237322e-06, %v6550_v58  ;;  %v2113_v45 = vmul.f32 3.8918573e-05, %v6550_v58 }
 0x228   :  { %v4059_v40 = vmul.f32 %v3995_v14, %v1307_v10  ;;  %v3326_v62 = vmul.f32 %v4998_v60, %v3325_v36  ;;  %vm3328_vm13 = vweird.f32 %v6517_v26  ;;  %4999 = vrcp.f32 %v6552_v24  ;;  %v994_v14 = vpop.f32.mrf.mxu3 }
 0x229   :  { %v6560_v32 = vadd.f32 %v6466_v5, %v992_v25  ;;  %v4026_v35 = vadd.f32 1.0, %v4622_v0  ;;  %v3335_v61 = vor.u32 1.1754944e-38, %v3334_v53  ;;  %v3358_v11 = vadd.f32 0.112945676, %v3357_v47  ;;  %vm3330_vm14 = vmor %vm3328_vm13, %vm3329_vm12  ;;  %v825_v0 = vpop.f32.mrf.mxu2 }
 0x22a   :  { %v4758_v42 = vpack.c.bf16 %v4059_v40, %v4058_v21  ;;  %v3327_v9 = vadd.f32 %v4998_v60, %v3326_v62  ;;  %v2070_v13 = vmul.f32 %v2069_v49, %v6472_v51  ;;  %v2103_v28 = vadd.f32 0.00028619796, %v2102_v4 }
 0x22b   :  { %v2114_v38 = vadd.f32 0.001143296, %v2113_v45  ;;  %v915_v57 = vadd.f32 %v914_v19, %v745_v44  ;;  %vm3333_vm15 = vcmp.eq.f32.partialorder %v3332_v48, 8.507059e+37  ;;  %v3348_v26 = vmul.f32 %v3347_v63, %v6503_v7 }
 0x22c   :  { %4886 = vst [vmem:[#allocation8 + $0x38] sm:$0xff] %v4758_v42   ;;  %v3331_v22 = vsel %vm3330_vm14, %v4998_v60, %v3327_v9  ;;  %v3359_v55 = vmul.f32 %v3358_v11, %v6503_v7  ;;  %v2104_v23 = vmul.f32 %v2103_v28, %v6550_v58  ;;  %v6569_v17 = vmul.f32 0.70710677, %v6560_v32 }
 0x22d   :  { %v3336_v27 = vsel %vm3333_vm15, %v3335_v61, %v3331_v22  ;;  %v2115_v15 = vmul.f32 %v2114_v38, %v6550_v58  ;;  %v4090_v56 = vmul.f32 %v4026_v35, %v6478_v41  ;;  %v6573_v59 = vadd.f32 %v6466_v5, %v915_v57 }
 0x22e   :  { %v3337_v51 = vmul.f32 %v3336_v27, %v3312_v37  ;;  %v3360_v10 = vadd.f32 0.4994258, %v3359_v55  ;;  %v5000_v33 = vpop.eup %4999  ;;  %v2071_v1 = vadd.f32 1.1283791, %v2070_v13  ;;  %v2105_v18 = vadd.f32 0.0036580483, %v2104_v23 }
 0x22f   :  { %v2116_v50 = vadd.f32 0.014752088, %v2115_v15  ;;  %v3380_v21 = vmul.f32 %v6569_v17, %v6569_v17  ;;  %v2084_v25 = vmul.f32 %v5000_v33, %v6552_v24  ;;  %v2092_v60 = vand.u32 2147483647, %v6552_v24 }
 0x230   :  { %v4623_v8 = vclamps-f32 %v3337_v51, 1.0  ;;  %v3349_v43 = vadd.f32 0.18741608, %v3348_v26  ;;  %v3361_v41 = vmul.f32 %v3360_v10, %v6503_v7  ;;  %v2106_v37 = vmul.f32 %v2105_v18, %v6550_v58 }
 0x231   :  { %v2117_v2 = vmul.f32 %v2116_v50, %v6550_v58  ;;  %v6582_v16 = vmin.f32 %v3380_v21, 16.0  ;;  %v2085_v48 = vsub.f32 1.0, %v2084_v25  ;;  %v2094_v30 = vand.u32 2147483648, %v6552_v24 }
 0x232   :  { %v4027_v29 = vadd.f32 1.0, %v4623_v8  ;;  %v6586_v46 = vmul.f32 0.70710677, %v6573_v59  ;;  %vm2089_vm0 = vweird.f32 %v5000_v33  ;;  %v6588_v52 = vadd.f32 1.0, %v3361_v41 }
 0x233   :  { %v2107_v54 = vadd.f32 0.05243302, %v2106_v37  ;;  %v2118_v36 = vadd.f32 0.112945676, %v2117_v2  ;;  %v2086_v49 = vmul.f32 %v5000_v33, %v2085_v48  ;;  %v3382_v40 = vmul.f32 2.1237322e-06, %v6582_v16  ;;  %v916_v48 = vpop.f32.mrf.mxu1 }
 0x234   :  { %v4091_v53 = vmul.f32 %v4027_v29, %v6532_v12  ;;  %v3393_v47 = vmul.f32 3.8918573e-05, %v6582_v16  ;;  %vm2088_vm1 = vweird.f32 %v6552_v24  ;;  %v3350_v62 = vmul.f32 %v3349_v43, %v6503_v7 }
 0x235   :  { %5001 = vrcp.f32 %v6588_v52  ;;  %v995_v63 = vadd.f32 %v994_v14, %v825_v0  ;;  %v2087_v45 = vadd.f32 %v5000_v33, %v2086_v49  ;;  %v2108_v44 = vmul.f32 %v2107_v54, %v6550_v58  ;;  %vm2090_vm2 = vmor %vm2088_vm1, %vm2089_vm0 }
 0x236   :  { %v4838_v4 = vpack.c.bf16 %v4091_v53, %v4090_v56  ;;  %v2119_v19 = vmul.f32 %v2118_v36, %v6550_v58  ;;  %vm2093_vm3 = vcmp.eq.f32.partialorder %v2092_v60, 8.507059e+37  ;;  %v2095_v12 = vor.u32 1.1754944e-38, %v2094_v30 }
 0x237   :  { %v3383_v42 = vadd.f32 0.00028619796, %v3382_v40  ;;  %v3394_v35 = vadd.f32 0.001143296, %v3393_v47  ;;  %v2091_v9 = vsel %vm2090_vm2, %v5000_v33, %v2087_v45  ;;  %v2109_v24 = vadd.f32 0.18741608, %v2108_v44 }
 0x238   :  { %4902 = vst [vmem:[#allocation8 + $0xb8] sm:$0xff] %v4838_v4   ;;  %v2120_v61 = vadd.f32 0.4994258, %v2119_v19  ;;  %v2140_v7 = vmul.f32 %v6586_v46, %v6586_v46  ;;  %v2072_v11 = vmul.f32 %v2071_v1, %v6453_v3  ;;  %v2096_v13 = vsel %vm2093_vm3, %v2095_v12, %v2091_v9 }
 0x239   :  { %v3384_v28 = vmul.f32 %v3383_v42, %v6582_v16  ;;  %v3395_v38 = vmul.f32 %v3394_v35, %v6582_v16  ;;  %v3351_v57 = vadd.f32 1.1283791, %v3350_v62  ;;  %v6608_v55 = vadd.f32 %v6466_v5, %v995_v63 }
 0x23a   :  { %v2121_v22 = vmul.f32 %v2120_v61, %v6550_v58  ;;  %v6605_v26 = vmin.f32 %v2140_v7, 16.0  ;;  %v2097_v23 = vmul.f32 %v2096_v13, %v2072_v11  ;;  %v3372_v15 = vand.u32 2147483647, %v6588_v52  ;;  %v996_v61 = vpop.f32.mrf.mxu3 }
 0x23b   :  { %v5002_v27 = vpop.eup %5001  ;;  %v3385_v56 = vadd.f32 0.0036580483, %v3384_v28  ;;  %v3396_v51 = vadd.f32 0.014752088, %v3395_v38  ;;  %v6612_v3 = vmul.f32 0.5, %v6436_v34  ;;  %v6615_v10 = vmul.f32 0.5, %v6469_v31 }
 0x23c   :  { %v3364_v33 = vmul.f32 %v5002_v27, %v6588_v52  ;;  %v2110_v1 = vmul.f32 %v2109_v24, %v6550_v58  ;;  %v6619_v18 = vadd.f32 1.0, %v2121_v22  ;;  %v2142_v8 = vmul.f32 2.1237322e-06, %v6605_v26  ;;  %v827_v24 = vpop.f32.mrf.mxu2 }
 0x23d   :  { %v3386_v50 = vmul.f32 %v3385_v56, %v6582_v16  ;;  %v3397_v21 = vmul.f32 %v3396_v51, %v6582_v16  ;;  %v3352_v25 = vmul.f32 %v3351_v57, %v6493_v20  ;;  %v2153_v34 = vmul.f32 3.8918573e-05, %v6605_v26  ;;  %v747_v20 = vpop.f32.mrf.mxu0 }
 0x23e   :  { %v3365_v60 = vsub.f32 1.0, %v3364_v33  ;;  %v6627_v31 = vmul.f32 0.70710677, %v6608_v55  ;;  %v4592_v43 = vclamps-f32 %v2097_v23, 1.0  ;;  %vm6629_vm4 = vcmp.eq.f32.partialorder %v3372_v15, 8.507059e+37 }
 0x23f   :  { %v3374_v58 = vand.u32 2147483648, %v6588_v52  ;;  %5003 = vrcp.f32 %v6619_v18  ;;  %vm3369_vm5 = vweird.f32 %v5002_v27  ;;  %v3387_v2 = vadd.f32 0.05243302, %v3386_v50 }
 0x240   :  { %v3366_v37 = vmul.f32 %v5002_v27, %v3365_v60  ;;  %v3398_v29 = vadd.f32 0.112945676, %v3397_v21  ;;  %vm3368_vm6 = vweird.f32 %v6588_v52  ;;  %v2111_v30 = vadd.f32 1.1283791, %v2110_v1 }
 0x241   :  { %v2143_v0 = vadd.f32 0.00028619796, %v2142_v8  ;;  %v2154_v14 = vadd.f32 0.001143296, %v2153_v34  ;;  %v3388_v36 = vmul.f32 %v3387_v2, %v6582_v16  ;;  %v3420_v49 = vmul.f32 %v6627_v31, %v6627_v31  ;;  %vm3370_vm7 = vmor %vm3368_vm6, %vm3369_vm5 }
 0x242   :  { %v3367_v54 = vadd.f32 %v5002_v27, %v3366_v37  ;;  %v3399_v53 = vmul.f32 %v3398_v29, %v6582_v16  ;;  %v3375_v40 = vor.u32 1.1754944e-38, %v3374_v58  ;;  %v917_v63 = vadd.f32 %v916_v48, %v747_v20 }
 0x243   :  { %v2144_v47 = vmul.f32 %v2143_v0, %v6605_v26  ;;  %v2155_v62 = vmul.f32 %v2154_v14, %v6605_v26  ;;  %v3996_v4 = vadd.f32 1.0, %v4592_v43  ;;  %v6642_v44 = vmin.f32 %v3420_v49, 16.0 }
 0x244   :  { %v3371_v52 = vsel %vm3370_vm7, %v5002_v27, %v3367_v54  ;;  %v3400_v45 = vadd.f32 0.4994258, %v3399_v53  ;;  %v3389_v42 = vadd.f32 0.18741608, %v3388_v36  ;;  %v2112_v7 = vmul.f32 %v2111_v30, %v6539_v39 }
 0x245   :  { %v5004_v19 = vpop.eup %5003  ;;  %v3376_v12 = vsel %vm6629_vm4, %v3375_v40, %v3371_v52  ;;  %v2145_v35 = vadd.f32 0.0036580483, %v2144_v47  ;;  %v2156_v9 = vadd.f32 0.014752088, %v2155_v62  ;;  %v2132_v13 = vand.u32 2147483647, %v6619_v18 }
 0x246   :  { %v2124_v11 = vmul.f32 %v5004_v19, %v6619_v18  ;;  %v2134_v28 = vand.u32 2147483648, %v6619_v18  ;;  %v3401_v38 = vmul.f32 %v3400_v45, %v6582_v16  ;;  %v3422_v27 = vmul.f32 2.1237322e-06, %v6642_v44 }
 0x247   :  { %v2146_v57 = vmul.f32 %v2145_v35, %v6605_v26  ;;  %v2157_v22 = vmul.f32 %v2156_v9, %v6605_v26  ;;  %v3377_v23 = vmul.f32 %v3376_v12, %v3352_v25  ;;  %v3433_v56 = vmul.f32 3.8918573e-05, %v6642_v44 }
 0x248   :  { %v2125_v15 = vsub.f32 1.0, %v2124_v11  ;;  %v997_v51 = vadd.f32 %v996_v61, %v827_v24  ;;  %v3390_v39 = vmul.f32 %v3389_v42, %v6582_v16  ;;  %v6656_v33 = vadd.f32 1.0, %v3401_v38 }
 0x249   :  { %v2147_v1 = vadd.f32 0.05243302, %v2146_v57  ;;  %v2158_v50 = vadd.f32 0.112945676, %v2157_v22  ;;  %vm2129_vm8 = vweird.f32 %v5004_v19  ;;  %v3423_v8 = vadd.f32 0.00028619796, %v3422_v27  ;;  %v999_v27 = vpop.f32.mrf.mxu3 }
 0x24a   :  { %v2126_v21 = vmul.f32 %v5004_v19, %v2125_v15  ;;  %v6659_v60 = vadd.f32 %v6466_v5, %v917_v63  ;;  %vm2128_vm9 = vweird.f32 %v6619_v18  ;;  %vm6662_vm10 = vcmp.eq.f32.partialorder %v2132_v13, 8.507059e+37 }
 0x24b   :  { %v2135_v34 = vor.u32 1.1754944e-38, %v2134_v28  ;;  %5005 = vrcp.f32 %v6656_v33  ;;  %v4624_v16 = vclamps-f32 %v3377_v23, 1.0  ;;  %v2148_v41 = vmul.f32 %v2147_v1, %v6605_v26  ;;  %vm2130_vm11 = vmor %vm2128_vm9, %vm2129_vm8 }
 0x24c   :  { %v2127_v43 = vadd.f32 %v5004_v19, %v2126_v21  ;;  %v2159_v58 = vmul.f32 %v2158_v50, %v6605_v26  ;;  %v3391_v37 = vadd.f32 1.1283791, %v3390_v39  ;;  %v3424_v2 = vmul.f32 %v3423_v8, %v6642_v44 }
 0x24d   :  { %v3434_v29 = vadd.f32 0.001143296, %v3433_v56  ;;  %v6671_v18 = vadd.f32 %v6466_v5, %v997_v51  ;;  %v2149_v48 = vadd.f32 0.18741608, %v2148_v41  ;;  %v6674_v0 = vmul.f32 0.70710677, %v6659_v60  ;;  %v750_v56 = vpop.f32.mrf.mxu0  ;;  %v919_v51 = vpop.f32.mrf.mxu1 }
 0x24e   :  { %v2131_v20 = vsel %vm2130_vm11, %v5004_v19, %v2127_v43  ;;  %v2160_v30 = vadd.f32 0.4994258, %v2159_v58  ;;  %v1309_v14 = vmul.f32 0.5, %v6526_v6  ;;  %v6680_v36 = vmul.f32 0.5, %v6560_v32 }
 0x24f   :  { %v2136_v54 = vsel %vm6662_vm10, %v2135_v34, %v2131_v20  ;;  %v3435_v53 = vmul.f32 %v3434_v29, %v6642_v44  ;;  %v3425_v47 = vadd.f32 0.0036580483, %v3424_v2  ;;  %v2180_v62 = vmul.f32 %v6674_v0, %v6674_v0 }
 0x250   :  { %v2137_v49 = vmul.f32 %v2136_v54, %v2112_v7  ;;  %v2161_v40 = vmul.f32 %v2160_v30, %v6605_v26  ;;  %v4060_v52 = vmul.f32 %v3996_v4, %v6612_v3  ;;  %v4028_v45 = vadd.f32 1.0, %v4624_v16 }
 0x251   :  { %v5006_v63 = vpop.eup %5005  ;;  %v3436_v6 = vadd.f32 0.014752088, %v3435_v53  ;;  %v6688_v19 = vmul.f32 0.70710677, %v6671_v18  ;;  %v3392_v32 = vmul.f32 %v3391_v37, %v6569_v17  ;;  %v2150_v35 = vmul.f32 %v2149_v48, %v6605_v26 }
 0x252   :  { %v4593_v12 = vclamps-f32 %v2137_v49, 1.0  ;;  %v3404_v42 = vmul.f32 %v5006_v63, %v6656_v33  ;;  %v3412_v9 = vand.u32 2147483647, %v6656_v33  ;;  %v6694_v24 = vadd.f32 1.0, %v2161_v40 }
 0x253   :  { %v3437_v61 = vmul.f32 %v3436_v6, %v6642_v44  ;;  %v6697_v7 = vmin.f32 %v2180_v62, 16.0  ;;  %vm3408_vm12 = vweird.f32 %v6656_v33  ;;  %v3426_v11 = vmul.f32 %v3425_v47, %v6642_v44 }
 0x254   :  { %v3997_v3 = vadd.f32 1.0, %v4593_v12  ;;  %v3405_v4 = vsub.f32 1.0, %v3404_v42  ;;  %vm3409_vm13 = vweird.f32 %v5006_v63  ;;  %v3414_v17 = vand.u32 2147483648, %v6656_v33 }
 0x255   :  { %5007 = vrcp.f32 %v6694_v24  ;;  %v3460_v26 = vmul.f32 %v6688_v19, %v6688_v19  ;;  %v2151_v38 = vadd.f32 1.1283791, %v2150_v35  ;;  %v3438_v57 = vadd.f32 0.112945676, %v3437_v61  ;;  %vm3410_vm15 = vmor %vm3408_vm12, %vm3409_vm13 }
 0x256   :  { %v4061_v13 = vmul.f32 %v3997_v3, %v1309_v14  ;;  %v3406_v28 = vmul.f32 %v5006_v63, %v3405_v4  ;;  %v6706_v22 = vmul.f32 %v4028_v45, %v6615_v10  ;;  %vm6708_vm14 = vcmp.eq.f32.partialorder %v3412_v9, 8.507059e+37 }
 0x257   :  { %v2182_v23 = vmul.f32 2.1237322e-06, %v6697_v7  ;;  %v2193_v15 = vmul.f32 3.8918573e-05, %v6697_v7  ;;  %v3427_v50 = vadd.f32 0.05243302, %v3426_v11  ;;  %v3439_v21 = vmul.f32 %v3438_v57, %v6642_v44  ;;  %v830_v57 = vpop.f32.mrf.mxu2 }
 0x258   :  { %v4763_v39 = vpack.c.bf16 %v4061_v13, %v4060_v52  ;;  %v3407_v1 = vadd.f32 %v5006_v63, %v3406_v28  ;;  %v3415_v10 = vor.u32 1.1754944e-38, %v3414_v17  ;;  %v6718_v34 = vmin.f32 %v3460_v26, 16.0 }
 0x259   :  { %v2183_v8 = vadd.f32 0.00028619796, %v2182_v23  ;;  %v2194_v25 = vadd.f32 0.001143296, %v2193_v15  ;;  %v2152_v43 = vmul.f32 %v2151_v38, %v6586_v46  ;;  %v3440_v41 = vadd.f32 0.4994258, %v3439_v21 }
 0x25a   :  { %4887 = vst [vmem:[#allocation8 + $0x40] sm:$0xff] %v4763_v39   ;;  %v3411_v16 = vsel %vm3410_vm15, %v5006_v63, %v3407_v1  ;;  %v920_v58 = vadd.f32 %v919_v51, %v750_v56  ;;  %v3462_v20 = vmul.f32 2.1237322e-06, %v6718_v34  ;;  %v2172_v14 = vand.u32 2147483647, %v6694_v24 }
 0x25b   :  { %v5008_v37 = vpop.eup %5007  ;;  %v3416_v2 = vsel %vm6708_vm14, %v3415_v10, %v3411_v16  ;;  %v2184_v29 = vmul.f32 %v2183_v8, %v6697_v7  ;;  %v2195_v33 = vmul.f32 %v2194_v25, %v6697_v7  ;;  %v3428_v54 = vmul.f32 %v3427_v50, %v6642_v44 }
 0x25c   :  { %v3417_v48 = vmul.f32 %v3416_v2, %v3392_v32  ;;  %v2164_v30 = vmul.f32 %v5008_v37, %v6694_v24  ;;  %v3441_v46 = vmul.f32 %v3440_v41, %v6642_v44  ;;  %v3463_v40 = vadd.f32 0.00028619796, %v3462_v20 }
 0x25d   :  { %v2185_v53 = vadd.f32 0.0036580483, %v2184_v29  ;;  %v2196_v49 = vadd.f32 0.014752088, %v2195_v33  ;;  %v2174_v63 = vand.u32 2147483648, %v6694_v24  ;;  %vm2169_vm0 = vweird.f32 %v5008_v37 }
 0x25e   :  { %v4625_v47 = vclamps-f32 %v3417_v48, 1.0  ;;  %v2165_v62 = vsub.f32 1.0, %v2164_v30  ;;  %v3473_v52 = vmul.f32 3.8918573e-05, %v6718_v34  ;;  %v6732_v45 = vadd.f32 1.0, %v3441_v46 }
 0x25f   :  { %v2186_v6 = vmul.f32 %v2185_v53, %v6697_v7  ;;  %v2197_v12 = vmul.f32 %v2196_v49, %v6697_v7  ;;  %v3464_v32 = vmul.f32 %v3463_v40, %v6718_v34  ;;  %vm2168_vm1 = vweird.f32 %v6694_v24 }
 0x260   :  { %v4029_v42 = vadd.f32 1.0, %v4625_v47  ;;  %v2166_v35 = vmul.f32 %v5008_v37, %v2165_v62  ;;  %v3474_v9 = vadd.f32 0.001143296, %v3473_v52  ;;  %v3429_v61 = vadd.f32 0.18741608, %v3428_v54  ;;  %vm2170_vm2 = vmor %vm2168_vm1, %vm2169_vm0  ;;  %v752_v54 = vpop.f32.mrf.mxu0 }
 0x261   :  { %5009 = vrcp.f32 %v6732_v45  ;;  %v6740_v3 = vadd.f32 %v6466_v5, %v920_v58  ;;  %v2187_v17 = vadd.f32 0.05243302, %v2186_v6  ;;  %v2198_v26 = vadd.f32 0.112945676, %v2197_v12 }
 0x262   :  { %v4093_v4 = vmul.f32 %v4029_v42, %v6680_v36  ;;  %v2167_v11 = vadd.f32 %v5008_v37, %v2166_v35  ;;  %vm2173_vm3 = vcmp.eq.f32.partialorder %v2172_v14, 8.507059e+37  ;;  %v2175_v13 = vor.u32 1.1754944e-38, %v2174_v63 }
 0x263   :  { %v3465_v28 = vadd.f32 0.0036580483, %v3464_v32  ;;  %v3475_v38 = vmul.f32 %v3474_v9, %v6718_v34  ;;  %v2188_v15 = vmul.f32 %v2187_v17, %v6697_v7  ;;  %v2199_v56 = vmul.f32 %v2198_v26, %v6697_v7 }
 0x264   :  { %v4843_v24 = vpack.c.bf16 %v4093_v4, %v6706_v22  ;;  %v2171_v23 = vsel %vm2170_vm2, %v5008_v37, %v2167_v11  ;;  %v6749_v1 = vmul.f32 0.70710677, %v6740_v3  ;;  %v3430_v50 = vmul.f32 %v3429_v61, %v6642_v44 }
 0x265   :  { %v2176_v51 = vsel %vm2173_vm3, %v2175_v13, %v2171_v23  ;;  %v3466_v36 = vmul.f32 %v3465_v28, %v6718_v34  ;;  %v3476_v39 = vadd.f32 0.014752088, %v3475_v38  ;;  %v2200_v21 = vadd.f32 0.4994258, %v2199_v56 }
 0x266   :  { %4903 = vst [vmem:[#allocation8 + $0xc0] sm:$0xff] %v4843_v24   ;;  %v1000_v10 = vadd.f32 %v999_v27, %v830_v57  ;;  %v2177_v25 = vmul.f32 %v2176_v51, %v2152_v43  ;;  %v2220_v41 = vmul.f32 %v6749_v1, %v6749_v1  ;;  %v1310_v58 = vmul.f32 0.5, %v6573_v59  ;;  %v921_v59 = vpop.f32.mrf.mxu1 }
 0x267   :  { %v5010_v8 = vpop.eup %5009  ;;  %v3467_v22 = vadd.f32 0.05243302, %v3466_v36  ;;  %v3477_v16 = vmul.f32 %v3476_v39, %v6718_v34  ;;  %v2189_v2 = vadd.f32 0.18741608, %v2188_v15  ;;  %v2201_v29 = vmul.f32 %v2200_v21, %v6697_v7 }
 0x268   :  { %v3444_v37 = vmul.f32 %v5010_v8, %v6732_v45  ;;  %v6759_v20 = vmin.f32 %v2220_v41, 16.0  ;;  %v3431_v48 = vadd.f32 1.1283791, %v3430_v50  ;;  %v6762_v30 = vmul.f32 0.5, %v6659_v60 }
 0x269   :  { %v3468_v33 = vmul.f32 %v3467_v22, %v6718_v34  ;;  %v3478_v44 = vadd.f32 0.112945676, %v3477_v16  ;;  %v6765_v14 = vadd.f32 %v6466_v5, %v1000_v10  ;;  %v4594_v46 = vclamps-f32 %v2177_v25, 1.0 }
 0x26a   :  { %v3445_v43 = vsub.f32 1.0, %v3444_v37  ;;  %v6767_v53 = vadd.f32 1.0, %v2201_v29  ;;  %v2222_v40 = vmul.f32 2.1237322e-06, %v6759_v20  ;;  %v2190_v62 = vmul.f32 %v2189_v2, %v6697_v7 }
 0x26b   :  { %v3479_v49 = vmul.f32 %v3478_v44, %v6718_v34  ;;  %v3469_v63 = vadd.f32 0.18741608, %v3468_v33  ;;  %v2233_v52 = vmul.f32 3.8918573e-05, %v6759_v20  ;;  %vm3449_vm4 = vweird.f32 %v5010_v8 }
 0x26c   :  { %v3446_v47 = vmul.f32 %v5010_v8, %v3445_v43  ;;  %v3452_v60 = vand.u32 2147483647, %v6732_v45  ;;  %5011 = vrcp.f32 %v6767_v53  ;;  %v922_v6 = vadd.f32 %v921_v59, %v752_v54 }
 0x26d   :  { %v3454_v32 = vand.u32 2147483648, %v6732_v45  ;;  %v3480_v42 = vadd.f32 0.4994258, %v3479_v49  ;;  %v2223_v35 = vadd.f32 0.00028619796, %v2222_v40  ;;  %v3998_v9 = vadd.f32 1.0, %v4594_v46 }
 0x26e   :  { %v3447_v12 = vadd.f32 %v5010_v8, %v3446_v47  ;;  %vm3448_vm5 = vweird.f32 %v6732_v45  ;;  %v2234_v61 = vadd.f32 0.001143296, %v2233_v52  ;;  %v6778_v7 = vmul.f32 0.70710677, %v6765_v14 }
 0x26f   :  { %vm6780_vm6 = vmor %vm3448_vm5, %vm3449_vm4  ;;  %v2191_v11 = vadd.f32 1.1283791, %v2190_v62  ;;  %v3470_v17 = vmul.f32 %v3469_v63, %v6718_v34  ;;  %v3481_v26 = vmul.f32 %v3480_v42, %v6718_v34  ;;  %v2224_v13 = vmul.f32 %v2223_v35, %v6759_v20 }
 0x270   :  { %v3451_v28 = vsel %vm6780_vm6, %v5010_v8, %v3447_v12  ;;  %v2235_v45 = vmul.f32 %v2234_v61, %v6759_v20  ;;  %v3500_v38 = vmul.f32 %v6778_v7, %v6778_v7  ;;  %v6793_v57 = vadd.f32 %v6466_v5, %v922_v6 }
 0x271   :  { %v3432_v27 = vmul.f32 %v3431_v48, %v6627_v31  ;;  %v3455_v24 = vor.u32 1.1754944e-38, %v3454_v32  ;;  %v6796_v23 = vadd.f32 1.0, %v3481_v26  ;;  %v2225_v15 = vadd.f32 0.0036580483, %v2224_v13 }
 0x272   :  { %v5012_v34 = vpop.eup %5011  ;;  %vm3453_vm7 = vcmp.eq.f32.partialorder %v3452_v60, 8.507059e+37  ;;  %v2212_v56 = vand.u32 2147483647, %v6767_v53  ;;  %v2236_v51 = vadd.f32 0.014752088, %v2235_v45  ;;  %v6799_v36 = vmin.f32 %v3500_v38, 16.0  ;;  %v832_v45 = vpop.f32.mrf.mxu2 }
 0x273   :  { %v6801_v39 = vmul.f32 %v3998_v9, %v1310_v58  ;;  %v3456_v50 = vsel %vm3453_vm7, %v3455_v24, %v3451_v28  ;;  %v2204_v21 = vmul.f32 %v5012_v34, %v6767_v53  ;;  %5013 = vrcp.f32 %v6796_v23  ;;  %v1001_v38 = vpop.f32.mrf.mxu3 }
 0x274   :  { %v2192_v5 = vmul.f32 %v2191_v11, %v6674_v0  ;;  %v2214_v31 = vand.u32 2147483648, %v6767_v53  ;;  %v3471_v10 = vadd.f32 1.1283791, %v3470_v17  ;;  %v6808_v8 = vmul.f32 0.70710677, %v6793_v57 }
 0x275   :  { %v2205_v25 = vsub.f32 1.0, %v2204_v21  ;;  %v2226_v22 = vmul.f32 %v2225_v15, %v6759_v20  ;;  %v2237_v16 = vmul.f32 %v2236_v51, %v6759_v20  ;;  %v3502_v41 = vmul.f32 2.1237322e-06, %v6799_v36 }
 0x276   :  { %v6813_v58 = vmul.f32 %v3456_v50, %v3432_v27  ;;  %vm2208_vm8 = vweird.f32 %v6767_v53  ;;  %vm6816_vm9 = vcmp.eq.f32.partialorder %v2212_v56, 8.507059e+37  ;;  %v3513_v0 = vmul.f32 3.8918573e-05, %v6799_v36 }
 0x277   :  { %v2206_v2 = vmul.f32 %v5012_v34, %v2205_v25  ;;  %vm2209_vm10 = vweird.f32 %v5012_v34  ;;  %v2238_v29 = vadd.f32 0.112945676, %v2237_v16  ;;  %v3503_v33 = vadd.f32 0.00028619796, %v3502_v41  ;;  %v924_v25 = vpop.f32.mrf.mxu1 }
 0x278   :  { %v2215_v44 = vor.u32 1.1754944e-38, %v2214_v31  ;;  %v3472_v48 = vmul.f32 %v3471_v10, %v6688_v19  ;;  %v3514_v43 = vadd.f32 0.001143296, %v3513_v0  ;;  %v2260_v54 = vmul.f32 %v6808_v8, %v6808_v8  ;;  %vm2210_vm11 = vmor %vm2208_vm8, %vm2209_vm10  ;;  %v755_v10 = vpop.f32.mrf.mxu0 }
 0x279   :  { %v5014_v59 = vpop.eup %5013  ;;  %v2207_v46 = vadd.f32 %v5012_v34, %v2206_v2  ;;  %v2227_v49 = vadd.f32 0.05243302, %v2226_v22  ;;  %v2239_v40 = vmul.f32 %v2238_v29, %v6759_v20  ;;  %v3504_v47 = vmul.f32 %v3503_v33, %v6799_v36 }
 0x27a   :  { %v4626_v62 = vclamps-f32 %v6813_v58, 1.0  ;;  %v3484_v63 = vmul.f32 %v5014_v59, %v6796_v23  ;;  %v3492_v19 = vand.u32 2147483647, %v6796_v23  ;;  %v3515_v52 = vmul.f32 %v3514_v43, %v6799_v36 }
 0x27b   :  { %v2211_v60 = vsel %vm2210_vm11, %v5012_v34, %v2207_v46  ;;  %v2240_v6 = vadd.f32 0.4994258, %v2239_v40  ;;  %v3505_v12 = vadd.f32 0.0036580483, %v3504_v47  ;;  %v6832_v32 = vmin.f32 %v2260_v54, 16.0 }
 0x27c   :  { %v2216_v42 = vsel %vm6816_vm9, %v2215_v44, %v2211_v60  ;;  %v3485_v35 = vsub.f32 1.0, %v3484_v63  ;;  %v3494_v9 = vand.u32 2147483648, %v6796_v23  ;;  %v3516_v61 = vadd.f32 0.014752088, %v3515_v52  ;;  %v6856_v46 = vld [vmem:[%s7689_s2] ss:$0 sm:$0xff] }
 0x27d   :  { %v2217_v53 = vmul.f32 %v2216_v42, %v2192_v5  ;;  %v2228_v4 = vmul.f32 %v2227_v49, %v6759_v20  ;;  %v2241_v11 = vmul.f32 %v2240_v6, %v6759_v20  ;;  %v2262_v17 = vmul.f32 2.1237322e-06, %v6832_v32 }
 0x27e   :  { %v3486_v26 = vmul.f32 %v5014_v59, %v3485_v35  ;;  %vm3489_vm12 = vweird.f32 %v5014_v59  ;;  %v3517_v13 = vmul.f32 %v3516_v61, %v6799_v36  ;;  %v2273_v28 = vmul.f32 3.8918573e-05, %v6832_v32 }
 0x27f   :  { %v4595_v27 = vclamps-f32 %v2217_v53, 1.0  ;;  %v6842_v24 = vadd.f32 1.0, %v2241_v11  ;;  %v3506_v15 = vmul.f32 %v3505_v12, %v6799_v36  ;;  %v2263_v34 = vadd.f32 0.00028619796, %v2262_v17 }
 0x280   :  { %v3487_v56 = vadd.f32 %v5014_v59, %v3486_v26  ;;  %vm3488_vm13 = vweird.f32 %v6796_v23  ;;  %v3495_v51 = vor.u32 1.1754944e-38, %v3494_v9  ;;  %v3518_v50 = vadd.f32 0.112945676, %v3517_v13 }
 0x281   :  { %v3999_v21 = vadd.f32 1.0, %v4595_v27  ;;  %vm3490_vm14 = vmor %vm3488_vm13, %vm3489_vm12  ;;  %5015 = vrcp.f32 %v6842_v24  ;;  %v2274_v5 = vadd.f32 0.001143296, %v2273_v28  ;;  %v1002_v31 = vadd.f32 %v1001_v38, %v832_v45 }
 0x282   :  { %v3491_v22 = vsel %vm3490_vm14, %v5014_v59, %v3487_v56  ;;  %vm3493_vm15 = vcmp.eq.f32.partialorder %v3492_v19, 8.507059e+37  ;;  %v2229_v16 = vadd.f32 0.18741608, %v2228_v4  ;;  %v3519_v41 = vmul.f32 %v3518_v50, %v6799_v36 }
 0x283   :  { %v4063_v58 = vmul.f32 %v3999_v21, %v6762_v30  ;;  %v3496_v37 = vsel %vm3493_vm15, %v3495_v51, %v3491_v22  ;;  %v3507_v0 = vadd.f32 0.05243302, %v3506_v15  ;;  %v2264_v23 = vmul.f32 %v2263_v34, %v6832_v32 }
 0x284   :  { %v1342_v2 = vmul.f32 0.5, %v6608_v55  ;;  %v3497_v29 = vmul.f32 %v3496_v37, %v3472_v48  ;;  %v3520_v33 = vadd.f32 0.4994258, %v3519_v41  ;;  %v925_v44 = vadd.f32 %v924_v25, %v755_v10 }
 0x285   :  { %v4768_v43 = vpack.c.bf16 %v4063_v58, %v6801_v39  ;;  %v2265_v54 = vadd.f32 0.0036580483, %v2264_v23  ;;  %v2275_v59 = vmul.f32 %v2274_v5, %v6832_v32  ;;  %v6859_v30 = vadd.f32 %v6856_v46, %v1002_v31  ;;  %v835_v5 = vpop.f32.mrf.mxu2  ;;  %v1004_v31 = vpop.f32.mrf.mxu3 }
 0x286   :  { %v4030_v49 = vadd.f32 1.0, %v4626_v62  ;;  %v4627_v40 = vclamps-f32 %v3497_v29, 1.0  ;;  %v2230_v55 = vmul.f32 %v2229_v16, %v6759_v20  ;;  %v3521_v48 = vmul.f32 %v3520_v33, %v6799_v36 }
 0x287   :  { %v5016_v47 = vpop.eup %5015  ;;  %4888 = vst [vmem:[#allocation8 + $0x48] sm:$0xff] %v4768_v43   ;;  %v3508_v39 = vmul.f32 %v3507_v0, %v6799_v36  ;;  %v2266_v63 = vmul.f32 %v2265_v54, %v6832_v32  ;;  %v2276_v19 = vadd.f32 0.014752088, %v2275_v59  ;;  %v6866_v52 = vmul.f32 0.70710677, %v6859_v30 }
 0x288   :  { %v1343_v60 = vmul.f32 0.5, %v6671_v18  ;;  %v4031_v6 = vadd.f32 1.0, %v4627_v40  ;;  %v2244_v62 = vmul.f32 %v5016_v47, %v6842_v24  ;;  %v6871_v12 = vadd.f32 %v6856_v46, %v925_v44 }
 0x289   :  { %v6873_v20 = vadd.f32 1.0, %v3521_v48  ;;  %v2267_v42 = vadd.f32 0.05243302, %v2266_v63  ;;  %v2277_v35 = vmul.f32 %v2276_v19, %v6832_v32  ;;  %v3540_v9 = vmul.f32 %v6866_v52, %v6866_v52  ;;  %v926_v48 = vpop.f32.mrf.mxu1 }
 0x28a   :  { %v4094_v61 = vmul.f32 %v4030_v49, %v1342_v2  ;;  %v4095_v53 = vmul.f32 %v4031_v6, %v1343_v60  ;;  %v2245_v4 = vsub.f32 1.0, %v2244_v62  ;;  %v2231_v11 = vadd.f32 1.1283791, %v2230_v55  ;;  %v757_v55 = vpop.f32.mrf.mxu0 }
 0x28b   :  { %v3509_v17 = vadd.f32 0.18741608, %v3508_v39  ;;  %5017 = vrcp.f32 %v6873_v20  ;;  %v2268_v13 = vmul.f32 %v2267_v42, %v6832_v32  ;;  %v2278_v28 = vadd.f32 0.112945676, %v2277_v35 }
 0x28c   :  { %v4848_v18 = vpack.c.bf16 %v4095_v53, %v4094_v61  ;;  %v2246_v26 = vmul.f32 %v5016_v47, %v2245_v4  ;;  %v6881_v45 = vmul.f32 0.5, %v6740_v3  ;;  %vm2249_vm0 = vweird.f32 %v5016_v47 }
 0x28d   :  { %v6883_v38 = vmin.f32 %v3540_v9, 16.0  ;;  %v6886_v27 = vmul.f32 0.70710677, %v6871_v12  ;;  %v2252_v34 = vand.u32 2147483647, %v6842_v24  ;;  %v2254_v56 = vand.u32 2147483648, %v6842_v24 }
 0x28e   :  { %4904 = vst [vmem:[#allocation8 + $0xc8] sm:$0xff] %v4848_v18   ;;  %v2247_v15 = vadd.f32 %v5016_v47, %v2246_v26  ;;  %v2279_v51 = vmul.f32 %v2278_v28, %v6832_v32  ;;  %vm2248_vm1 = vweird.f32 %v6842_v24  ;;  %v2232_v10 = vmul.f32 %v2231_v11, %v6749_v1 }
 0x28f   :  { %v3542_v50 = vmul.f32 2.1237322e-06, %v6883_v38  ;;  %v3553_v3 = vmul.f32 3.8918573e-05, %v6883_v38  ;;  %v2300_v21 = vmul.f32 %v6886_v27, %v6886_v27  ;;  %vm6898_vm2 = vmor %vm2248_vm1, %vm2249_vm0  ;;  %v3510_v22 = vmul.f32 %v3509_v17, %v6799_v36 }
 0x290   :  { %v2269_v16 = vadd.f32 0.18741608, %v2268_v13  ;;  %v2280_v24 = vadd.f32 0.4994258, %v2279_v51  ;;  %v2251_v58 = vsel %vm6898_vm2, %v5016_v47, %v2247_v15  ;;  %vm2253_vm3 = vcmp.eq.f32.partialorder %v2252_v34, 8.507059e+37 }
 0x291   :  { %v6903_v41 = vpop.eup %5017  ;;  %v3543_v37 = vadd.f32 0.00028619796, %v3542_v50  ;;  %v3554_v0 = vadd.f32 0.001143296, %v3553_v3  ;;  %v6907_v23 = vmin.f32 %v2300_v21, 16.0  ;;  %v2255_v1 = vor.u32 1.1754944e-38, %v2254_v56 }
 0x292   :  { %v3524_v2 = vmul.f32 %v6903_v41, %v6873_v20  ;;  %v1005_v29 = vadd.f32 %v1004_v31, %v835_v5  ;;  %v2281_v33 = vmul.f32 %v2280_v24, %v6832_v32  ;;  %v3511_v59 = vadd.f32 1.1283791, %v3510_v22 }
 0x293   :  { %v3544_v36 = vmul.f32 %v3543_v37, %v6883_v38  ;;  %v3555_v44 = vmul.f32 %v3554_v0, %v6883_v38  ;;  %v2302_v43 = vmul.f32 2.1237322e-06, %v6907_v23  ;;  %v2256_v54 = vsel %vm2253_vm3, %v2255_v1, %v2251_v58 }
 0x294   :  { %v3525_v49 = vsub.f32 1.0, %v3524_v2  ;;  %v2313_v40 = vmul.f32 3.8918573e-05, %v6907_v23  ;;  %v2270_v47 = vmul.f32 %v2269_v16, %v6832_v32  ;;  %v6917_v39 = vadd.f32 1.0, %v2281_v33 }
 0x295   :  { %v3545_v63 = vadd.f32 0.0036580483, %v3544_v36  ;;  %v3556_v19 = vadd.f32 0.014752088, %v3555_v44  ;;  %v2303_v6 = vadd.f32 0.00028619796, %v2302_v43  ;;  %v6921_v42 = vadd.f32 %v6856_v46, %v1005_v29 }
 0x296   :  { %v3526_v60 = vmul.f32 %v6903_v41, %v3525_v49  ;;  %v2314_v62 = vadd.f32 0.001143296, %v2313_v40  ;;  %v2257_v35 = vmul.f32 %v2256_v54, %v2232_v10  ;;  %v3532_v9 = vand.u32 2147483647, %v6873_v20 }
 0x297   :  { %5019 = vrcp.f32 %v6917_v39  ;;  %v927_v61 = vadd.f32 %v926_v48, %v757_v55  ;;  %vm3529_vm4 = vweird.f32 %v6903_v41  ;;  %v3534_v32 = vand.u32 2147483648, %v6873_v20 }
 0x298   :  { %v3546_v53 = vmul.f32 %v3545_v63, %v6883_v38  ;;  %v3557_v4 = vmul.f32 %v3556_v19, %v6883_v38  ;;  %v3527_v11 = vadd.f32 %v6903_v41, %v3526_v60  ;;  %v2271_v17 = vadd.f32 1.1283791, %v2270_v47 }
 0x299   :  { %v2304_v18 = vmul.f32 %v2303_v6, %v6907_v23  ;;  %v2315_v26 = vmul.f32 %v2314_v62, %v6907_v23  ;;  %v6933_v15 = vmul.f32 0.70710677, %v6921_v42  ;;  %v4596_v34 = vclamps-f32 %v2257_v35, 1.0  ;;  %v837_v62 = vpop.f32.mrf.mxu2  ;;  %v1006_v35 = vpop.f32.mrf.mxu3 }
 0x29a   :  { %v3547_v13 = vadd.f32 0.05243302, %v3546_v53  ;;  %v3558_v28 = vadd.f32 0.112945676, %v3557_v4  ;;  %vm3528_vm5 = vweird.f32 %v6873_v20  ;;  %v6937_v51 = vadd.f32 %v6856_v46, %v927_v61 }
 0x29b   :  { %v2316_v56 = vadd.f32 0.014752088, %v2315_v26  ;;  %v3512_v50 = vmul.f32 %v3511_v59, %v6778_v7  ;;  %vm6942_vm6 = vmor %vm3528_vm5, %vm3529_vm4  ;;  %v2305_v5 = vadd.f32 0.0036580483, %v2304_v18  ;;  %v3580_v31 = vmul.f32 %v6933_v15, %v6933_v15 }
 0x29c   :  { %v3559_v21 = vmul.f32 %v3558_v28, %v6883_v38  ;;  %v3531_v20 = vsel %vm6942_vm6, %v6903_v41, %v3527_v11  ;;  %v3548_v25 = vmul.f32 %v3547_v13, %v6883_v38  ;;  %v6955_v22 = vmul.f32 0.70710677, %v6937_v51 }
 0x29d   :  { %v5020_v10 = vpop.eup %5019  ;;  %v2317_v7 = vmul.f32 %v2316_v56, %v6907_v23  ;;  %vm3533_vm7 = vcmp.eq.f32.partialorder %v3532_v9, 8.507059e+37  ;;  %v3535_v16 = vor.u32 1.1754944e-38, %v3534_v32  ;;  %v2272_v24 = vmul.f32 %v2271_v17, %v6808_v8 }
 0x29e   :  { %v2284_v58 = vmul.f32 %v5020_v10, %v6917_v39  ;;  %v4000_v37 = vadd.f32 1.0, %v4596_v34  ;;  %v2294_v0 = vand.u32 2147483648, %v6917_v39  ;;  %v3560_v1 = vadd.f32 0.4994258, %v3559_v21 }
 0x29f   :  { %v2318_v2 = vadd.f32 0.112945676, %v2317_v7  ;;  %v3536_v29 = vsel %vm3533_vm7, %v3535_v16, %v3531_v20  ;;  %v2306_v33 = vmul.f32 %v2305_v5, %v6907_v23  ;;  %v6961_v36 = vmin.f32 %v3580_v31, 16.0 }
 0x2a0   :  { %v2285_v41 = vsub.f32 1.0, %v2284_v58  ;;  %v3549_v44 = vadd.f32 0.18741608, %v3548_v25  ;;  %v3561_v43 = vmul.f32 %v3560_v1, %v6883_v38  ;;  %v2340_v8 = vmul.f32 %v6955_v22, %v6955_v22 }
 0x2a1   :  { %v2319_v54 = vmul.f32 %v2318_v2, %v6907_v23  ;;  %vm2289_vm8 = vweird.f32 %v5020_v10  ;;  %v2292_v49 = vand.u32 2147483647, %v6917_v39  ;;  %v3582_v40 = vmul.f32 2.1237322e-06, %v6961_v36 }
 0x2a2   :  { %v2286_v59 = vmul.f32 %v5020_v10, %v2285_v41  ;;  %v3537_v55 = vmul.f32 %v3536_v29, %v3512_v50  ;;  %vm2288_vm9 = vweird.f32 %v6917_v39  ;;  %v6970_v48 = vadd.f32 1.0, %v3561_v43 }
 0x2a3   :  { %v2320_v47 = vadd.f32 0.4994258, %v2319_v54  ;;  %v2307_v19 = vadd.f32 0.05243302, %v2306_v33  ;;  %v3583_v60 = vadd.f32 0.00028619796, %v3582_v40  ;;  %vm2290_vm10 = vmor %vm2288_vm9, %vm2289_vm8  ;;  %v3550_v61 = vmul.f32 %v3549_v44, %v6883_v38 }
 0x2a4   :  { %v2287_v63 = vadd.f32 %v5020_v10, %v2286_v59  ;;  %v3593_v6 = vmul.f32 3.8918573e-05, %v6961_v36  ;;  %v2295_v9 = vor.u32 1.1754944e-38, %v2294_v0  ;;  %5021 = vrcp.f32 %v6970_v48 }
 0x2a5   :  { %v6975_v32 = vmin.f32 %v2340_v8, 16.0  ;;  %vm2293_vm11 = vcmp.eq.f32.partialorder %v2292_v49, 8.507059e+37  ;;  %v2321_v39 = vmul.f32 %v2320_v47, %v6907_v23  ;;  %v3584_v4 = vmul.f32 %v3583_v60, %v6961_v36 }
 0x2a6   :  { %v2291_v53 = vsel %vm2290_vm10, %v5020_v10, %v2287_v63  ;;  %v4628_v11 = vclamps-f32 %v3537_v55, 1.0  ;;  %v3594_v18 = vadd.f32 0.001143296, %v3593_v6  ;;  %v1007_v26 = vadd.f32 %v1006_v35, %v837_v62 }
 0x2a7   :  { %v2296_v17 = vsel %vm2293_vm11, %v2295_v9, %v2291_v53  ;;  %v2308_v28 = vmul.f32 %v2307_v19, %v6907_v23  ;;  %v6980_v34 = vadd.f32 1.0, %v2321_v39  ;;  %v3585_v38 = vadd.f32 0.0036580483, %v3584_v4 }
 0x2a8   :  { %v2297_v13 = vmul.f32 %v2296_v17, %v2272_v24  ;;  %v1313_v56 = vmul.f32 0.5, %v6793_v57  ;;  %v3551_v50 = vadd.f32 1.1283791, %v3550_v61  ;;  %v3595_v3 = vmul.f32 %v3594_v18, %v6961_v36 }
 0x2a9   :  { %v2342_v21 = vmul.f32 2.1237322e-06, %v6975_v32  ;;  %v4064_v5 = vmul.f32 %v4000_v37, %v6881_v45  ;;  %5023 = vrcp.f32 %v6980_v34  ;;  %v2353_v10 = vmul.f32 3.8918573e-05, %v6975_v32 }
 0x2aa   :  { %v4597_v31 = vclamps-f32 %v2297_v13, 1.0  ;;  %v5022_v20 = vpop.eup %5021  ;;  %v4032_v25 = vadd.f32 1.0, %v4628_v11  ;;  %v3586_v7 = vmul.f32 %v3585_v38, %v6961_v36  ;;  %v3596_v16 = vadd.f32 0.014752088, %v3595_v3 }
 0x2ab   :  { %v6990_v24 = vadd.f32 %v6856_v46, %v1007_v26  ;;  %v3564_v58 = vmul.f32 %v5022_v20, %v6970_v48  ;;  %v2309_v0 = vadd.f32 0.18741608, %v2308_v28  ;;  %v2343_v1 = vadd.f32 0.00028619796, %v2342_v21  ;;  %v929_v21 = vpop.f32.mrf.mxu1 }
 0x2ac   :  { %v4001_v57 = vadd.f32 1.0, %v4597_v31  ;;  %v3552_v45 = vmul.f32 %v3551_v50, %v6866_v52  ;;  %v3572_v37 = vand.u32 2147483647, %v6970_v48  ;;  %v3587_v2 = vadd.f32 0.05243302, %v3586_v7 }
 0x2ad   :  { %v3597_v29 = vmul.f32 %v3596_v16, %v6961_v36  ;;  %v3565_v33 = vsub.f32 1.0, %v3564_v58  ;;  %v2344_v44 = vmul.f32 %v2343_v1, %v6975_v32  ;;  %v2354_v43 = vadd.f32 0.001143296, %v2353_v10 }
 0x2ae   :  { %v4065_v41 = vmul.f32 %v4001_v57, %v1313_v56  ;;  %vm3569_vm12 = vweird.f32 %v5022_v20  ;;  %v3574_v54 = vand.u32 2147483648, %v6970_v48  ;;  %v6999_v59 = vmul.f32 0.70710677, %v6990_v24 }
 0x2af   :  { %v3598_v8 = vadd.f32 0.112945676, %v3597_v29  ;;  %v7001_v49 = vpop.eup %5023  ;;  %v3566_v40 = vmul.f32 %v5022_v20, %v3565_v33  ;;  %v2345_v55 = vadd.f32 0.0036580483, %v2344_v44  ;;  %v2355_v47 = vmul.f32 %v2354_v43, %v6975_v32 }
 0x2b0   :  { %v4773_v52 = vpack.c.bf16 %v4065_v41, %v4064_v5  ;;  %vm3568_vm13 = vweird.f32 %v6970_v48  ;;  %v2324_v63 = vmul.f32 %v7001_v49, %v6980_v34  ;;  %v3588_v19 = vmul.f32 %v3587_v2, %v6961_v36 }
 0x2b1   :  { %v3599_v60 = vmul.f32 %v3598_v8, %v6961_v36  ;;  %v3567_v6 = vadd.f32 %v5022_v20, %v3566_v40  ;;  %v2346_v62 = vmul.f32 %v2345_v55, %v6975_v32  ;;  %v2356_v35 = vadd.f32 0.014752088, %v2355_v47  ;;  %vm3570_vm14 = vmor %vm3568_vm13, %vm3569_vm12  ;;  %v1009_v8 = vpop.f32.mrf.mxu3 }
 0x2b2   :  { %4889 = vst [vmem:[#allocation8 + $0x50] sm:$0xff] %v4773_v52   ;;  %v3620_v9 = vmul.f32 %v6999_v59, %v6999_v59  ;;  %v3575_v61 = vor.u32 1.1754944e-38, %v3574_v54  ;;  %v2310_v48 = vmul.f32 %v2309_v0, %v6907_v23  ;;  %v2325_v53 = vsub.f32 1.0, %v2324_v63  ;;  %v760_v23 = vpop.f32.mrf.mxu0  ;;  %v840_v54 = vpop.f32.mrf.mxu2 }
 0x2b3   :  { %v3600_v39 = vadd.f32 0.4994258, %v3599_v60  ;;  %v3571_v4 = vsel %vm3570_vm14, %v5022_v20, %v3567_v6  ;;  %vm3573_vm15 = vcmp.eq.f32.partialorder %v3572_v37, 8.507059e+37  ;;  %v2357_v11 = vmul.f32 %v2356_v35, %v6975_v32 }
 0x2b4   :  { %v7015_v17 = vmin.f32 %v3620_v9, 16.0  ;;  %v3576_v18 = vsel %vm3573_vm15, %v3575_v61, %v3571_v4  ;;  %v3589_v26 = vadd.f32 0.18741608, %v3588_v19  ;;  %v2347_v28 = vadd.f32 0.05243302, %v2346_v62 }
 0x2b5   :  { %v3601_v13 = vmul.f32 %v3600_v39, %v6961_v36  ;;  %v3577_v38 = vmul.f32 %v3576_v18, %v3552_v45  ;;  %v2326_v56 = vmul.f32 %v7001_v49, %v2325_v53  ;;  %v2358_v50 = vadd.f32 0.112945676, %v2357_v11  ;;  %v931_v39 = vpop.f32.mrf.mxu1 }
 0x2b6   :  { %v3622_v3 = vmul.f32 2.1237322e-06, %v7015_v17  ;;  %v1344_v5 = vmul.f32 0.5, %v6765_v14  ;;  %v1345_v31 = vmul.f32 0.5, %v6859_v30  ;;  %v2311_v10 = vadd.f32 1.1283791, %v2310_v48 }
 0x2b7   :  { %v7022_v20 = vadd.f32 1.0, %v3601_v13  ;;  %v4629_v7 = vclamps-f32 %v3577_v38, 1.0  ;;  %v2359_v16 = vmul.f32 %v2358_v50, %v6975_v32  ;;  %v3633_v58 = vmul.f32 3.8918573e-05, %v7015_v17 }
 0x2b8   :  { %v3623_v57 = vadd.f32 0.00028619796, %v3622_v3  ;;  %v4096_v0 = vmul.f32 %v4032_v25, %v1344_v5  ;;  %v2348_v1 = vmul.f32 %v2347_v28, %v6975_v32  ;;  %v930_v45 = vadd.f32 %v929_v21, %v760_v23 }
 0x2b9   :  { %5025 = vrcp.f32 %v7022_v20  ;;  %v4033_v37 = vadd.f32 1.0, %v4629_v7  ;;  %v2327_v14 = vadd.f32 %v7001_v49, %v2326_v56  ;;  %vm2329_vm0 = vweird.f32 %v7001_v49 }
 0x2ba   :  { %v3590_v30 = vmul.f32 %v3589_v26, %v6961_v36  ;;  %v2312_v2 = vmul.f32 %v2311_v10, %v6886_v27  ;;  %v2334_v29 = vand.u32 2147483648, %v6980_v34  ;;  %v2360_v41 = vadd.f32 0.4994258, %v2359_v16 }
 0x2bb   :  { %v3624_v33 = vmul.f32 %v3623_v57, %v7015_v17  ;;  %v4097_v25 = vmul.f32 %v4033_v37, %v1345_v31  ;;  %vm2328_vm1 = vweird.f32 %v6980_v34  ;;  %v2332_v44 = vand.u32 2147483647, %v6980_v34 }
 0x2bc   :  { %v3634_v43 = vadd.f32 0.001143296, %v3633_v58  ;;  %vm7036_vm2 = vmor %vm2328_vm1, %vm2329_vm0  ;;  %v2349_v36 = vadd.f32 0.18741608, %v2348_v1  ;;  %v2361_v27 = vmul.f32 %v2360_v41, %v6975_v32  ;;  %v7042_v55 = vadd.f32 %v6856_v46, %v930_v45 }
 0x2bd   :  { %v3625_v40 = vadd.f32 0.0036580483, %v3624_v33  ;;  %v4853_v47 = vpack.c.bf16 %v4097_v25, %v4096_v0  ;;  %v2331_v63 = vsel %vm7036_vm2, %v7001_v49, %v2327_v14  ;;  %v3591_v34 = vadd.f32 1.1283791, %v3590_v30  ;;  %v762_v49 = vpop.f32.mrf.mxu0 }
 0x2be   :  { %v3635_v19 = vmul.f32 %v3634_v43, %v7015_v17  ;;  %v2335_v6 = vor.u32 1.1754944e-38, %v2334_v29  ;;  %v7050_v62 = vadd.f32 1.0, %v2361_v27  ;;  %v1010_v9 = vadd.f32 %v1009_v8, %v840_v54 }
 0x2bf   :  { %v7048_v60 = vpop.eup %5025  ;;  %v3626_v35 = vmul.f32 %v3625_v40, %v7015_v17  ;;  %4905 = vst [vmem:[#allocation8 + $0xd0] sm:$0xff] %v4853_v47   ;;  %vm2333_vm3 = vcmp.eq.f32.partialorder %v2332_v44, 8.507059e+37  ;;  %v7056_v53 = vmul.f32 0.70710677, %v7042_v55  ;;  %v3612_v11 = vand.u32 2147483647, %v7022_v20 }
 0x2c0   :  { %v3604_v61 = vmul.f32 %v7048_v60, %v7022_v20  ;;  %v3636_v48 = vadd.f32 0.014752088, %v3635_v19  ;;  %v2336_v4 = vsel %vm2333_vm3, %v2335_v6, %v2331_v63  ;;  %v2350_v18 = vmul.f32 %v2349_v36, %v6975_v32 }
 0x2c1   :  { %5027 = vrcp.f32 %v7050_v62  ;;  %v7062_v26 = vmul.f32 %v3591_v34, %v6933_v15  ;;  %v3627_v28 = vadd.f32 0.05243302, %v3626_v35  ;;  %vm3608_vm4 = vweird.f32 %v7022_v20 }
 0x2c2   :  { %v3605_v13 = vsub.f32 1.0, %v3604_v61  ;;  %v3637_v38 = vmul.f32 %v3636_v48, %v7015_v17  ;;  %v2380_v56 = vmul.f32 %v7056_v53, %v7056_v53  ;;  %v7069_v50 = vadd.f32 %v6856_v46, %v1010_v9 }
 0x2c3   :  { %v932_v3 = vadd.f32 %v931_v39, %v762_v49  ;;  %v2337_v23 = vmul.f32 %v2336_v4, %v2312_v2  ;;  %v3614_v21 = vand.u32 2147483648, %v7022_v20  ;;  %vm7073_vm5 = vcmp.eq.f32.partialorder %v3612_v11, 8.507059e+37 }
 0x2c4   :  { %v3606_v32 = vmul.f32 %v7048_v60, %v3605_v13  ;;  %v3638_v15 = vadd.f32 0.112945676, %v3637_v38  ;;  %v2351_v31 = vadd.f32 1.1283791, %v2350_v18  ;;  %v7077_v10 = vmin.f32 %v2380_v56, 16.0 }
 0x2c5   :  { %v7080_v7 = vmul.f32 0.70710677, %v7069_v50  ;;  %vm3609_vm6 = vweird.f32 %v7048_v60  ;;  %v3628_v57 = vmul.f32 %v3627_v28, %v7015_v17  ;;  %v7091_v14 = vadd.f32 %v6856_v46, %v932_v3 }
 0x2c6   :  { %v3607_v16 = vadd.f32 %v7048_v60, %v3606_v32  ;;  %v3639_v58 = vmul.f32 %v3638_v15, %v7015_v17  ;;  %v2382_v1 = vmul.f32 2.1237322e-06, %v7077_v10  ;;  %v2393_v45 = vmul.f32 3.8918573e-05, %v7077_v10  ;;  %vm7097_vm7 = vmor %vm3608_vm4, %vm3609_vm6  ;;  %v1011_v15 = vpop.f32.mrf.mxu3 }
 0x2c7   :  { %v5028_v0 = vpop.eup %5027  ;;  %v3660_v37 = vmul.f32 %v7080_v7, %v7080_v7  ;;  %v4598_v30 = vclamps-f32 %v2337_v23, 1.0  ;;  %v3615_v2 = vor.u32 1.1754944e-38, %v3614_v21  ;;  %v2374_v41 = vand.u32 2147483648, %v7050_v62  ;;  %v842_v21 = vpop.f32.mrf.mxu2 }
 0x2c8   :  { %v2364_v29 = vmul.f32 %v5028_v0, %v7050_v62  ;;  %v2352_v25 = vmul.f32 %v2351_v31, %v6955_v22  ;;  %v3640_v44 = vadd.f32 0.4994258, %v3639_v58  ;;  %v2383_v43 = vadd.f32 0.00028619796, %v2382_v1 }
 0x2c9   :  { %v2394_v54 = vadd.f32 0.001143296, %v2393_v45  ;;  %v3611_v8 = vsel %vm7097_vm7, %v7048_v60, %v3607_v16  ;;  %v3629_v36 = vadd.f32 0.18741608, %v3628_v57  ;;  %v7105_v27 = vmin.f32 %v3660_v37, 16.0 }
 0x2ca   :  { %v2365_v52 = vsub.f32 1.0, %v2364_v29  ;;  %v3641_v40 = vmul.f32 %v3640_v44, %v7015_v17  ;;  %v2384_v20 = vmul.f32 %v2383_v43, %v7077_v10  ;;  %v7111_v63 = vmul.f32 0.70710677, %v7091_v14 }
 0x2cb   :  { %v2395_v47 = vmul.f32 %v2394_v54, %v7077_v10  ;;  %vm2369_vm8 = vweird.f32 %v5028_v0  ;;  %v2372_v34 = vand.u32 2147483647, %v7050_v62  ;;  %v3662_v19 = vmul.f32 2.1237322e-06, %v7105_v27 }
 0x2cc   :  { %v2366_v22 = vmul.f32 %v5028_v0, %v2365_v52  ;;  %v4002_v60 = vadd.f32 1.0, %v4598_v30  ;;  %vm2368_vm9 = vweird.f32 %v7050_v62  ;;  %v7116_v6 = vadd.f32 1.0, %v3641_v40 }
 0x2cd   :  { %v2396_v35 = vadd.f32 0.014752088, %v2395_v47  ;;  %v3616_v9 = vsel %vm7073_vm5, %v3615_v2, %v3611_v8  ;;  %v2375_v48 = vor.u32 1.1754944e-38, %v2374_v41  ;;  %v3673_v49 = vmul.f32 3.8918573e-05, %v7105_v27  ;;  %vm2370_vm10 = vmor %vm2368_vm9, %vm2369_vm8  ;;  %v934_v47 = vpop.f32.mrf.mxu1 }
 0x2ce   :  { %v2367_v61 = vadd.f32 %v5028_v0, %v2366_v22  ;;  %v3630_v39 = vmul.f32 %v3629_v36, %v7015_v17  ;;  %5029 = vrcp.f32 %v7116_v6  ;;  %v2385_v4 = vadd.f32 0.0036580483, %v2384_v20  ;;  %v765_v20 = vpop.f32.mrf.mxu0 }
 0x2cf   :  { %v2420_v11 = vmul.f32 %v7111_v63, %v7111_v63  ;;  %vm2373_vm11 = vcmp.eq.f32.partialorder %v2372_v34, 8.507059e+37  ;;  %v2397_v18 = vmul.f32 %v2396_v35, %v7077_v10  ;;  %v3663_v13 = vadd.f32 0.00028619796, %v3662_v19 }
 0x2d0   :  { %v2371_v62 = vsel %vm2370_vm10, %v5028_v0, %v2367_v61  ;;  %v1314_v28 = vmul.f32 0.5, %v6871_v12  ;;  %v7128_v38 = vmul.f32 %v3616_v9, %v7062_v26  ;;  %v1315_v3 = vmul.f32 0.5, %v6937_v51 }
 0x2d1   :  { %v2376_v56 = vsel %vm2373_vm11, %v2375_v48, %v2371_v62  ;;  %v2398_v23 = vadd.f32 0.112945676, %v2397_v18  ;;  %v3674_v32 = vadd.f32 0.001143296, %v3673_v49  ;;  %v3631_v31 = vadd.f32 1.1283791, %v3630_v39 }
 0x2d2   :  { %v2377_v17 = vmul.f32 %v2376_v56, %v2352_v25  ;;  %v4066_v5 = vmul.f32 %v4002_v60, %v1314_v28  ;;  %v2386_v16 = vmul.f32 %v2385_v4, %v7077_v10  ;;  %v7132_v57 = vmin.f32 %v2420_v11, 16.0 }
 0x2d3   :  { %v2399_v12 = vmul.f32 %v2398_v23, %v7077_v10  ;;  %v3664_v26 = vmul.f32 %v3663_v13, %v7105_v27  ;;  %v3675_v0 = vmul.f32 %v3674_v32, %v7105_v27  ;;  %v4630_v51 = vclamps-f32 %v7128_v38, 1.0 }
 0x2d4   :  { %v4599_v58 = vclamps-f32 %v2377_v17, 1.0  ;;  %v5030_v1 = vpop.eup %5029  ;;  %v2422_v45 = vmul.f32 2.1237322e-06, %v7132_v57  ;;  %v2433_v37 = vmul.f32 3.8918573e-05, %v7132_v57  ;;  %v1012_v30 = vadd.f32 %v1011_v15, %v842_v21 }
 0x2d5   :  { %v3644_v29 = vmul.f32 %v5030_v1, %v7116_v6  ;;  %v3652_v41 = vand.u32 2147483647, %v7116_v6  ;;  %v3654_v33 = vand.u32 2147483648, %v7116_v6  ;;  %v3632_v25 = vmul.f32 %v3631_v31, %v6999_v59 }
 0x2d6   :  { %v4003_v2 = vadd.f32 1.0, %v4599_v58  ;;  %v2387_v44 = vadd.f32 0.05243302, %v2386_v16  ;;  %v2400_v43 = vadd.f32 0.4994258, %v2399_v12  ;;  %v7147_v60 = vadd.f32 %v6856_v46, %v1012_v30 }
 0x2d7   :  { %v3676_v54 = vadd.f32 0.014752088, %v3675_v0  ;;  %v3645_v52 = vsub.f32 1.0, %v3644_v29  ;;  %v3665_v36 = vadd.f32 0.0036580483, %v3664_v26  ;;  %vm3649_vm12 = vweird.f32 %v5030_v1 }
 0x2d8   :  { %v4067_v8 = vmul.f32 %v4003_v2, %v1315_v3  ;;  %v2423_v40 = vadd.f32 0.00028619796, %v2422_v45  ;;  %v2401_v22 = vmul.f32 %v2400_v43, %v7077_v10  ;;  %v2434_v19 = vadd.f32 0.001143296, %v2433_v37 }
 0x2d9   :  { %v3677_v34 = vmul.f32 %v3676_v54, %v7105_v27  ;;  %v3646_v9 = vmul.f32 %v5030_v1, %v3645_v52  ;;  %v935_v39 = vadd.f32 %v934_v47, %v765_v20  ;;  %vm3648_vm13 = vweird.f32 %v7116_v6 }
 0x2da   :  { %v4778_v35 = vpack.c.bf16 %v4067_v8, %v4066_v5  ;;  %v2424_v59 = vmul.f32 %v2423_v40, %v7132_v57  ;;  %v7150_v61 = vadd.f32 1.0, %v2401_v22  ;;  %v2435_v49 = vmul.f32 %v2434_v19, %v7132_v57  ;;  %vm3650_vm14 = vmor %vm3648_vm13, %vm3649_vm12 }
 0x2db   :  { %v3678_v48 = vadd.f32 0.112945676, %v3677_v34  ;;  %v3647_v4 = vadd.f32 %v5030_v1, %v3646_v9  ;;  %v2388_v11 = vmul.f32 %v2387_v44, %v7077_v10  ;;  %v3655_v18 = vor.u32 1.1754944e-38, %v3654_v33 }
 0x2dc   :  { %4890 = vst [vmem:[#allocation8 + $0x58] sm:$0xff] %v4778_v35   ;;  %v2425_v62 = vadd.f32 0.0036580483, %v2424_v59  ;;  %5031 = vrcp.f32 %v7150_v61  ;;  %v3666_v13 = vmul.f32 %v3665_v36, %v7105_v27  ;;  %v7158_v28 = vmul.f32 0.70710677, %v7147_v60  ;;  %v845_v36 = vpop.f32.mrf.mxu2 }
 0x2dd   :  { %v3651_v38 = vsel %vm3650_vm14, %v5030_v1, %v3647_v4  ;;  %vm3653_vm15 = vcmp.eq.f32.partialorder %v3652_v41, 8.507059e+37  ;;  %v3679_v56 = vmul.f32 %v3678_v48, %v7105_v27  ;;  %v2436_v6 = vadd.f32 0.014752088, %v2435_v49 }
 0x2de   :  { %v2426_v3 = vmul.f32 %v2425_v62, %v7132_v57  ;;  %v3656_v17 = vsel %vm3653_vm15, %v3655_v18, %v3651_v38  ;;  %v7163_v23 = vadd.f32 %v6856_v46, %v935_v39  ;;  %v2389_v21 = vadd.f32 0.18741608, %v2388_v11 }
 0x2df   :  { %v3657_v32 = vmul.f32 %v3656_v17, %v3632_v25  ;;  %v3680_v15 = vadd.f32 0.4994258, %v3679_v56  ;;  %v1346_v5 = vmul.f32 0.5, %v6921_v42  ;;  %v3667_v31 = vadd.f32 0.05243302, %v3666_v13 }
 0x2e0   :  { %v2437_v16 = vmul.f32 %v2436_v6, %v7132_v57  ;;  %v3700_v58 = vmul.f32 %v7158_v28, %v7158_v28  ;;  %v4034_v12 = vadd.f32 1.0, %v4630_v51  ;;  %v2427_v1 = vadd.f32 0.05243302, %v2426_v3 }
 0x2e1   :  { %v4631_v26 = vclamps-f32 %v3657_v32, 1.0  ;;  %v3681_v0 = vmul.f32 %v3680_v15, %v7105_v27  ;;  %v1347_v37 = vmul.f32 0.5, %v6990_v24  ;;  %v7176_v42 = vmul.f32 0.70710677, %v7163_v23 }
 0x2e2   :  { %v7170_v45 = vpop.eup %5031  ;;  %v2438_v30 = vadd.f32 0.112945676, %v2437_v16  ;;  %v7173_v2 = vmin.f32 %v3700_v58, 16.0  ;;  %v2390_v41 = vmul.f32 %v2389_v21, %v7077_v10  ;;  %v3668_v25 = vmul.f32 %v3667_v31, %v7105_v27  ;;  %v1014_v10 = vpop.f32.mrf.mxu3 }
 0x2e3   :  { %v4035_v29 = vadd.f32 1.0, %v4631_v26  ;;  %v2404_v51 = vmul.f32 %v7170_v45, %v7150_v61  ;;  %v7181_v33 = vadd.f32 1.0, %v3681_v0  ;;  %v4098_v54 = vmul.f32 %v4034_v12, %v1346_v5 }
 0x2e4   :  { %v2439_v44 = vmul.f32 %v2438_v30, %v7132_v57  ;;  %v3702_v24 = vmul.f32 2.1237322e-06, %v7173_v2  ;;  %v3713_v43 = vmul.f32 3.8918573e-05, %v7173_v2  ;;  %v2428_v40 = vmul.f32 %v2427_v1, %v7132_v57  ;;  %v767_v30 = vpop.f32.mrf.mxu0 }
 0x2e5   :  { %v4099_v8 = vmul.f32 %v4035_v29, %v1347_v37  ;;  %v2405_v52 = vsub.f32 1.0, %v2404_v51  ;;  %5033 = vrcp.f32 %v7181_v33  ;;  %v2460_v47 = vmul.f32 %v7176_v42, %v7176_v42  ;;  %v936_v29 = vpop.f32.mrf.mxu1 }
 0x2e6   :  { %v2440_v20 = vadd.f32 0.4994258, %v2439_v44  ;;  %v3703_v19 = vadd.f32 0.00028619796, %v3702_v24  ;;  %v3714_v35 = vadd.f32 0.001143296, %v3713_v43  ;;  %v1015_v49 = vadd.f32 %v1014_v10, %v845_v36 }
 0x2e7   :  { %v4858_v22 = vpack.c.bf16 %v4099_v8, %v4098_v54  ;;  %v2406_v34 = vmul.f32 %v7170_v45, %v2405_v52  ;;  %v2391_v9 = vadd.f32 1.1283791, %v2390_v41  ;;  %v3669_v59 = vadd.f32 0.18741608, %v3668_v25 }
 0x2e8   :  { %v2441_v48 = vmul.f32 %v2440_v20, %v7132_v57  ;;  %vm2409_vm0 = vweird.f32 %v7170_v45  ;;  %v3704_v4 = vmul.f32 %v3703_v19, %v7173_v2  ;;  %v3715_v11 = vmul.f32 %v3714_v35, %v7173_v2 }
 0x2e9   :  { %4906 = vst [vmem:[#allocation8 + $0xd8] sm:$0xff] %v4858_v22   ;;  %v2407_v39 = vadd.f32 %v7170_v45, %v2406_v34  ;;  %v2412_v62 = vand.u32 2147483647, %v7150_v61  ;;  %v2414_v18 = vand.u32 2147483648, %v7150_v61  ;;  %v7201_v38 = vmin.f32 %v2460_v47, 16.0 }
 0x2ea   :  { %v7199_v13 = vadd.f32 1.0, %v2441_v48  ;;  %vm2408_vm1 = vweird.f32 %v7150_v61  ;;  %v2429_v3 = vadd.f32 0.18741608, %v2428_v40  ;;  %v3705_v17 = vadd.f32 0.0036580483, %v3704_v4 }
 0x2eb   :  { %v7203_v56 = vpop.eup %5033  ;;  %v3716_v6 = vadd.f32 0.014752088, %v3715_v11  ;;  %v7207_v32 = vmul.f32 0.5, %v7042_v55  ;;  %vm7209_vm2 = vmor %vm2408_vm1, %vm2409_vm0  ;;  %v3670_v15 = vmul.f32 %v3669_v59, %v7105_v27  ;;  %v2392_v31 = vmul.f32 %v2391_v9, %v7056_v53 }
 0x2ec   :  { %v3684_v5 = vmul.f32 %v7203_v56, %v7181_v33  ;;  %5035 = vrcp.f32 %v7199_v13  ;;  %v2411_v61 = vsel %vm7209_vm2, %v7170_v45, %v2407_v39  ;;  %v3694_v55 = vand.u32 2147483648, %v7181_v33 }
 0x2ed   :  { %v7223_v16 = vadd.f32 %v6856_v46, %v1015_v49  ;;  %v3706_v12 = vmul.f32 %v3705_v17, %v7173_v2  ;;  %v3717_v27 = vmul.f32 %v3716_v6, %v7173_v2  ;;  %v2462_v26 = vmul.f32 2.1237322e-06, %v7201_v38 }
 0x2ee   :  { %v3685_v58 = vsub.f32 1.0, %v3684_v5  ;;  %vm2413_vm3 = vcmp.eq.f32.partialorder %v2412_v62, 8.507059e+37  ;;  %v2415_v0 = vor.u32 1.1754944e-38, %v2414_v18  ;;  %v2430_v53 = vmul.f32 %v2429_v3, %v7132_v57 }
 0x2ef   :  { %v2473_v1 = vmul.f32 3.8918573e-05, %v7201_v38  ;;  %v7230_v37 = vadd.f32 1.1283791, %v3670_v15  ;;  %vm3688_vm4 = vweird.f32 %v7181_v33  ;;  %v3692_v46 = vand.u32 2147483647, %v7181_v33 }
 0x2f0   :  { %v3718_v45 = vadd.f32 0.112945676, %v3717_v27  ;;  %v2416_v41 = vsel %vm2413_vm3, %v2415_v0, %v2411_v61  ;;  %v3707_v51 = vadd.f32 0.05243302, %v3706_v12  ;;  %v7235_v44 = vmul.f32 0.70710677, %v7223_v16 }
 0x2f1   :  { %v2474_v25 = vadd.f32 0.001143296, %v2473_v1  ;;  %v3686_v57 = vmul.f32 %v7203_v56, %v3685_v58  ;;  %v3695_v43 = vor.u32 1.1754944e-38, %v3694_v55  ;;  %v2463_v8 = vadd.f32 0.00028619796, %v2462_v26  ;;  %v847_v1 = vpop.f32.mrf.mxu2 }
 0x2f2   :  { %v5036_v24 = vpop.eup %5035  ;;  %v3719_v54 = vmul.f32 %v3718_v45, %v7173_v2  ;;  %v2431_v52 = vadd.f32 1.1283791, %v2430_v53  ;;  %v937_v40 = vadd.f32 %v936_v29, %v767_v30  ;;  %v2417_v20 = vmul.f32 %v2416_v41, %v2392_v31  ;;  %v7274_v58 = vld [vmem:[%s7689_s2] ss:$0 sm:$0xff]  ;;  %v1016_v45 = vpop.f32.mrf.mxu3  ;;  %s5152_s2 = smov [#allocation8]  }
 0x2f3   :  { %v2444_v36 = vmul.f32 %v5036_v24, %v7199_v13  ;;  %v2475_v10 = vmul.f32 %v2474_v25, %v7201_v38  ;;  %vm3689_vm5 = vweird.f32 %v7203_v56  ;;  %v2452_v47 = vand.u32 2147483647, %v7199_v13  ;;  %s4240_s9 = sshll.u32 %s5152_s2, 4  ;;  %s4241_s9 = int_to_ptr.vmem [resolvable:$true] %s4240_s9 }
 0x2f4   :  { %v3720_v22 = vadd.f32 0.4994258, %v3719_v54  ;;  %v3708_v19 = vmul.f32 %v3707_v51, %v7173_v2  ;;  %v3740_v9 = vmul.f32 %v7235_v44, %v7235_v44  ;;  %v3687_v59 = vadd.f32 %v7203_v56, %v3686_v57  ;;  %vm7261_vm8 = vmor %vm3688_vm4, %vm3689_vm5 }
 0x2f5   :  { %v2445_v34 = vsub.f32 1.0, %v2444_v36  ;;  %v2476_v35 = vadd.f32 0.014752088, %v2475_v10  ;;  %v2454_v48 = vand.u32 2147483648, %v7199_v13  ;;  %v2464_v39 = vmul.f32 %v2463_v8, %v7201_v38  ;;  %v770_v36 = vpop.f32.mrf.mxu0 }
 0x2f6   :  { %v3721_v49 = vmul.f32 %v3720_v22, %v7173_v2  ;;  %vm2449_vm6 = vweird.f32 %v5036_v24  ;;  %v7251_v62 = vmin.f32 %v3740_v9, 16.0  ;;  %v4600_v18 = vclamps-f32 %v2417_v20, 1.0 }
 0x2f7   :  { %v2446_v4 = vmul.f32 %v5036_v24, %v2445_v34  ;;  %v2477_v11 = vmul.f32 %v2476_v35, %v7201_v38  ;;  %v2432_v3 = vmul.f32 %v2431_v52, %v7111_v63  ;;  %vm2448_vm7 = vweird.f32 %v7199_v13 }
 0x2f8   :  { %v7255_v17 = vadd.f32 1.0, %v3721_v49  ;;  %v3709_v15 = vadd.f32 0.18741608, %v3708_v19  ;;  %v3742_v31 = vmul.f32 2.1237322e-06, %v7251_v62  ;;  %vm2450_vm9 = vmor %vm2448_vm7, %vm2449_vm6  ;;  %vm2453_vm10 = vcmp.eq.f32.partialorder %v2452_v47, 8.507059e+37 }
 0x2f9   :  { %v2447_v21 = vadd.f32 %v5036_v24, %v2446_v4  ;;  %v2478_v5 = vadd.f32 0.112945676, %v2477_v11  ;;  %v2455_v63 = vor.u32 1.1754944e-38, %v2454_v48  ;;  %v3753_v13 = vmul.f32 3.8918573e-05, %v7251_v62 }
 0x2fa   :  { %5037 = vrcp.f32 %v7255_v17  ;;  %v3691_v33 = vsel %vm7261_vm8, %v7203_v56, %v3687_v59  ;;  %v2465_v55 = vadd.f32 0.0036580483, %v2464_v39  ;;  %v7277_v12 = vadd.f32 %v7274_v58, %v937_v40 }
 0x2fb   :  { %v2451_v61 = vsel %vm2450_vm9, %v5036_v24, %v2447_v21  ;;  %v4004_v27 = vadd.f32 1.0, %v4600_v18  ;;  %v2479_v0 = vmul.f32 %v2478_v5, %v7201_v38  ;;  %v3743_v53 = vadd.f32 0.00028619796, %v3742_v31 }
 0x2fc   :  { %v2456_v26 = vsel %vm2453_vm10, %v2455_v63, %v2451_v61  ;;  %vm3693_vm11 = vcmp.eq.f32.partialorder %v3692_v46, 8.507059e+37  ;;  %v1317_v56 = vmul.f32 0.5, %v7091_v14  ;;  %v3710_v29 = vmul.f32 %v3709_v15, %v7173_v2  ;;  %v939_v46 = vpop.f32.mrf.mxu1 }
 0x2fd   :  { %v2457_v30 = vmul.f32 %v2456_v26, %v2432_v3  ;;  %v3672_v41 = vmul.f32 %v7230_v37, %v7080_v7  ;;  %v3696_v51 = vsel %vm3693_vm11, %v3695_v43, %v3691_v33  ;;  %v2480_v25 = vadd.f32 0.4994258, %v2479_v0 }
 0x2fe   :  { %v3754_v24 = vadd.f32 0.001143296, %v3753_v13  ;;  %v2466_v54 = vmul.f32 %v2465_v55, %v7201_v38  ;;  %v7286_v8 = vmul.f32 0.70710677, %v7277_v12  ;;  %v1017_v52 = vadd.f32 %v1016_v45, %v847_v1 }
 0x2ff   :  { %v4601_v57 = vclamps-f32 %v2457_v30, 1.0  ;;  %v4068_v14 = vmul.f32 %v4004_v27, %v7207_v32  ;;  %v2481_v2 = vmul.f32 %v2480_v25, %v7201_v38  ;;  %v3744_v40 = vmul.f32 %v3743_v53, %v7251_v62 }
 0x300   :  { %v5038_v10 = vpop.eup %5037  ;;  %v3755_v7 = vmul.f32 %v3754_v24, %v7251_v62  ;;  %v3697_v37 = vmul.f32 %v3696_v51, %v3672_v41  ;;  %v3711_v20 = vadd.f32 1.1283791, %v3710_v29  ;;  %v2500_v19 = vmul.f32 %v7286_v8, %v7286_v8 }
 0x301   :  { %v4005_v43 = vadd.f32 1.0, %v4601_v57  ;;  %v3724_v47 = vmul.f32 %v5038_v10, %v7255_v17  ;;  %v7293_v22 = vadd.f32 1.0, %v2481_v2  ;;  %v940_v35 = vadd.f32 %v939_v46, %v770_v36 }
 0x302   :  { %v3756_v34 = vadd.f32 0.014752088, %v3755_v7  ;;  %v2467_v59 = vadd.f32 0.05243302, %v2466_v54  ;;  %v7298_v48 = vadd.f32 %v7274_v58, %v1017_v52  ;;  %v3732_v49 = vand.u32 2147483647, %v7255_v17 }
 0x303   :  { %v4069_v9 = vmul.f32 %v4005_v43, %v1317_v56  ;;  %v3725_v32 = vsub.f32 1.0, %v3724_v47  ;;  %v3734_v39 = vand.u32 2147483648, %v7255_v17  ;;  %5039 = vrcp.f32 %v7293_v22 }
 0x304   :  { %v3745_v4 = vadd.f32 0.0036580483, %v3744_v40  ;;  %vm3729_vm12 = vweird.f32 %v5038_v10  ;;  %v3757_v3 = vmul.f32 %v3756_v34, %v7251_v62  ;;  %v4632_v6 = vclamps-f32 %v3697_v37, 1.0 }
 0x305   :  { %v4783_v11 = vpack.c.bf16 %v4069_v9, %v4068_v14  ;;  %v3726_v18 = vmul.f32 %v5038_v10, %v3725_v32  ;;  %v3712_v21 = vmul.f32 %v3711_v20, %v7158_v28  ;;  %v7305_v15 = vmin.f32 %v2500_v19, 16.0 }
 0x306   :  { %v7308_v5 = vadd.f32 %v7274_v58, %v940_v35  ;;  %vm3728_vm13 = vweird.f32 %v7255_v17  ;;  %v3758_v63 = vadd.f32 0.112945676, %v3757_v3  ;;  %v7312_v13 = vmul.f32 0.70710677, %v7298_v48 }
 0x307   :  { %4891 = vst [vmem:[#allocation8 + $0x60] sm:$0xff] %v4783_v11   ;;  %v3727_v31 = vadd.f32 %v5038_v10, %v3726_v18  ;;  %vm3730_vm14 = vmor %vm3728_vm13, %vm3729_vm12  ;;  %vm3733_vm15 = vcmp.eq.f32.partialorder %v3732_v49, 8.507059e+37  ;;  %v3735_v33 = vor.u32 1.1754944e-38, %v3734_v39  ;;  %v2502_v61 = vmul.f32 2.1237322e-06, %v7305_v15 }
 0x308   :  { %v2513_v28 = vmul.f32 3.8918573e-05, %v7305_v15  ;;  %v3746_v27 = vmul.f32 %v3745_v4, %v7251_v62  ;;  %v3759_v26 = vmul.f32 %v3758_v63, %v7251_v62  ;;  %v3780_v0 = vmul.f32 %v7312_v13, %v7312_v13 }
 0x309   :  { %v3731_v55 = vsel %vm3730_vm14, %v5038_v10, %v3727_v31  ;;  %v7320_v17 = vpop.eup %5039  ;;  %v2503_v1 = vadd.f32 0.00028619796, %v2502_v61  ;;  %v7323_v56 = vmul.f32 0.70710677, %v7308_v5  ;;  %v1348_v30 = vmul.f32 0.5, %v7069_v50 }
 0x30a   :  { %v3736_v53 = vsel %vm3733_vm15, %v3735_v33, %v3731_v55  ;;  %v2514_v45 = vadd.f32 0.001143296, %v2513_v28  ;;  %v2468_v41 = vmul.f32 %v2467_v59, %v7201_v38  ;;  %v2484_v51 = vmul.f32 %v7320_v17, %v7293_v22  ;;  %v850_v28 = vpop.f32.mrf.mxu2  ;;  %v1019_v55 = vpop.f32.mrf.mxu3 }
 0x30b   :  { %v3737_v29 = vmul.f32 %v3736_v53, %v3712_v21  ;;  %v3760_v25 = vadd.f32 0.4994258, %v3759_v26  ;;  %v2504_v24 = vmul.f32 %v2503_v1, %v7305_v15  ;;  %v7331_v54 = vmin.f32 %v3780_v0, 16.0 }
 0x30c   :  { %v2515_v57 = vmul.f32 %v2514_v45, %v7305_v15  ;;  %v4036_v52 = vadd.f32 1.0, %v4632_v6  ;;  %v2485_v46 = vsub.f32 1.0, %v2484_v51  ;;  %v3747_v10 = vadd.f32 0.05243302, %v3746_v27 }
 0x30d   :  { %v4633_v36 = vclamps-f32 %v3737_v29, 1.0  ;;  %v3761_v14 = vmul.f32 %v3760_v25, %v7251_v62  ;;  %v3782_v2 = vmul.f32 2.1237322e-06, %v7331_v54  ;;  %v2540_v40 = vmul.f32 %v7323_v56, %v7323_v56 }
 0x30e   :  { %v2516_v50 = vadd.f32 0.014752088, %v2515_v57  ;;  %v1349_v7 = vmul.f32 0.5, %v7147_v60  ;;  %v2505_v43 = vadd.f32 0.0036580483, %v2504_v24  ;;  %v4100_v9 = vmul.f32 %v4036_v52, %v1348_v30 }
 0x30f   :  { %v4037_v37 = vadd.f32 1.0, %v4633_v36  ;;  %v3793_v20 = vmul.f32 3.8918573e-05, %v7331_v54  ;;  %v2469_v47 = vadd.f32 0.18741608, %v2468_v41  ;;  %v7339_v34 = vadd.f32 1.0, %v3761_v14 }
 0x310   :  { %v2517_v19 = vmul.f32 %v2516_v50, %v7305_v15  ;;  %v3783_v35 = vadd.f32 0.00028619796, %v3782_v2  ;;  %v2486_v59 = vmul.f32 %v7320_v17, %v2485_v46  ;;  %v7344_v39 = vmin.f32 %v2540_v40, 16.0 }
 0x311   :  { %v4101_v32 = vmul.f32 %v4037_v37, %v1349_v7  ;;  %v3794_v49 = vadd.f32 0.001143296, %v3793_v20  ;;  %5041 = vrcp.f32 %v7339_v34  ;;  %v3748_v4 = vmul.f32 %v3747_v10, %v7251_v62  ;;  %v941_v7 = vpop.f32.mrf.mxu1 }
 0x312   :  { %v2506_v11 = vmul.f32 %v2505_v43, %v7305_v15  ;;  %v2518_v18 = vadd.f32 0.112945676, %v2517_v19  ;;  %v2470_v3 = vmul.f32 %v2469_v47, %v7201_v38  ;;  %v2492_v6 = vand.u32 2147483647, %v7293_v22 }
 0x313   :  { %v4863_v60 = vpack.c.bf16 %v4101_v32, %v4100_v9  ;;  %v2494_v21 = vand.u32 2147483648, %v7293_v22  ;;  %v3784_v31 = vmul.f32 %v3783_v35, %v7331_v54  ;;  %v2487_v63 = vadd.f32 %v7320_v17, %v2486_v59 }
 0x314   :  { %vm2489_vm0 = vweird.f32 %v7320_v17  ;;  %v2519_v33 = vmul.f32 %v2518_v18, %v7305_v15  ;;  %v3795_v61 = vmul.f32 %v3794_v49, %v7331_v54  ;;  %v2542_v38 = vmul.f32 2.1237322e-06, %v7344_v39 }
 0x315   :  { %4907 = vst [vmem:[#allocation8 + $0xe0] sm:$0xff] %v4863_v60   ;;  %v3785_v27 = vadd.f32 0.0036580483, %v3784_v31  ;;  %v2553_v26 = vmul.f32 3.8918573e-05, %v7344_v39  ;;  %vm2488_vm1 = vweird.f32 %v7293_v22  ;;  %v1020_v25 = vadd.f32 %v1019_v55, %v850_v28 }
 0x316   :  { %v3749_v0 = vadd.f32 0.18741608, %v3748_v4  ;;  %v2507_v53 = vadd.f32 0.05243302, %v2506_v11  ;;  %v2520_v1 = vadd.f32 0.4994258, %v2519_v33  ;;  %vm7361_vm2 = vmor %vm2488_vm1, %vm2489_vm0  ;;  %vm3768_vm5 = vweird.f32 %v7339_v34 }
 0x317   :  { %v7359_v45 = vpop.eup %5041  ;;  %v2471_v30 = vadd.f32 1.1283791, %v2470_v3  ;;  %v3796_v41 = vadd.f32 0.014752088, %v3795_v61  ;;  %v2554_v51 = vadd.f32 0.001143296, %v2553_v26  ;;  %v2491_v24 = vsel %vm7361_vm2, %v7320_v17, %v2487_v63  ;;  %v772_v17 = vpop.f32.mrf.mxu0 }
 0x318   :  { %vm2493_vm3 = vcmp.eq.f32.partialorder %v2492_v6, 8.507059e+37  ;;  %v3764_v22 = vmul.f32 %v7359_v45, %v7339_v34  ;;  %v3786_v57 = vmul.f32 %v3785_v27, %v7331_v54  ;;  %v2495_v52 = vor.u32 1.1754944e-38, %v2494_v21 }
 0x319   :  { %v2521_v36 = vmul.f32 %v2520_v1, %v7305_v15  ;;  %v3797_v46 = vmul.f32 %v3796_v41, %v7331_v54  ;;  %v2543_v10 = vadd.f32 0.00028619796, %v2542_v38  ;;  %v3750_v14 = vmul.f32 %v3749_v0, %v7251_v62 }
 0x31a   :  { %v3765_v50 = vsub.f32 1.0, %v3764_v22  ;;  %v2508_v2 = vmul.f32 %v2507_v53, %v7305_v15  ;;  %v2555_v40 = vmul.f32 %v2554_v51, %v7344_v39  ;;  %v2496_v37 = vsel %vm2493_vm3, %v2495_v52, %v2491_v24 }
 0x31b   :  { %v7376_v43 = vadd.f32 1.0, %v2521_v36  ;;  %v3798_v20 = vadd.f32 0.112945676, %v3797_v46  ;;  %v7379_v47 = vadd.f32 %v7274_v58, %v1020_v25  ;;  %v2472_v19 = vmul.f32 %v2471_v30, %v7176_v42 }
 0x31c   :  { %v3766_v35 = vmul.f32 %v7359_v45, %v3765_v50  ;;  %v3787_v9 = vadd.f32 0.05243302, %v3786_v57  ;;  %v2556_v62 = vadd.f32 0.014752088, %v2555_v40  ;;  %v1318_v32 = vmul.f32 0.5, %v7163_v23 }
 0x31d   :  { %5043 = vrcp.f32 %v7376_v43  ;;  %v2544_v59 = vmul.f32 %v2543_v10, %v7344_v39  ;;  %v942_v49 = vadd.f32 %v941_v7, %v772_v17  ;;  %v2497_v60 = vmul.f32 %v2496_v37, %v2472_v19 }
 0x31e   :  { %v3751_v4 = vadd.f32 1.1283791, %v3750_v14  ;;  %v2509_v11 = vadd.f32 0.18741608, %v2508_v2  ;;  %v3799_v18 = vmul.f32 %v3798_v20, %v7331_v54  ;;  %v3772_v3 = vand.u32 2147483647, %v7339_v34 }
 0x31f   :  { %v3774_v42 = vand.u32 2147483648, %v7339_v34  ;;  %v2557_v6 = vmul.f32 %v2556_v62, %v7344_v39  ;;  %v7391_v21 = vmul.f32 0.70710677, %v7379_v47  ;;  %v3767_v23 = vadd.f32 %v7359_v45, %v3766_v35 }
 0x320   :  { %vm3769_vm4 = vweird.f32 %v7359_v45  ;;  %v3788_v31 = vmul.f32 %v3787_v9, %v7331_v54  ;;  %v3800_v63 = vadd.f32 0.4994258, %v3799_v18  ;;  %v2545_v33 = vadd.f32 0.0036580483, %v2544_v59 }
 0x321   :  { %v2558_v61 = vadd.f32 0.112945676, %v2557_v6  ;;  %v3820_v28 = vmul.f32 %v7391_v21, %v7391_v21  ;;  %v7399_v55 = vadd.f32 %v7274_v58, %v942_v49  ;;  %v4602_v27 = vclamps-f32 %v2497_v60, 1.0  ;;  %vm7405_vm6 = vmor %vm3768_vm5, %vm3769_vm4 }
 0x322   :  { %v2510_v38 = vmul.f32 %v2509_v11, %v7305_v15  ;;  %v3801_v26 = vmul.f32 %v3800_v63, %v7331_v54  ;;  %v3752_v53 = vmul.f32 %v3751_v4, %v7235_v44  ;;  %v3771_v15 = vsel %vm7405_vm6, %v7359_v45, %v3767_v23  ;;  %v1021_v11 = vpop.f32.mrf.mxu3 }
 0x323   :  { %v5044_v0 = vpop.eup %5043  ;;  %v2559_v30 = vmul.f32 %v2558_v61, %v7344_v39  ;;  %v7410_v29 = vmin.f32 %v3820_v28, 16.0  ;;  %v7413_v41 = vmul.f32 0.70710677, %v7399_v55  ;;  %vm3773_vm7 = vcmp.eq.f32.partialorder %v3772_v3, 8.507059e+37 }
 0x324   :  { %v3775_v34 = vor.u32 1.1754944e-38, %v3774_v42  ;;  %v2524_v51 = vmul.f32 %v5044_v0, %v7376_v43  ;;  %v3789_v44 = vadd.f32 0.18741608, %v3788_v31  ;;  %v7419_v25 = vadd.f32 1.0, %v3801_v26 }
 0x325   :  { %v2546_v24 = vmul.f32 %v2545_v33, %v7344_v39  ;;  %v2560_v22 = vadd.f32 0.4994258, %v2559_v30  ;;  %v4006_v57 = vadd.f32 1.0, %v4602_v27  ;;  %v2511_v52 = vadd.f32 1.1283791, %v2510_v38 }
 0x326   :  { %v2525_v36 = vsub.f32 1.0, %v2524_v51  ;;  %v3833_v46 = vmul.f32 3.8918573e-05, %v7410_v29  ;;  %v3776_v10 = vsel %vm3773_vm7, %v3775_v34, %v3771_v15  ;;  %v2534_v14 = vand.u32 2147483648, %v7376_v43 }
 0x327   :  { %5045 = vrcp.f32 %v7419_v25  ;;  %v2580_v45 = vmul.f32 %v7413_v41, %v7413_v41  ;;  %vm2529_vm8 = vweird.f32 %v5044_v0  ;;  %v2532_v2 = vand.u32 2147483647, %v7376_v43 }
 0x328   :  { %v2526_v50 = vmul.f32 %v5044_v0, %v2525_v36  ;;  %v2561_v40 = vmul.f32 %v2560_v22, %v7344_v39  ;;  %v1319_v17 = vmul.f32 0.5, %v7277_v12  ;;  %v3790_v7 = vmul.f32 %v3789_v44, %v7331_v54  ;;  %v852_v54 = vpop.f32.mrf.mxu2 }
 0x329   :  { %v2547_v37 = vadd.f32 0.05243302, %v2546_v24  ;;  %v3834_v20 = vadd.f32 0.001143296, %v3833_v46  ;;  %v7431_v19 = vmul.f32 %v3776_v10, %v3752_v53  ;;  %vm2528_vm9 = vweird.f32 %v7376_v43  ;;  %v944_v53 = vpop.f32.mrf.mxu1 }
 0x32a   :  { %v2527_v35 = vadd.f32 %v5044_v0, %v2526_v50  ;;  %v7434_v9 = vadd.f32 1.0, %v2561_v40  ;;  %v4070_v62 = vmul.f32 %v4006_v57, %v1318_v32  ;;  %vm2530_vm10 = vmor %vm2528_vm9, %vm2529_vm8  ;;  %v2535_v59 = vor.u32 1.1754944e-38, %v2534_v14 }
 0x32b   :  { %v3835_v49 = vmul.f32 %v3834_v20, %v7410_v29  ;;  %v7437_v60 = vmin.f32 %v2580_v45, 16.0  ;;  %v2512_v12 = vmul.f32 %v2511_v52, %v7286_v8  ;;  %vm2533_vm11 = vcmp.eq.f32.partialorder %v2532_v2, 8.507059e+37 }
 0x32c   :  { %v2531_v4 = vsel %vm2530_vm10, %v5044_v0, %v2527_v35  ;;  %5047 = vrcp.f32 %v7434_v9  ;;  %v3791_v43 = vadd.f32 1.1283791, %v3790_v7  ;;  %v2548_v42 = vmul.f32 %v2547_v37, %v7344_v39  ;;  %v775_v0 = vpop.f32.mrf.mxu0 }
 0x32d   :  { %v5046_v18 = vpop.eup %5045  ;;  %v2536_v3 = vsel %vm2533_vm11, %v2535_v59, %v2531_v4  ;;  %v3822_v32 = vmul.f32 2.1237322e-06, %v7410_v29  ;;  %v4634_v6 = vclamps-f32 %v7431_v19, 1.0  ;;  %v3836_v63 = vadd.f32 0.014752088, %v3835_v49 }
 0x32e   :  { %v2537_v23 = vmul.f32 %v2536_v3, %v2512_v12  ;;  %v3804_v31 = vmul.f32 %v5046_v18, %v7419_v25  ;;  %vm3808_vm12 = vweird.f32 %v7419_v25  ;;  %v3812_v8 = vand.u32 2147483647, %v7419_v25 }
 0x32f   :  { %v2582_v33 = vmul.f32 2.1237322e-06, %v7437_v60  ;;  %v1022_v61 = vadd.f32 %v1021_v11, %v852_v54  ;;  %v3837_v38 = vmul.f32 %v3836_v63, %v7410_v29  ;;  %v2593_v26 = vmul.f32 3.8918573e-05, %v7437_v60 }
 0x330   :  { %v4603_v28 = vclamps-f32 %v2537_v23, 1.0  ;;  %v3805_v27 = vsub.f32 1.0, %v3804_v31  ;;  %vm3809_vm13 = vweird.f32 %v5046_v18  ;;  %v3814_v1 = vand.u32 2147483648, %v7419_v25 }
 0x331   :  { %v3823_v30 = vadd.f32 0.00028619796, %v3822_v32  ;;  %v2583_v15 = vadd.f32 0.00028619796, %v2582_v33  ;;  %v3838_v24 = vadd.f32 0.112945676, %v3837_v38  ;;  %v7457_v36 = vadd.f32 %v7274_v58, %v1022_v61  ;;  %vm3810_vm14 = vmor %vm3808_vm12, %vm3809_vm13 }
 0x332   :  { %v7451_v34 = vpop.eup %5047  ;;  %v4007_v51 = vadd.f32 1.0, %v4603_v28  ;;  %v3806_v44 = vmul.f32 %v5046_v18, %v3805_v27  ;;  %v2594_v22 = vadd.f32 0.001143296, %v2593_v26  ;;  %v945_v46 = vadd.f32 %v944_v53, %v775_v0 }
 0x333   :  { %v2564_v57 = vmul.f32 %v7451_v34, %v7434_v9  ;;  %v2584_v52 = vmul.f32 %v2583_v15, %v7437_v60  ;;  %v3839_v45 = vmul.f32 %v3838_v24, %v7410_v29  ;;  %v3792_v2 = vmul.f32 %v3791_v43, %v7312_v13 }
 0x334   :  { %v4071_v10 = vmul.f32 %v4007_v51, %v1319_v17  ;;  %v3807_v14 = vadd.f32 %v5046_v18, %v3806_v44  ;;  %v2595_v50 = vmul.f32 %v2594_v22, %v7437_v60  ;;  %vm3813_vm15 = vcmp.eq.f32.partialorder %v3812_v8, 8.507059e+37 }
 0x335   :  { %v3815_v40 = vor.u32 1.1754944e-38, %v3814_v1  ;;  %v3824_v7 = vmul.f32 %v3823_v30, %v7410_v29  ;;  %v3840_v19 = vadd.f32 0.4994258, %v3839_v45  ;;  %v2565_v59 = vsub.f32 1.0, %v2564_v57  ;;  %v1024_v1 = vpop.f32.mrf.mxu3 }
 0x336   :  { %v4788_v37 = vpack.c.bf16 %v4071_v10, %v4070_v62  ;;  %v3811_v20 = vsel %vm3810_vm14, %v5046_v18, %v3807_v14  ;;  %v2596_v35 = vadd.f32 0.014752088, %v2595_v50  ;;  %v2585_v49 = vadd.f32 0.0036580483, %v2584_v52  ;;  %v946_v10 = vpop.f32.mrf.mxu1 }
 0x337   :  { %v3816_v17 = vsel %vm3813_vm15, %v3815_v40, %v3811_v20  ;;  %v7467_v12 = vadd.f32 %v7274_v58, %v945_v46  ;;  %v3841_v4 = vmul.f32 %v3840_v19, %v7410_v29  ;;  %v7472_v54 = vmul.f32 0.70710677, %v7457_v36  ;;  %v777_v46 = vpop.f32.mrf.mxu0 }
 0x338   :  { %4892 = vst [vmem:[#allocation8 + $0x68] sm:$0xff] %v4788_v37   ;;  %v3817_v13 = vmul.f32 %v3816_v17, %v3792_v2  ;;  %v2597_v25 = vmul.f32 %v2596_v35, %v7437_v60  ;;  %v4038_v11 = vadd.f32 1.0, %v4634_v6  ;;  %v2549_v62 = vadd.f32 0.18741608, %v2548_v42 }
 0x339   :  { %v3825_v18 = vadd.f32 0.0036580483, %v3824_v7  ;;  %v1350_v3 = vmul.f32 0.5, %v7223_v16  ;;  %v3860_v23 = vmul.f32 %v7472_v54, %v7472_v54  ;;  %v2566_v31 = vmul.f32 %v7451_v34, %v2565_v59 }
 0x33a   :  { %v4635_v43 = vclamps-f32 %v3817_v13, 1.0  ;;  %v2598_v32 = vadd.f32 0.112945676, %v2597_v25  ;;  %v7478_v63 = vadd.f32 1.0, %v3841_v4  ;;  %v2586_v8 = vmul.f32 %v2585_v49, %v7437_v60 }
 0x33b   :  { %v7482_v33 = vmul.f32 0.70710677, %v7467_v12  ;;  %v1351_v6 = vmul.f32 0.5, %v7298_v48  ;;  %v4102_v61 = vmul.f32 %v4038_v11, %v1350_v3  ;;  %v2550_v16 = vmul.f32 %v2549_v62, %v7344_v39  ;;  %v855_v39 = vpop.f32.mrf.mxu2 }
 0x33c   :  { %v4039_v42 = vadd.f32 1.0, %v4635_v43  ;;  %vm2568_vm0 = vweird.f32 %v7434_v9  ;;  %v3826_v28 = vmul.f32 %v3825_v18, %v7410_v29  ;;  %v2599_v38 = vmul.f32 %v2598_v32, %v7437_v60 }
 0x33d   :  { %v7489_v26 = vmin.f32 %v3860_v23, 16.0  ;;  %v2620_v0 = vmul.f32 %v7482_v33, %v7482_v33  ;;  %v2567_v53 = vadd.f32 %v7451_v34, %v2566_v31  ;;  %vm2569_vm1 = vweird.f32 %v7451_v34 }
 0x33e   :  { %v4103_v27 = vmul.f32 %v4039_v42, %v1351_v6  ;;  %5049 = vrcp.f32 %v7478_v63  ;;  %v2587_v48 = vadd.f32 0.05243302, %v2586_v8  ;;  %v2600_v15 = vadd.f32 0.4994258, %v2599_v38  ;;  %vm7506_vm2 = vmor %vm2568_vm0, %vm2569_vm1 }
 0x33f   :  { %v3862_v51 = vmul.f32 2.1237322e-06, %v7489_v26  ;;  %v3873_v44 = vmul.f32 3.8918573e-05, %v7489_v26  ;;  %v2572_v24 = vand.u32 2147483647, %v7434_v9  ;;  %v1025_v40 = vadd.f32 %v1024_v1, %v855_v39 }
 0x340   :  { %v4868_v30 = vpack.c.bf16 %v4103_v27, %v4102_v61  ;;  %v2574_v22 = vand.u32 2147483648, %v7434_v9  ;;  %v3827_v57 = vadd.f32 0.05243302, %v3826_v28  ;;  %v7500_v52 = vmin.f32 %v2620_v0, 16.0 }
 0x341   :  { %v2601_v45 = vmul.f32 %v2600_v15, %v7437_v60  ;;  %v3863_v50 = vadd.f32 0.00028619796, %v3862_v51  ;;  %v3874_v2 = vadd.f32 0.001143296, %v3873_v44  ;;  %v2551_v7 = vadd.f32 1.1283791, %v2550_v16 }
 0x342   :  { %4908 = vst [vmem:[#allocation8 + $0xe8] sm:$0xff] %v4868_v30   ;;  %v2571_v37 = vsel %vm7506_vm2, %v7451_v34, %v2567_v53  ;;  %v2588_v20 = vmul.f32 %v2587_v48, %v7437_v60  ;;  %v947_v17 = vadd.f32 %v946_v10, %v777_v46  ;;  %v2575_v49 = vor.u32 1.1754944e-38, %v2574_v22 }
 0x343   :  { %v7515_v19 = vadd.f32 1.0, %v2601_v45  ;;  %v3864_v9 = vmul.f32 %v3863_v50, %v7489_v26  ;;  %v3875_v35 = vmul.f32 %v3874_v2, %v7489_v26  ;;  %v3828_v13 = vmul.f32 %v3827_v57, %v7410_v29 }
 0x344   :  { %v7519_v59 = vpop.eup %5049  ;;  %v2633_v4 = vmul.f32 3.8918573e-05, %v7500_v52  ;;  %vm2573_vm3 = vcmp.eq.f32.partialorder %v2572_v24, 8.507059e+37  ;;  %v7525_v34 = vadd.f32 %v7274_v58, %v1025_v40  ;;  %v2589_v11 = vadd.f32 0.18741608, %v2588_v20 }
 0x345   :  { %5051 = vrcp.f32 %v7515_v19  ;;  %v2576_v25 = vsel %vm2573_vm3, %v2575_v49, %v2571_v37  ;;  %v3865_v62 = vadd.f32 0.0036580483, %v3864_v9  ;;  %v3876_v18 = vadd.f32 0.014752088, %v3875_v35 }
 0x346   :  { %v2552_v3 = vmul.f32 %v2551_v7, %v7323_v56  ;;  %v3844_v43 = vmul.f32 %v7519_v59, %v7478_v63  ;;  %v2634_v32 = vadd.f32 0.001143296, %v2633_v4  ;;  %v7531_v23 = vadd.f32 %v7274_v58, %v947_v17 }
 0x347   :  { %v3829_v31 = vadd.f32 0.18741608, %v3828_v13  ;;  %v3877_v8 = vmul.f32 %v3876_v18, %v7489_v26  ;;  %v7538_v61 = vmul.f32 0.70710677, %v7525_v34  ;;  %v2590_v16 = vmul.f32 %v2589_v11, %v7437_v60 }
 0x348   :  { %v7534_v6 = vmul.f32 %v2576_v25, %v2552_v3  ;;  %v2635_v42 = vmul.f32 %v2634_v32, %v7500_v52  ;;  %v3866_v56 = vmul.f32 %v3865_v62, %v7489_v26  ;;  %v3845_v38 = vsub.f32 1.0, %v3844_v43  ;;  %v857_v3 = vpop.f32.mrf.mxu2  ;;  %v1026_v43 = vpop.f32.mrf.mxu3 }
 0x349   :  { %v3878_v28 = vadd.f32 0.112945676, %v3877_v8  ;;  %v3900_v53 = vmul.f32 %v7538_v61, %v7538_v61  ;;  %v7545_v48 = vmul.f32 0.70710677, %v7531_v23  ;;  %v7548_v39 = vmul.f32 0.5, %v7308_v5 }
 0x34a   :  { %v2636_v0 = vadd.f32 0.014752088, %v2635_v42  ;;  %v3830_v1 = vmul.f32 %v3829_v31, %v7410_v29  ;;  %v3854_v30 = vand.u32 2147483648, %v7478_v63  ;;  %v4604_v15 = vclamps-f32 %v7534_v6, 1.0 }
 0x34b   :  { %v5052_v27 = vpop.eup %5051  ;;  %vm3848_vm4 = vweird.f32 %v7478_v63  ;;  %v3879_v51 = vmul.f32 %v3878_v28, %v7489_v26  ;;  %v7557_v24 = vmin.f32 %v3900_v53, 16.0  ;;  %v2591_v22 = vadd.f32 1.1283791, %v2590_v16 }
 0x34c   :  { %v2604_v60 = vmul.f32 %v5052_v27, %v7515_v19  ;;  %v2637_v44 = vmul.f32 %v2636_v0, %v7500_v52  ;;  %v2614_v5 = vand.u32 2147483648, %v7515_v19  ;;  %v3867_v46 = vadd.f32 0.05243302, %v3866_v56 }
 0x34d   :  { %v3846_v29 = vmul.f32 %v7519_v59, %v3845_v38  ;;  %v3880_v10 = vadd.f32 0.4994258, %v3879_v51  ;;  %v2660_v45 = vmul.f32 %v7545_v48, %v7545_v48  ;;  %vm3849_vm5 = vweird.f32 %v7519_v59 }
 0x34e   :  { %v2605_v57 = vsub.f32 1.0, %v2604_v60  ;;  %v2638_v14 = vadd.f32 0.112945676, %v2637_v44  ;;  %vm2609_vm6 = vweird.f32 %v5052_v27  ;;  %v2612_v2 = vand.u32 2147483647, %v7515_v19  ;;  %vm7583_vm10 = vmor %vm3848_vm4, %vm3849_vm5 }
 0x34f   :  { %v3881_v40 = vmul.f32 %v3880_v10, %v7489_v26  ;;  %v2622_v7 = vmul.f32 2.1237322e-06, %v7500_v52  ;;  %v3913_v20 = vmul.f32 3.8918573e-05, %v7557_v24  ;;  %vm2608_vm7 = vweird.f32 %v7515_v19 }
 0x350   :  { %v2606_v50 = vmul.f32 %v5052_v27, %v2605_v57  ;;  %v2639_v37 = vmul.f32 %v2638_v14, %v7500_v52  ;;  %v2615_v35 = vor.u32 1.1754944e-38, %v2614_v5  ;;  %v3868_v17 = vmul.f32 %v3867_v46, %v7489_v26  ;;  %vm2610_vm8 = vmor %vm2608_vm7, %vm2609_vm6 }
 0x351   :  { %v3847_v49 = vadd.f32 %v7519_v59, %v3846_v29  ;;  %v7572_v13 = vadd.f32 1.0, %v3881_v40  ;;  %v7574_v25 = vmin.f32 %v2660_v45, 16.0  ;;  %v2592_v11 = vmul.f32 %v2591_v22, %v7413_v41 }
 0x352   :  { %v2607_v9 = vadd.f32 %v5052_v27, %v2606_v50  ;;  %v2640_v4 = vadd.f32 0.4994258, %v2639_v37  ;;  %vm2613_vm9 = vcmp.eq.f32.partialorder %v2612_v2, 8.507059e+37  ;;  %v3914_v18 = vadd.f32 0.001143296, %v3913_v20 }
 0x353   :  { %v3852_v19 = vand.u32 2147483647, %v7478_v63  ;;  %5053 = vrcp.f32 %v7572_v13  ;;  %v2623_v31 = vadd.f32 0.00028619796, %v2622_v7  ;;  %v3831_v8 = vadd.f32 1.1283791, %v3830_v1 }
 0x354   :  { %v2611_v62 = vsel %vm2610_vm8, %v5052_v27, %v2607_v9  ;;  %v3869_v42 = vadd.f32 0.18741608, %v3868_v17  ;;  %v2641_v16 = vmul.f32 %v2640_v4, %v7500_v52  ;;  %v3851_v56 = vsel %vm7583_vm10, %v7519_v59, %v3847_v49 }
 0x355   :  { %v2616_v32 = vsel %vm2613_vm9, %v2615_v35, %v2611_v62  ;;  %v3915_v28 = vmul.f32 %v3914_v18, %v7557_v24  ;;  %v2662_v27 = vmul.f32 2.1237322e-06, %v7574_v25  ;;  %v1027_v38 = vadd.f32 %v1026_v43, %v857_v3 }
 0x356   :  { %v2617_v41 = vmul.f32 %v2616_v32, %v2592_v11  ;;  %v4008_v0 = vadd.f32 1.0, %v4604_v15  ;;  %v3855_v53 = vor.u32 1.1754944e-38, %v3854_v30  ;;  %v7593_v1 = vadd.f32 1.0, %v2641_v16 }
 0x357   :  { %vm3853_vm11 = vcmp.eq.f32.partialorder %v3852_v19, 8.507059e+37  ;;  %v1321_v60 = vmul.f32 0.5, %v7399_v55  ;;  %v2624_v51 = vmul.f32 %v2623_v31, %v7500_v52  ;;  %v3916_v44 = vadd.f32 0.014752088, %v3915_v28 }
 0x358   :  { %v4605_v63 = vclamps-f32 %v2617_v41, 1.0  ;;  %v3856_v22 = vsel %vm3853_vm11, %v3855_v53, %v3851_v56  ;;  %v3870_v59 = vmul.f32 %v3869_v42, %v7489_v26  ;;  %v2673_v5 = vmul.f32 3.8918573e-05, %v7574_v25 }
 0x359   :  { %v5054_v46 = vpop.eup %5053  ;;  %v3832_v29 = vmul.f32 %v3831_v8, %v7391_v21  ;;  %v3917_v30 = vmul.f32 %v3916_v44, %v7557_v24  ;;  %v2663_v15 = vadd.f32 0.00028619796, %v2662_v27  ;;  %v7602_v10 = vadd.f32 %v7274_v58, %v1027_v38 }
 0x35a   :  { %v4009_v57 = vadd.f32 1.0, %v4605_v63  ;;  %v4072_v55 = vmul.f32 %v4008_v0, %v7548_v39  ;;  %v3884_v45 = vmul.f32 %v5054_v46, %v7572_v13  ;;  %5055 = vrcp.f32 %v7593_v1 }
 0x35b   :  { %v3857_v50 = vmul.f32 %v3856_v22, %v3832_v29  ;;  %v2625_v26 = vadd.f32 0.0036580483, %v2624_v51  ;;  %v3902_v2 = vmul.f32 2.1237322e-06, %v7557_v24  ;;  %v3918_v40 = vadd.f32 0.112945676, %v3917_v30 }
 0x35c   :  { %v4073_v14 = vmul.f32 %v4009_v57, %v1321_v60  ;;  %v3871_v21 = vadd.f32 1.1283791, %v3870_v59  ;;  %v3885_v37 = vsub.f32 1.0, %v3884_v45  ;;  %v2674_v20 = vadd.f32 0.001143296, %v2673_v5 }
 0x35d   :  { %v3894_v9 = vand.u32 2147483648, %v7572_v13  ;;  %v3919_v58 = vmul.f32 %v3918_v40, %v7557_v24  ;;  %v2664_v39 = vmul.f32 %v2663_v15, %v7574_v25  ;;  %v7612_v35 = vmul.f32 0.70710677, %v7602_v10 }
 0x35e   :  { %v4793_v7 = vpack.c.bf16 %v4073_v14, %v4072_v55  ;;  %v3886_v17 = vmul.f32 %v5054_v46, %v3885_v37  ;;  %vm3889_vm12 = vweird.f32 %v5054_v46  ;;  %v3892_v49 = vand.u32 2147483647, %v7572_v13 }
 0x35f   :  { %v2675_v4 = vmul.f32 %v2674_v20, %v7574_v25  ;;  %v4636_v11 = vclamps-f32 %v3857_v50, 1.0  ;;  %v2626_v62 = vmul.f32 %v2625_v26, %v7500_v52  ;;  %v3903_v18 = vadd.f32 0.00028619796, %v3902_v2 }
 0x360   :  { %4893 = vst [vmem:[#allocation8 + $0x70] sm:$0xff] %v4793_v7   ;;  %v3920_v3 = vadd.f32 0.4994258, %v3919_v58  ;;  %v7617_v43 = vpop.eup %5055  ;;  %v3887_v19 = vadd.f32 %v5054_v46, %v3886_v17  ;;  %vm3888_vm13 = vweird.f32 %v7572_v13  ;;  %v3940_v31 = vmul.f32 %v7612_v35, %v7612_v35 }
 0x361   :  { %v2676_v32 = vadd.f32 0.014752088, %v2675_v4  ;;  %v3872_v8 = vmul.f32 %v3871_v21, %v7472_v54  ;;  %vm3890_vm14 = vmor %vm3888_vm13, %vm3889_vm12  ;;  %v3895_v6 = vor.u32 1.1754944e-38, %v3894_v9  ;;  %v2665_v42 = vadd.f32 0.0036580483, %v2664_v39 }
 0x362   :  { %v3921_v41 = vmul.f32 %v3920_v3, %v7557_v24  ;;  %v3891_v16 = vsel %vm3890_vm14, %v5054_v46, %v3887_v19  ;;  %vm3893_vm15 = vcmp.eq.f32.partialorder %v3892_v49, 8.507059e+37  ;;  %v7625_v28 = vmin.f32 %v3940_v31, 16.0 }
 0x363   :  { %v2677_v56 = vmul.f32 %v2676_v32, %v7574_v25  ;;  %v3896_v27 = vsel %vm3893_vm15, %v3895_v6, %v3891_v16  ;;  %v2627_v38 = vadd.f32 0.05243302, %v2626_v62  ;;  %v2644_v13 = vmul.f32 %v7617_v43, %v7593_v1 }
 0x364   :  { %v3904_v0 = vmul.f32 %v3903_v18, %v7557_v24  ;;  %v3897_v53 = vmul.f32 %v3896_v27, %v3872_v8  ;;  %v7630_v54 = vadd.f32 1.0, %v3921_v41  ;;  %v3942_v60 = vmul.f32 2.1237322e-06, %v7625_v28 }
 0x365   :  { %v2678_v63 = vadd.f32 0.112945676, %v2677_v56  ;;  %v2666_v51 = vmul.f32 %v2665_v42, %v7574_v25  ;;  %v1352_v44 = vmul.f32 0.5, %v7379_v47  ;;  %v4040_v22 = vadd.f32 1.0, %v4636_v11 }
 0x366   :  { %v4637_v57 = vclamps-f32 %v3897_v53, 1.0  ;;  %v1353_v5 = vmul.f32 0.5, %v7457_v36  ;;  %v2628_v46 = vmul.f32 %v2627_v38, %v7500_v52  ;;  %v3943_v29 = vadd.f32 0.00028619796, %v3942_v60 }
 0x367   :  { %v2679_v59 = vmul.f32 %v2678_v63, %v7574_v25  ;;  %v3953_v30 = vmul.f32 3.8918573e-05, %v7625_v28  ;;  %v2645_v55 = vsub.f32 1.0, %v2644_v13  ;;  %v3905_v14 = vadd.f32 0.0036580483, %v3904_v0 }
 0x368   :  { %v4041_v15 = vadd.f32 1.0, %v4637_v57  ;;  %5057 = vrcp.f32 %v7630_v54  ;;  %v2667_v45 = vadd.f32 0.05243302, %v2666_v51  ;;  %v4104_v47 = vmul.f32 %v4040_v22, %v1352_v44 }
 0x369   :  { %v2680_v50 = vadd.f32 0.4994258, %v2679_v59  ;;  %v3954_v26 = vadd.f32 0.001143296, %v3953_v30  ;;  %v2629_v40 = vadd.f32 0.18741608, %v2628_v46  ;;  %v3944_v36 = vmul.f32 %v3943_v29, %v7625_v28 }
 0x36a   :  { %v4105_v2 = vmul.f32 %v4041_v15, %v1353_v5  ;;  %v2646_v20 = vmul.f32 %v7617_v43, %v2645_v55  ;;  %v3906_v9 = vmul.f32 %v3905_v14, %v7557_v24  ;;  %v2668_v58 = vmul.f32 %v2667_v45, %v7574_v25 }
 0x36b   :  { %v2681_v7 = vmul.f32 %v2680_v50, %v7574_v25  ;;  %v3955_v21 = vmul.f32 %v3954_v26, %v7625_v28  ;;  %v2630_v4 = vmul.f32 %v2629_v40, %v7500_v52  ;;  %v3945_v11 = vadd.f32 0.0036580483, %v3944_v36 }
 0x36c   :  { %v4873_v37 = vpack.c.bf16 %v4105_v2, %v4104_v47  ;;  %v2647_v62 = vadd.f32 %v7617_v43, %v2646_v20  ;;  %vm2649_vm0 = vweird.f32 %v7617_v43  ;;  %v3907_v18 = vadd.f32 0.05243302, %v3906_v9 }
 0x36d   :  { %v2682_v39 = vadd.f32 1.0, %v2681_v7  ;;  %v3956_v17 = vadd.f32 0.014752088, %v3955_v21  ;;  %v2654_v19 = vand.u32 2147483648, %v7593_v1  ;;  %v2669_v31 = vadd.f32 0.18741608, %v2668_v58 }
 0x36e   :  { %v7646_v49 = vpop.eup %5057  ;;  %4909 = vst [vmem:[#allocation8 + $0xf0] sm:$0xff] %v4873_v37   ;;  %vm2648_vm1 = vweird.f32 %v7593_v1  ;;  %v2652_v8 = vand.u32 2147483647, %v7593_v1  ;;  %v3946_v6 = vmul.f32 %v3945_v11, %v7625_v28  ;;  %v2631_v41 = vadd.f32 1.1283791, %v2630_v4 }
 0x36f   :  { %5059 = vrcp.f32 %v2682_v39  ;;  %v3957_v3 = vmul.f32 %v3956_v17, %v7625_v28  ;;  %v3924_v32 = vmul.f32 %v7646_v49, %v7630_v54  ;;  %vm2650_vm2 = vmor %vm2648_vm1, %vm2649_vm0  ;;  %v3908_v16 = vmul.f32 %v3907_v18, %v7557_v24 }
 0x370   :  { %v2651_v42 = vsel %vm2650_vm2, %v7617_v43, %v2647_v62  ;;  %v2655_v38 = vor.u32 1.1754944e-38, %v2654_v19  ;;  %v2670_v0 = vmul.f32 %v2669_v31, %v7574_v25  ;;  %vm2653_vm3 = vcmp.eq.f32.partialorder %v2652_v8, 8.507059e+37 }
 0x371   :  { %v3958_v52 = vadd.f32 0.112945676, %v3957_v3  ;;  %v3925_v13 = vsub.f32 1.0, %v3924_v32  ;;  %v3947_v1 = vadd.f32 0.05243302, %v3946_v6  ;;  %v2632_v51 = vmul.f32 %v2631_v41, %v7482_v33 }
 0x372   :  { %v2656_v63 = vsel %vm2653_vm3, %v2655_v38, %v2651_v42  ;;  %v3909_v44 = vadd.f32 0.18741608, %v3908_v16  ;;  %v2671_v57 = vadd.f32 1.1283791, %v2670_v0  ;;  %v2694_v59 = vand.u32 2147483648, %v2682_v39 }
 0x373   :  { %v3959_v56 = vmul.f32 %v3958_v52, %v7625_v28  ;;  %v3926_v43 = vmul.f32 %v7646_v49, %v3925_v13  ;;  %v2657_v46 = vmul.f32 %v2656_v63, %v2632_v51  ;;  %v2692_v30 = vand.u32 2147483647, %v2682_v39 }
 0x374   :  { %v3948_v25 = vmul.f32 %v3947_v1, %v7625_v28  ;;  %v3910_v55 = vmul.f32 %v3909_v44, %v7557_v24  ;;  %v3934_v14 = vand.u32 2147483648, %v7630_v54  ;;  %vm2688_vm5 = vweird.f32 %v2682_v39 }
 0x375   :  { %v5060_v27 = vpop.eup %5059  ;;  %v3960_v60 = vadd.f32 0.4994258, %v3959_v56  ;;  %v3927_v45 = vadd.f32 %v7646_v49, %v3926_v43  ;;  %vm3929_vm6 = vweird.f32 %v7646_v49  ;;  %v2695_v50 = vor.u32 1.1754944e-38, %v2694_v59 }
 0x376   :  { %v2684_v53 = vmul.f32 %v5060_v27, %v2682_v39  ;;  %vm2689_vm4 = vweird.f32 %v5060_v27  ;;  %v4606_v26 = vclamps-f32 %v2657_v46, 1.0  ;;  %v2672_v47 = vmul.f32 %v2671_v57, %v7545_v48 }
 0x377   :  { %v3961_v5 = vmul.f32 %v3960_v60, %v7625_v28  ;;  %vm2690_vm7 = vmor %vm2688_vm5, %vm2689_vm4  ;;  %vm2693_vm8 = vcmp.eq.f32.partialorder %v2692_v30, 8.507059e+37  ;;  %vm3928_vm9 = vweird.f32 %v7630_v54  ;;  %v3932_v24 = vand.u32 2147483647, %v7630_v54 }
 0x378   :  { %v2685_v22 = vsub.f32 1.0, %v2684_v53  ;;  %v3949_v7 = vadd.f32 0.18741608, %v3948_v25  ;;  %vm3930_vm10 = vmor %vm3928_vm9, %vm3929_vm6  ;;  %v3911_v21 = vadd.f32 1.1283791, %v3910_v55  ;;  %v4010_v20 = vadd.f32 1.0, %v4606_v26 }
 0x379   :  { %v3962_v15 = vadd.f32 1.0, %v3961_v5  ;;  %v3931_v37 = vsel %vm3930_vm10, %v7646_v49, %v3927_v45  ;;  %v3935_v9 = vor.u32 1.1754944e-38, %v3934_v14  ;;  %v1322_v17 = vmul.f32 0.5, %v7467_v12 }
 0x37a   :  { %v2686_v29 = vmul.f32 %v5060_v27, %v2685_v22  ;;  %vm3933_vm11 = vcmp.eq.f32.partialorder %v3932_v24, 8.507059e+37  ;;  %v3950_v48 = vmul.f32 %v3949_v7, %v7625_v28  ;;  %v1323_v11 = vmul.f32 0.5, %v7531_v23 }
 0x37b   :  { %5061 = vrcp.f32 %v3962_v15  ;;  %v3936_v4 = vsel %vm3933_vm11, %v3935_v9, %v3931_v37  ;;  %v3912_v18 = vmul.f32 %v3911_v21, %v7538_v61  ;;  %v4074_v3 = vmul.f32 %v4010_v20, %v1322_v17 }
 0x37c   :  { %v2687_v33 = vadd.f32 %v5060_v27, %v2686_v29  ;;  %v3951_v31 = vadd.f32 1.1283791, %v3950_v48  ;;  %v3974_v8 = vand.u32 2147483648, %v3962_v15  ;;  %v3972_v12 = vand.u32 2147483647, %v3962_v15 }
 0x37d   :  { %v3937_v49 = vmul.f32 %v3936_v4, %v3912_v18  ;;  %vm3968_vm13 = vweird.f32 %v3962_v15  ;;  %v1354_v13 = vmul.f32 0.5, %v7525_v34  ;;  %v1355_v0 = vmul.f32 0.5, %v7602_v10 }
 0x37e   :  { %v2691_v2 = vsel %vm2690_vm7, %v5060_v27, %v2687_v33  ;;  %v3975_v28 = vor.u32 1.1754944e-38, %v3974_v8  ;;  %v3952_v42 = vmul.f32 %v3951_v31, %v7612_v35  ;;  %vm3973_vm15 = vcmp.eq.f32.partialorder %v3972_v12, 8.507059e+37 }
 0x37f   :  { %v2696_v40 = vsel %vm2693_vm8, %v2695_v50, %v2691_v2  ;;  %v4638_v23 = vclamps-f32 %v3937_v49, 1.0 }
 0x380   :  { %v2697_v36 = vmul.f32 %v2696_v40, %v2672_v47 }
 0x381   :  { %v5062_v39 = vpop.eup %5061  ;;  %v4042_v27 = vadd.f32 1.0, %v4638_v23 }
 0x382   :  { %v4607_v58 = vclamps-f32 %v2697_v36, 1.0  ;;  %v3964_v62 = vmul.f32 %v5062_v39, %v3962_v15  ;;  %vm3969_vm12 = vweird.f32 %v5062_v39 }
 0x383   :  { %vm3970_vm14 = vmor %vm3968_vm13, %vm3969_vm12  ;;  %v4106_v63 = vmul.f32 %v4042_v27, %v1354_v13 }
 0x384   :  { %v4011_v54 = vadd.f32 1.0, %v4607_v58  ;;  %v3965_v32 = vsub.f32 1.0, %v3964_v62 }
 0x386   :  { %v4075_v19 = vmul.f32 %v4011_v54, %v1323_v11  ;;  %v3966_v6 = vmul.f32 %v5062_v39, %v3965_v32 }
 0x388   :  { %v4798_v52 = vpack.c.bf16 %v4075_v19, %v4074_v3  ;;  %v3967_v41 = vadd.f32 %v5062_v39, %v3966_v6 }
 0x38a   :  { %4894 = vst [vmem:[#allocation8 + $0x78] sm:$0xff] %v4798_v52   ;;  %v3971_v16 = vsel %vm3970_vm14, %v5062_v39, %v3967_v41 }
 0x38b   :  { %v3976_v61 = vsel %vm3973_vm15, %v3975_v28, %v3971_v16 }
 0x38c   :  { %v3977_v56 = vmul.f32 %v3976_v61, %v3952_v42 }
 0x38e   :  { %v4639_v38 = vclamps-f32 %v3977_v56, 1.0 }
 0x390   :  { %v4043_v53 = vadd.f32 1.0, %v4639_v38 }
 0x392   :  { %v4107_v1 = vmul.f32 %v4043_v53, %v1355_v0 }
 0x394   :  { %v4878_v35 = vpack.c.bf16 %v4107_v1, %v4106_v63 }
 0x396   :  { %4910 = vst [vmem:[#allocation8 + $0xf8] sm:$0xff] %v4878_v35  }
 0x397   :  { %4248 = dma.vmem_to_hbm [thread:$0]  %s4241_s9, 4096, %s4243_s12, [#allocation5], %s5150_s24, %s5150_s24, %s5151_s25  }
 0x398   :  { %5144 = dma.done.wait [#allocation5], 4096  }
 0x399   :  { %5145 = vsyncadd [#allocation5], 4294963200 }
 0x39a   :  { %4253 = vsyncpa [#allocation4], 1 }
 0x39b   :  { %4254 = vsyncpa [#allocation7], 1 }
 0x39c   :  { %4255 = vsyncpa [#allocation5], 1 }

</bundles_post_ra>
